<compile_context>
chip_gen: v7x
topology: tpu7x:2x2x1
jax: 0.10.0
libtpu: 0.0.40
codegen_flags: <defaults>
</compile_context>

<pallas_src>
import jax
import jax.numpy as jnp
from jax.experimental import pallas as pl
from jax.experimental.pallas import tpu as pltpu

# Scoped VMEM limit: stay below v7x's 64 MiB physical VMEM per TensorCore
# (also safe on v5e/v6e, which have 128 MiB).
_VMEM_LIMIT = 48 * 1024 * 1024


# ----------------------------------------------------------------------------
# Kernel 1: fused nearest-2x-upsample + pad + 3x3 conv + bias + partial BN stats
# ----------------------------------------------------------------------------
def _upconv_kernel(x_ref, w_ref, b_ref, y_ref, stats_ref, xpad_ref, acc_ref):
    # x_ref    : (1, H, W, Cin)      whole (un-upsampled) source image of batch n
    # w_ref    : (3, 3, Cin, Cout)
    # b_ref    : (1, Cout)
    # y_ref    : (1, TH, Wout, Cout) conv+bias output row tile
    # stats_ref: (1, 1, 2, Cout)     per-tile [sum, sum_sq] of the conv output
    # xpad_ref : (THp*Wp + 8, Cin)   flattened, zero-padded, 2x-upsampled tile
    # acc_ref  : (TH*Wp, Cout)       conv accumulator (valid cols < Wout)
    t = pl.program_id(1)
    n_tiles = pl.num_programs(1)

    TH, Wout, cout = y_ref.shape[1], y_ref.shape[2], y_ref.shape[3]
    TS = TH // 2            # source rows per output row tile
    Wp = Wout + 2           # padded upsampled width
    L = TH * Wp

    # ---- build the zero-padded, nearest-upsampled input tile in VMEM --------
    xpad_ref[...] = jnp.zeros_like(xpad_ref)

    s0 = t * TS
    src = x_ref[0, pl.ds(s0, TS), :, :]                            # (TS, W, Cin)
    up = jnp.repeat(jnp.repeat(src, 2, axis=0), 2, axis=1)         # (TH, Wout, Cin)
    for j in range(TH):                                            # core rows
        base = (j + 1) * Wp + 1
        xpad_ref[base:base + Wout, :] = up[j]

    @pl.when(t > 0)                                                # top halo row
    def _():
        row = x_ref[0, pl.ds(s0 - 1, 1), :, :]                     # (1, W, Cin)
        xpad_ref[1:1 + Wout, :] = jnp.repeat(row, 2, axis=1)[0]

    @pl.when(t < n_tiles - 1)                                      # bottom halo row
    def _():
        row = x_ref[0, pl.ds(s0 + TS, 1), :, :]
        base = (TH + 1) * Wp + 1
        xpad_ref[base:base + Wout, :] = jnp.repeat(row, 2, axis=1)[0]

    # ---- 3x3 conv: 9 contiguous-slab matmuls into the VMEM accumulator ------
    acc_ref[...] = jnp.zeros_like(acc_ref)
    for dy in range(3):
        for dx in range(3):
            off = dy * Wp + dx
            acc_ref[...] += jnp.dot(xpad_ref[off:off + L, :], w_ref[dy, dx],
                                    preferred_element_type=jnp.float32)

    # ---- bias, output row tile, and partial BN statistics --------------------
    bias = b_ref[0]                                                # (Cout,)
    s = jnp.zeros((1, cout), jnp.float32)
    sq = jnp.zeros((1, cout), jnp.float32)
    for j in range(TH):
        row = acc_ref[j * Wp:j * Wp + Wout, :] + bias              # (Wout, Cout)
        y_ref[0, j, :, :] = row
        s = s + jnp.sum(row, axis=0, keepdims=True)
        sq = sq + jnp.sum(row * row, axis=0, keepdims=True)
    stats_ref[0, 0, 0:1, :] = s
    stats_ref[0, 0, 1:2, :] = sq


# ----------------------------------------------------------------------------
# Kernel 2: BatchNorm scale/shift + ReLU (elementwise)
# ----------------------------------------------------------------------------
def _bn_relu_kernel(y_ref, scale_ref, shift_ref, o_ref):
    o_ref[...] = jnp.maximum(y_ref[...] * scale_ref[0] + shift_ref[0], 0.0)


# ----------------------------------------------------------------------------
# Wrapper
# ----------------------------------------------------------------------------
def _pick_tile_rows(hout, cap=8):
    """Largest even divisor of hout that is <= cap (hout = 2*H is always even)."""
    for th in range(min(cap, hout), 1, -1):
        if hout % th == 0 and th % 2 == 0:
            return th
    return 2


def up_conv_forward(params, x_nchw, *, eps=1e-5, tile_rows_cap=8):
    """up_conv forward: Upsample(2x, nearest) -> Conv3x3(+bias) -> BN -> ReLU.

    Accepts / returns PyTorch-style NCHW; computes in NHWC internally."""
    w, b = params["w"], params["b"]
    gamma, beta = params["g"], params["be"]

    # TODO(synk): NCHW<->NHWC boundary transposes and the tiny cross-tile BN
    # stat reduction below are plain-JAX glue.
    x = jnp.transpose(x_nchw, (0, 2, 3, 1)).astype(jnp.float32)    # NHWC
    N, H, W, Cin = x.shape
    Cout = w.shape[-1]
    Hout, Wout = 2 * H, 2 * W

    TH = _pick_tile_rows(Hout, tile_rows_cap)
    T = Hout // TH
    Wp = Wout + 2
    THp = TH + 2

    y, stats = pl.pallas_call(
        _upconv_kernel,
        out_shape=(jax.ShapeDtypeStruct((N, Hout, Wout, Cout), jnp.float32),
                   jax.ShapeDtypeStruct((N, T, 2, Cout), jnp.float32)),
        grid=(N, T),
        in_specs=[
            pl.BlockSpec((1, H, W, Cin), lambda n, t: (n, 0, 0, 0)),
            pl.BlockSpec((3, 3, Cin, Cout), lambda n, t: (0, 0, 0, 0)),
            pl.BlockSpec((1, Cout), lambda n, t: (0, 0)),
        ],
        out_specs=(
            pl.BlockSpec((1, TH, Wout, Cout), lambda n, t: (n, t, 0, 0)),
            pl.BlockSpec((1, 1, 2, Cout), lambda n, t: (n, t, 0, 0)),
        ),
        scratch_shapes=[
            pltpu.VMEM((THp * Wp + 8, Cin), jnp.float32),   # padded upsampled tile
            pltpu.VMEM((TH * Wp, Cout), jnp.float32),       # conv accumulator
        ],
        compiler_params=pltpu.CompilerParams(
            dimension_semantics=("parallel", "parallel"),
            vmem_limit_bytes=_VMEM_LIMIT),
    )(x, w, b.reshape(1, Cout))

    # Training-mode BatchNorm2d statistics (biased variance, like PyTorch fwd)
    # from the per-tile partial sums: no re-read of the full conv output.
    count = N * Hout * Wout
    mean = jnp.sum(stats[:, :, 0, :], axis=(0, 1)) / count
    ex2 = jnp.sum(stats[:, :, 1, :], axis=(0, 1)) / count
    var = jnp.maximum(ex2 - mean * mean, 0.0)
    scale = gamma * jax.lax.rsqrt(var + eps)
    shift = beta - mean * scale

    z = pl.pallas_call(
        _bn_relu_kernel,
        out_shape=jax.ShapeDtypeStruct((N, Hout, Wout, Cout), jnp.float32),
        grid=(N, T),
        in_specs=[
            pl.BlockSpec((1, TH, Wout, Cout), lambda n, t: (n, t, 0, 0)),
            pl.BlockSpec((1, Cout), lambda n, t: (0, 0)),
            pl.BlockSpec((1, Cout), lambda n, t: (0, 0)),
        ],
        out_specs=pl.BlockSpec((1, TH, Wout, Cout), lambda n, t: (n, t, 0, 0)),
        compiler_params=pltpu.CompilerParams(
            dimension_semantics=("parallel", "parallel"),
            vmem_limit_bytes=_VMEM_LIMIT),
    )(y, scale.reshape(1, Cout), shift.reshape(1, Cout))

    return jnp.transpose(z, (0, 3, 1, 2))                          # back to NCHW


# ----------------------------------------------------------------------------
# Deterministic parameter init (PyTorch-style fan-in uniform) and pure-JAX ref
# ----------------------------------------------------------------------------
def init_up_conv_params(key, ch_in, ch_out):
    kw, kb = jax.random.split(key)
    bound = 1.0 / ((ch_in * 9) ** 0.5)
    return dict(
        w=jax.random.uniform(kw, (3, 3, ch_in, ch_out), jnp.float32, -bound, bound),
        b=jax.random.uniform(kb, (ch_out,), jnp.float32, -bound, bound),
        g=jnp.ones((ch_out,), jnp.float32),     # BN weight (gamma)
        be=jnp.zeros((ch_out,), jnp.float32),   # BN bias   (beta)
    )


def up_conv_reference(params, x_nchw, eps=1e-5):
    x = jnp.transpose(x_nchw, (0, 2, 3, 1)).astype(jnp.float32)
    x = jnp.repeat(jnp.repeat(x, 2, axis=1), 2, axis=2)            # nearest 2x
    y = jax.lax.conv_general_dilated(
        x, params["w"], window_strides=(1, 1), padding=((1, 1), (1, 1)),
        dimension_numbers=("NHWC", "HWIO", "NHWC"),
        precision=jax.lax.Precision.HIGHEST) + params["b"]
    mean = jnp.mean(y, axis=(0, 1, 2))
    var = jnp.var(y, axis=(0, 1, 2))
    z = (y - mean) * jax.lax.rsqrt(var + eps) * params["g"] + params["be"]
    return jnp.transpose(jnp.maximum(z, 0.0), (0, 3, 1, 2))


# ----------------------------------------------------------------------------
if __name__ == "__main__":
    key = jax.random.PRNGKey(0)
    pkey, xkey = jax.random.split(key)

    ch_in, ch_out = 16, 32
    N, H, W = 2, 8, 8                   # output spatial = 16x16 -> 2 row tiles of 8

    params = init_up_conv_params(pkey, ch_in, ch_out)
    x = jax.random.normal(xkey, (N, ch_in, H, W), jnp.float32)

    fwd = jax.jit(up_conv_forward)
    out = jax.block_until_ready(fwd(params, x))

    assert out.shape == (N, ch_out, 2 * H, 2 * W), out.shape
    assert bool(jnp.all(jnp.isfinite(out)))
    assert bool(jnp.all(out >= 0.0))                     # ReLU output range

    ref = up_conv_reference(params, x)
    err = float(jnp.max(jnp.abs(out - ref)))
    assert err < 5e-3, f"max abs error vs reference: {err}"

    print("KERNEL_OK")
</pallas_src>

<mosaic_0001>
module attributes {stable_mosaic.version = 11 : i64} {
  func.func @_bn_relu_kernel(%arg0: i32, %arg1: i32, %arg2: memref<1x8x16x32xf32, #tpu.memory_space<vmem>>, %arg3: memref<1x32xf32, #tpu.memory_space<vmem>>, %arg4: memref<1x32xf32, #tpu.memory_space<vmem>>, %arg5: memref<1x8x16x32xf32, #tpu.memory_space<vmem>>) attributes {dimension_semantics = [#tpu.dimension_semantics<parallel>, #tpu.dimension_semantics<parallel>], iteration_bounds = array<i64: 2, 2>, scalar_prefetch = 0 : i64, scratch_operands = 0 : i64, tpu.core_type = #tpu.core_type<tc>, window_params = [{transform_indices = @transform_0, window_bounds = array<i64: 1, 8, 16, 32>}, {pipeline_mode = #tpu.pipeline_mode<synchronous>, transform_indices = @transform_1, window_bounds = array<i64: 1, 32>}, {pipeline_mode = #tpu.pipeline_mode<synchronous>, transform_indices = @transform_2, window_bounds = array<i64: 1, 32>}, {transform_indices = @transform_3, window_bounds = array<i64: 1, 8, 16, 32>}]} {
    %c0 = arith.constant 0 : index
    %c0_0 = arith.constant 0 : index
    %c0_1 = arith.constant 0 : index
    %c0_2 = arith.constant 0 : index
    %0 = vector.load %arg2[%c0, %c0_0, %c0_1, %c0_2] : memref<1x8x16x32xf32, #tpu.memory_space<vmem>>, vector<1x8x16x32xf32>
    %c0_3 = arith.constant 0 : index
    %c0_4 = arith.constant 0 : index
    %1 = vector.load %arg3[%c0_3, %c0_4] : memref<1x32xf32, #tpu.memory_space<vmem>>, vector<1x32xf32>
    %2 = vector.shape_cast %1 : vector<1x32xf32> to vector<32xf32>
    %3 = vector.shape_cast %2 : vector<32xf32> to vector<1x1x1x32xf32>
    %4 = vector.broadcast %3 : vector<1x1x1x32xf32> to vector<1x8x16x32xf32>
    %5 = arith.mulf %0, %4 : vector<1x8x16x32xf32>
    %c0_5 = arith.constant 0 : index
    %c0_6 = arith.constant 0 : index
    %6 = vector.load %arg4[%c0_5, %c0_6] : memref<1x32xf32, #tpu.memory_space<vmem>>, vector<1x32xf32>
    %7 = vector.shape_cast %6 : vector<1x32xf32> to vector<32xf32>
    %8 = vector.shape_cast %7 : vector<32xf32> to vector<1x1x1x32xf32>
    %9 = vector.broadcast %8 : vector<1x1x1x32xf32> to vector<1x8x16x32xf32>
    %10 = arith.addf %5, %9 : vector<1x8x16x32xf32>
    %cst = arith.constant 0.000000e+00 : f32
    %11 = vector.broadcast %cst : f32 to vector<1x8x16x32xf32>
    %12 = arith.maximumf %10, %11 : vector<1x8x16x32xf32>
    %c0_7 = arith.constant 0 : index
    %c0_8 = arith.constant 0 : index
    %c0_9 = arith.constant 0 : index
    %c0_10 = arith.constant 0 : index
    %13 = vector.load %arg5[%c0_7, %c0_8, %c0_9, %c0_10] : memref<1x8x16x32xf32, #tpu.memory_space<vmem>>, vector<1x8x16x32xf32>
    tpu.vector_store %arg5[%c0_7, %c0_8, %c0_9, %c0_10], %12 {strides = array<i32>} : memref<1x8x16x32xf32, #tpu.memory_space<vmem>>, vector<1x8x16x32xf32>,
    return
  }
  func.func @transform_0(%arg0: i32, %arg1: i32) -> (i32, i32, i32, i32) {
    %c0_i32 = arith.constant 0 : i32
    %c0_i32_0 = arith.constant 0 : i32
    %c0_i32_1 = arith.constant 0 : i32
    return %arg0, %arg1, %c0_i32, %c0_i32_0 : i32, i32, i32, i32
  }
  func.func @transform_1(%arg0: i32, %arg1: i32) -> (i32, i32) {
    %c0_i32 = arith.constant 0 : i32
    %c0_i32_0 = arith.constant 0 : i32
    %c0_i32_1 = arith.constant 0 : i32
    return %c0_i32, %c0_i32_0 : i32, i32
  }
  func.func @transform_2(%arg0: i32, %arg1: i32) -> (i32, i32) {
    %c0_i32 = arith.constant 0 : i32
    %c0_i32_0 = arith.constant 0 : i32
    %c0_i32_1 = arith.constant 0 : i32
    return %c0_i32, %c0_i32_0 : i32, i32
  }
  func.func @transform_3(%arg0: i32, %arg1: i32) -> (i32, i32, i32, i32) {
    %c0_i32 = arith.constant 0 : i32
    %c0_i32_0 = arith.constant 0 : i32
    %c0_i32_1 = arith.constant 0 : i32
    return %arg0, %arg1, %c0_i32, %c0_i32_0 : i32, i32, i32, i32
  }
}

module attributes {stable_mosaic.version = 11 : i64} {
  func.func @_upconv_kernel(%arg0: i32, %arg1: i32, %arg2: memref<1x8x8x16xf32, #tpu.memory_space<vmem>>, %arg3: memref<3x3x16x32xf32, #tpu.memory_space<vmem>>, %arg4: memref<1x32xf32, #tpu.memory_space<vmem>>, %arg5: memref<1x8x16x32xf32, #tpu.memory_space<vmem>>, %arg6: memref<1x1x2x32xf32, #tpu.memory_space<vmem>>, %arg7: memref<188x16xf32, #tpu.memory_space<vmem>>, %arg8: memref<144x32xf32, #tpu.memory_space<vmem>>) attributes {dimension_semantics = [#tpu.dimension_semantics<parallel>, #tpu.dimension_semantics<parallel>], iteration_bounds = array<i64: 2, 2>, scalar_prefetch = 0 : i64, scratch_operands = 2 : i64, tpu.core_type = #tpu.core_type<tc>, window_params = [{transform_indices = @transform_0, window_bounds = array<i64: 1, 8, 8, 16>}, {pipeline_mode = #tpu.pipeline_mode<synchronous>, transform_indices = @transform_1, window_bounds = array<i64: 3, 3, 16, 32>}, {pipeline_mode = #tpu.pipeline_mode<synchronous>, transform_indices = @transform_2, window_bounds = array<i64: 1, 32>}, {transform_indices = @transform_3, window_bounds = array<i64: 1, 8, 16, 32>}, {transform_indices = @transform_4, window_bounds = array<i64: 1, 1, 2, 32>}]} {
    %cst = arith.constant 0.000000e+00 : f32
    %0 = vector.broadcast %cst : f32 to vector<188x16xf32>
    %c0 = arith.constant 0 : index
    %c0_0 = arith.constant 0 : index
    %1 = vector.load %arg7[%c0, %c0_0] : memref<188x16xf32, #tpu.memory_space<vmem>>, vector<188x16xf32>
    tpu.vector_store %arg7[%c0, %c0_0], %0 {strides = array<i32>} : memref<188x16xf32, #tpu.memory_space<vmem>>, vector<188x16xf32>,
    %c4_i32 = arith.constant 4 : i32
    %2 = arith.muli %arg1, %c4_i32 : i32
    %c0_1 = arith.constant 0 : index
    %3 = arith.index_cast %2 : i32 to index
    %c0_2 = arith.constant 0 : index
    %c0_3 = arith.constant 0 : index
    %4 = vector.load %arg2[%c0_1, %3, %c0_2, %c0_3] : memref<1x8x8x16xf32, #tpu.memory_space<vmem>>, vector<1x4x8x16xf32>
    %5 = vector.shape_cast %4 : vector<1x4x8x16xf32> to vector<4x8x16xf32>
    %6 = vector.shape_cast %5 : vector<4x8x16xf32> to vector<4x1x8x16xf32>
    %7 = vector.broadcast %6 : vector<4x1x8x16xf32> to vector<4x2x8x16xf32>
    %8 = vector.shape_cast %7 : vector<4x2x8x16xf32> to vector<8x8x16xf32>
    %9 = vector.shape_cast %8 : vector<8x8x16xf32> to vector<8x8x1x16xf32>
    %10 = vector.broadcast %9 : vector<8x8x1x16xf32> to vector<8x8x2x16xf32>
    %11 = vector.shape_cast %10 : vector<8x8x2x16xf32> to vector<8x16x16xf32>
    %12 = vector.extract_strided_slice %11 {offsets = [0, 0, 0], sizes = [1, 16, 16], strides = [1, 1, 1]} : vector<8x16x16xf32> to vector<1x16x16xf32>
    %13 = vector.shape_cast %12 : vector<1x16x16xf32> to vector<16x16xf32>
    %c19 = arith.constant 19 : index
    %c0_4 = arith.constant 0 : index
    %14 = vector.load %arg7[%c19, %c0_4] : memref<188x16xf32, #tpu.memory_space<vmem>>, vector<16x16xf32>
    tpu.vector_store %arg7[%c19, %c0_4], %13 {strides = array<i32>} : memref<188x16xf32, #tpu.memory_space<vmem>>, vector<16x16xf32>,
    %15 = vector.extract_strided_slice %11 {offsets = [1, 0, 0], sizes = [1, 16, 16], strides = [1, 1, 1]} : vector<8x16x16xf32> to vector<1x16x16xf32>
    %16 = vector.shape_cast %15 : vector<1x16x16xf32> to vector<16x16xf32>
    %c37 = arith.constant 37 : index
    %c0_5 = arith.constant 0 : index
    %17 = vector.load %arg7[%c37, %c0_5] : memref<188x16xf32, #tpu.memory_space<vmem>>, vector<16x16xf32>
    tpu.vector_store %arg7[%c37, %c0_5], %16 {strides = array<i32>} : memref<188x16xf32, #tpu.memory_space<vmem>>, vector<16x16xf32>,
    %18 = vector.extract_strided_slice %11 {offsets = [2, 0, 0], sizes = [1, 16, 16], strides = [1, 1, 1]} : vector<8x16x16xf32> to vector<1x16x16xf32>
    %19 = vector.shape_cast %18 : vector<1x16x16xf32> to vector<16x16xf32>
    %c55 = arith.constant 55 : index
    %c0_6 = arith.constant 0 : index
    %20 = vector.load %arg7[%c55, %c0_6] : memref<188x16xf32, #tpu.memory_space<vmem>>, vector<16x16xf32>
    tpu.vector_store %arg7[%c55, %c0_6], %19 {strides = array<i32>} : memref<188x16xf32, #tpu.memory_space<vmem>>, vector<16x16xf32>,
    %21 = vector.extract_strided_slice %11 {offsets = [3, 0, 0], sizes = [1, 16, 16], strides = [1, 1, 1]} : vector<8x16x16xf32> to vector<1x16x16xf32>
    %22 = vector.shape_cast %21 : vector<1x16x16xf32> to vector<16x16xf32>
    %c73 = arith.constant 73 : index
    %c0_7 = arith.constant 0 : index
    %23 = vector.load %arg7[%c73, %c0_7] : memref<188x16xf32, #tpu.memory_space<vmem>>, vector<16x16xf32>
    tpu.vector_store %arg7[%c73, %c0_7], %22 {strides = array<i32>} : memref<188x16xf32, #tpu.memory_space<vmem>>, vector<16x16xf32>,
    %24 = vector.extract_strided_slice %11 {offsets = [4, 0, 0], sizes = [1, 16, 16], strides = [1, 1, 1]} : vector<8x16x16xf32> to vector<1x16x16xf32>
    %25 = vector.shape_cast %24 : vector<1x16x16xf32> to vector<16x16xf32>
    %c91 = arith.constant 91 : index
    %c0_8 = arith.constant 0 : index
    %26 = vector.load %arg7[%c91, %c0_8] : memref<188x16xf32, #tpu.memory_space<vmem>>, vector<16x16xf32>
    tpu.vector_store %arg7[%c91, %c0_8], %25 {strides = array<i32>} : memref<188x16xf32, #tpu.memory_space<vmem>>, vector<16x16xf32>,
    %27 = vector.extract_strided_slice %11 {offsets = [5, 0, 0], sizes = [1, 16, 16], strides = [1, 1, 1]} : vector<8x16x16xf32> to vector<1x16x16xf32>
    %28 = vector.shape_cast %27 : vector<1x16x16xf32> to vector<16x16xf32>
    %c109 = arith.constant 109 : index
    %c0_9 = arith.constant 0 : index
    %29 = vector.load %arg7[%c109, %c0_9] : memref<188x16xf32, #tpu.memory_space<vmem>>, vector<16x16xf32>
    tpu.vector_store %arg7[%c109, %c0_9], %28 {strides = array<i32>} : memref<188x16xf32, #tpu.memory_space<vmem>>, vector<16x16xf32>,
    %30 = vector.extract_strided_slice %11 {offsets = [6, 0, 0], sizes = [1, 16, 16], strides = [1, 1, 1]} : vector<8x16x16xf32> to vector<1x16x16xf32>
    %31 = vector.shape_cast %30 : vector<1x16x16xf32> to vector<16x16xf32>
    %c127 = arith.constant 127 : index
    %c0_10 = arith.constant 0 : index
    %32 = vector.load %arg7[%c127, %c0_10] : memref<188x16xf32, #tpu.memory_space<vmem>>, vector<16x16xf32>
    tpu.vector_store %arg7[%c127, %c0_10], %31 {strides = array<i32>} : memref<188x16xf32, #tpu.memory_space<vmem>>, vector<16x16xf32>,
    %33 = vector.extract_strided_slice %11 {offsets = [7, 0, 0], sizes = [1, 16, 16], strides = [1, 1, 1]} : vector<8x16x16xf32> to vector<1x16x16xf32>
    %34 = vector.shape_cast %33 : vector<1x16x16xf32> to vector<16x16xf32>
    %c145 = arith.constant 145 : index
    %c0_11 = arith.constant 0 : index
    %35 = vector.load %arg7[%c145, %c0_11] : memref<188x16xf32, #tpu.memory_space<vmem>>, vector<16x16xf32>
    tpu.vector_store %arg7[%c145, %c0_11], %34 {strides = array<i32>} : memref<188x16xf32, #tpu.memory_space<vmem>>, vector<16x16xf32>,
    %c0_i32 = arith.constant 0 : i32
    %36 = arith.cmpi sgt, %arg1, %c0_i32 : i32
    %37 = arith.extui %36 : i1 to i32
    %c0_i32_12 = arith.constant 0 : i32
    %38 = arith.cmpi ne, %37, %c0_i32_12 : i32
    scf.if %38 {
      %c1_i32_176 = arith.constant 1 : i32
      %229 = arith.subi %2, %c1_i32_176 : i32
      %c0_177 = arith.constant 0 : index
      %230 = arith.index_cast %229 : i32 to index
      %c0_178 = arith.constant 0 : index
      %c0_179 = arith.constant 0 : index
      %231 = vector.load %arg2[%c0_177, %230, %c0_178, %c0_179] : memref<1x8x8x16xf32, #tpu.memory_space<vmem>>, vector<1x1x8x16xf32>
      %232 = vector.shape_cast %231 : vector<1x1x8x16xf32> to vector<1x8x16xf32>
      %233 = vector.shape_cast %232 : vector<1x8x16xf32> to vector<1x8x1x16xf32>
      %234 = vector.broadcast %233 : vector<1x8x1x16xf32> to vector<1x8x2x16xf32>
      %235 = vector.shape_cast %234 : vector<1x8x2x16xf32> to vector<1x16x16xf32>
      %236 = vector.shape_cast %235 : vector<1x16x16xf32> to vector<16x16xf32>
      %c1_180 = arith.constant 1 : index
      %c0_181 = arith.constant 0 : index
      %237 = vector.load %arg7[%c1_180, %c0_181] : memref<188x16xf32, #tpu.memory_space<vmem>>, vector<16x16xf32>
      tpu.vector_store %arg7[%c1_180, %c0_181], %236 {strides = array<i32>} : memref<188x16xf32, #tpu.memory_space<vmem>>, vector<16x16xf32>,
    } else {
    }
    %c1_i32 = arith.constant 1 : i32
    %39 = arith.cmpi slt, %arg1, %c1_i32 : i32
    %40 = arith.extui %39 : i1 to i32
    %c0_i32_13 = arith.constant 0 : i32
    %41 = arith.cmpi ne, %40, %c0_i32_13 : i32
    scf.if %41 {
      %c4_i32_176 = arith.constant 4 : i32
      %229 = arith.addi %2, %c4_i32_176 : i32
      %c0_177 = arith.constant 0 : index
      %230 = arith.index_cast %229 : i32 to index
      %c0_178 = arith.constant 0 : index
      %c0_179 = arith.constant 0 : index
      %231 = vector.load %arg2[%c0_177, %230, %c0_178, %c0_179] : memref<1x8x8x16xf32, #tpu.memory_space<vmem>>, vector<1x1x8x16xf32>
      %232 = vector.shape_cast %231 : vector<1x1x8x16xf32> to vector<1x8x16xf32>
      %233 = vector.shape_cast %232 : vector<1x8x16xf32> to vector<1x8x1x16xf32>
      %234 = vector.broadcast %233 : vector<1x8x1x16xf32> to vector<1x8x2x16xf32>
      %235 = vector.shape_cast %234 : vector<1x8x2x16xf32> to vector<1x16x16xf32>
      %236 = vector.shape_cast %235 : vector<1x16x16xf32> to vector<16x16xf32>
      %c163 = arith.constant 163 : index
      %c0_180 = arith.constant 0 : index
      %237 = vector.load %arg7[%c163, %c0_180] : memref<188x16xf32, #tpu.memory_space<vmem>>, vector<16x16xf32>
      tpu.vector_store %arg7[%c163, %c0_180], %236 {strides = array<i32>} : memref<188x16xf32, #tpu.memory_space<vmem>>, vector<16x16xf32>,
    } else {
    }
    %cst_14 = arith.constant 0.000000e+00 : f32
    %42 = vector.broadcast %cst_14 : f32 to vector<144x32xf32>
    %c0_15 = arith.constant 0 : index
    %c0_16 = arith.constant 0 : index
    %43 = vector.load %arg8[%c0_15, %c0_16] : memref<144x32xf32, #tpu.memory_space<vmem>>, vector<144x32xf32>
    tpu.vector_store %arg8[%c0_15, %c0_16], %42 {strides = array<i32>} : memref<144x32xf32, #tpu.memory_space<vmem>>, vector<144x32xf32>,
    %c0_17 = arith.constant 0 : index
    %c0_18 = arith.constant 0 : index
    %44 = vector.load %arg8[%c0_17, %c0_18] : memref<144x32xf32, #tpu.memory_space<vmem>>, vector<144x32xf32>
    %c0_19 = arith.constant 0 : index
    %c0_20 = arith.constant 0 : index
    %45 = vector.load %arg7[%c0_19, %c0_20] : memref<188x16xf32, #tpu.memory_space<vmem>>, vector<144x16xf32>
    %c0_21 = arith.constant 0 : index
    %c0_22 = arith.constant 0 : index
    %c0_23 = arith.constant 0 : index
    %c0_24 = arith.constant 0 : index
    %46 = vector.load %arg3[%c0_21, %c0_22, %c0_23, %c0_24] : memref<3x3x16x32xf32, #tpu.memory_space<vmem>>, vector<1x1x16x32xf32>
    %47 = vector.shape_cast %46 : vector<1x1x16x32xf32> to vector<16x32xf32>
    %cst_25 = arith.constant dense<0.000000e+00> : vector<144x32xf32>
    %48 = tpu.matmul %45, %47, %cst_25 {dimension_numbers = #tpu.dot_dimension_numbers<[1], [0], [0], [1], [0, 0, 1, 1], [], []>} : vector<144x16xf32>, vector<16x32xf32>, vector<144x32xf32> -> vector<144x32xf32>
    %49 = arith.addf %44, %48 : vector<144x32xf32>
    %c0_26 = arith.constant 0 : index
    %c0_27 = arith.constant 0 : index
    %50 = vector.load %arg8[%c0_26, %c0_27] : memref<144x32xf32, #tpu.memory_space<vmem>>, vector<144x32xf32>
    tpu.vector_store %arg8[%c0_26, %c0_27], %49 {strides = array<i32>} : memref<144x32xf32, #tpu.memory_space<vmem>>, vector<144x32xf32>,
    %c0_28 = arith.constant 0 : index
    %c0_29 = arith.constant 0 : index
    %51 = vector.load %arg8[%c0_28, %c0_29] : memref<144x32xf32, #tpu.memory_space<vmem>>, vector<144x32xf32>
    %c1 = arith.constant 1 : index
    %c0_30 = arith.constant 0 : index
    %52 = vector.load %arg7[%c1, %c0_30] : memref<188x16xf32, #tpu.memory_space<vmem>>, vector<144x16xf32>
    %c0_31 = arith.constant 0 : index
    %c1_32 = arith.constant 1 : index
    %c0_33 = arith.constant 0 : index
    %c0_34 = arith.constant 0 : index
    %53 = vector.load %arg3[%c0_31, %c1_32, %c0_33, %c0_34] : memref<3x3x16x32xf32, #tpu.memory_space<vmem>>, vector<1x1x16x32xf32>
    %54 = vector.shape_cast %53 : vector<1x1x16x32xf32> to vector<16x32xf32>
    %cst_35 = arith.constant dense<0.000000e+00> : vector<144x32xf32>
    %55 = tpu.matmul %52, %54, %cst_35 {dimension_numbers = #tpu.dot_dimension_numbers<[1], [0], [0], [1], [0, 0, 1, 1], [], []>} : vector<144x16xf32>, vector<16x32xf32>, vector<144x32xf32> -> vector<144x32xf32>
    %56 = arith.addf %51, %55 : vector<144x32xf32>
    %c0_36 = arith.constant 0 : index
    %c0_37 = arith.constant 0 : index
    %57 = vector.load %arg8[%c0_36, %c0_37] : memref<144x32xf32, #tpu.memory_space<vmem>>, vector<144x32xf32>
    tpu.vector_store %arg8[%c0_36, %c0_37], %56 {strides = array<i32>} : memref<144x32xf32, #tpu.memory_space<vmem>>, vector<144x32xf32>,
    %c0_38 = arith.constant 0 : index
    %c0_39 = arith.constant 0 : index
    %58 = vector.load %arg8[%c0_38, %c0_39] : memref<144x32xf32, #tpu.memory_space<vmem>>, vector<144x32xf32>
    %c2 = arith.constant 2 : index
    %c0_40 = arith.constant 0 : index
    %59 = vector.load %arg7[%c2, %c0_40] : memref<188x16xf32, #tpu.memory_space<vmem>>, vector<144x16xf32>
    %c0_41 = arith.constant 0 : index
    %c2_42 = arith.constant 2 : index
    %c0_43 = arith.constant 0 : index
    %c0_44 = arith.constant 0 : index
    %60 = vector.load %arg3[%c0_41, %c2_42, %c0_43, %c0_44] : memref<3x3x16x32xf32, #tpu.memory_space<vmem>>, vector<1x1x16x32xf32>
    %61 = vector.shape_cast %60 : vector<1x1x16x32xf32> to vector<16x32xf32>
    %cst_45 = arith.constant dense<0.000000e+00> : vector<144x32xf32>
    %62 = tpu.matmul %59, %61, %cst_45 {dimension_numbers = #tpu.dot_dimension_numbers<[1], [0], [0], [1], [0, 0, 1, 1], [], []>} : vector<144x16xf32>, vector<16x32xf32>, vector<144x32xf32> -> vector<144x32xf32>
    %63 = arith.addf %58, %62 : vector<144x32xf32>
    %c0_46 = arith.constant 0 : index
    %c0_47 = arith.constant 0 : index
    %64 = vector.load %arg8[%c0_46, %c0_47] : memref<144x32xf32, #tpu.memory_space<vmem>>, vector<144x32xf32>
    tpu.vector_store %arg8[%c0_46, %c0_47], %63 {strides = array<i32>} : memref<144x32xf32, #tpu.memory_space<vmem>>, vector<144x32xf32>,
    %c0_48 = arith.constant 0 : index
    %c0_49 = arith.constant 0 : index
    %65 = vector.load %arg8[%c0_48, %c0_49] : memref<144x32xf32, #tpu.memory_space<vmem>>, vector<144x32xf32>
    %c18 = arith.constant 18 : index
    %c0_50 = arith.constant 0 : index
    %66 = vector.load %arg7[%c18, %c0_50] : memref<188x16xf32, #tpu.memory_space<vmem>>, vector<144x16xf32>
    %c1_51 = arith.constant 1 : index
    %c0_52 = arith.constant 0 : index
    %c0_53 = arith.constant 0 : index
    %c0_54 = arith.constant 0 : index
    %67 = vector.load %arg3[%c1_51, %c0_52, %c0_53, %c0_54] : memref<3x3x16x32xf32, #tpu.memory_space<vmem>>, vector<1x1x16x32xf32>
    %68 = vector.shape_cast %67 : vector<1x1x16x32xf32> to vector<16x32xf32>
    %cst_55 = arith.constant dense<0.000000e+00> : vector<144x32xf32>
    %69 = tpu.matmul %66, %68, %cst_55 {dimension_numbers = #tpu.dot_dimension_numbers<[1], [0], [0], [1], [0, 0, 1, 1], [], []>} : vector<144x16xf32>, vector<16x32xf32>, vector<144x32xf32> -> vector<144x32xf32>
    %70 = arith.addf %65, %69 : vector<144x32xf32>
    %c0_56 = arith.constant 0 : index
    %c0_57 = arith.constant 0 : index
    %71 = vector.load %arg8[%c0_56, %c0_57] : memref<144x32xf32, #tpu.memory_space<vmem>>, vector<144x32xf32>
    tpu.vector_store %arg8[%c0_56, %c0_57], %70 {strides = array<i32>} : memref<144x32xf32, #tpu.memory_space<vmem>>, vector<144x32xf32>,
    %c0_58 = arith.constant 0 : index
    %c0_59 = arith.constant 0 : index
    %72 = vector.load %arg8[%c0_58, %c0_59] : memref<144x32xf32, #tpu.memory_space<vmem>>, vector<144x32xf32>
    %c19_60 = arith.constant 19 : index
    %c0_61 = arith.constant 0 : index
    %73 = vector.load %arg7[%c19_60, %c0_61] : memref<188x16xf32, #tpu.memory_space<vmem>>, vector<144x16xf32>
    %c1_62 = arith.constant 1 : index
    %c1_63 = arith.constant 1 : index
    %c0_64 = arith.constant 0 : index
    %c0_65 = arith.constant 0 : index
    %74 = vector.load %arg3[%c1_62, %c1_63, %c0_64, %c0_65] : memref<3x3x16x32xf32, #tpu.memory_space<vmem>>, vector<1x1x16x32xf32>
    %75 = vector.shape_cast %74 : vector<1x1x16x32xf32> to vector<16x32xf32>
    %cst_66 = arith.constant dense<0.000000e+00> : vector<144x32xf32>
    %76 = tpu.matmul %73, %75, %cst_66 {dimension_numbers = #tpu.dot_dimension_numbers<[1], [0], [0], [1], [0, 0, 1, 1], [], []>} : vector<144x16xf32>, vector<16x32xf32>, vector<144x32xf32> -> vector<144x32xf32>
    %77 = arith.addf %72, %76 : vector<144x32xf32>
    %c0_67 = arith.constant 0 : index
    %c0_68 = arith.constant 0 : index
    %78 = vector.load %arg8[%c0_67, %c0_68] : memref<144x32xf32, #tpu.memory_space<vmem>>, vector<144x32xf32>
    tpu.vector_store %arg8[%c0_67, %c0_68], %77 {strides = array<i32>} : memref<144x32xf32, #tpu.memory_space<vmem>>, vector<144x32xf32>,
    %c0_69 = arith.constant 0 : index
    %c0_70 = arith.constant 0 : index
    %79 = vector.load %arg8[%c0_69, %c0_70] : memref<144x32xf32, #tpu.memory_space<vmem>>, vector<144x32xf32>
    %c20 = arith.constant 20 : index
    %c0_71 = arith.constant 0 : index
    %80 = vector.load %arg7[%c20, %c0_71] : memref<188x16xf32, #tpu.memory_space<vmem>>, vector<144x16xf32>
    %c1_72 = arith.constant 1 : index
    %c2_73 = arith.constant 2 : index
    %c0_74 = arith.constant 0 : index
    %c0_75 = arith.constant 0 : index
    %81 = vector.load %arg3[%c1_72, %c2_73, %c0_74, %c0_75] : memref<3x3x16x32xf32, #tpu.memory_space<vmem>>, vector<1x1x16x32xf32>
    %82 = vector.shape_cast %81 : vector<1x1x16x32xf32> to vector<16x32xf32>
    %cst_76 = arith.constant dense<0.000000e+00> : vector<144x32xf32>
    %83 = tpu.matmul %80, %82, %cst_76 {dimension_numbers = #tpu.dot_dimension_numbers<[1], [0], [0], [1], [0, 0, 1, 1], [], []>} : vector<144x16xf32>, vector<16x32xf32>, vector<144x32xf32> -> vector<144x32xf32>
    %84 = arith.addf %79, %83 : vector<144x32xf32>
    %c0_77 = arith.constant 0 : index
    %c0_78 = arith.constant 0 : index
    %85 = vector.load %arg8[%c0_77, %c0_78] : memref<144x32xf32, #tpu.memory_space<vmem>>, vector<144x32xf32>
    tpu.vector_store %arg8[%c0_77, %c0_78], %84 {strides = array<i32>} : memref<144x32xf32, #tpu.memory_space<vmem>>, vector<144x32xf32>,
    %c0_79 = arith.constant 0 : index
    %c0_80 = arith.constant 0 : index
    %86 = vector.load %arg8[%c0_79, %c0_80] : memref<144x32xf32, #tpu.memory_space<vmem>>, vector<144x32xf32>
    %c36 = arith.constant 36 : index
    %c0_81 = arith.constant 0 : index
    %87 = vector.load %arg7[%c36, %c0_81] : memref<188x16xf32, #tpu.memory_space<vmem>>, vector<144x16xf32>
    %c2_82 = arith.constant 2 : index
    %c0_83 = arith.constant 0 : index
    %c0_84 = arith.constant 0 : index
    %c0_85 = arith.constant 0 : index
    %88 = vector.load %arg3[%c2_82, %c0_83, %c0_84, %c0_85] : memref<3x3x16x32xf32, #tpu.memory_space<vmem>>, vector<1x1x16x32xf32>
    %89 = vector.shape_cast %88 : vector<1x1x16x32xf32> to vector<16x32xf32>
    %cst_86 = arith.constant dense<0.000000e+00> : vector<144x32xf32>
    %90 = tpu.matmul %87, %89, %cst_86 {dimension_numbers = #tpu.dot_dimension_numbers<[1], [0], [0], [1], [0, 0, 1, 1], [], []>} : vector<144x16xf32>, vector<16x32xf32>, vector<144x32xf32> -> vector<144x32xf32>
    %91 = arith.addf %86, %90 : vector<144x32xf32>
    %c0_87 = arith.constant 0 : index
    %c0_88 = arith.constant 0 : index
    %92 = vector.load %arg8[%c0_87, %c0_88] : memref<144x32xf32, #tpu.memory_space<vmem>>, vector<144x32xf32>
    tpu.vector_store %arg8[%c0_87, %c0_88], %91 {strides = array<i32>} : memref<144x32xf32, #tpu.memory_space<vmem>>, vector<144x32xf32>,
    %c0_89 = arith.constant 0 : index
    %c0_90 = arith.constant 0 : index
    %93 = vector.load %arg8[%c0_89, %c0_90] : memref<144x32xf32, #tpu.memory_space<vmem>>, vector<144x32xf32>
    %c37_91 = arith.constant 37 : index
    %c0_92 = arith.constant 0 : index
    %94 = vector.load %arg7[%c37_91, %c0_92] : memref<188x16xf32, #tpu.memory_space<vmem>>, vector<144x16xf32>
    %c2_93 = arith.constant 2 : index
    %c1_94 = arith.constant 1 : index
    %c0_95 = arith.constant 0 : index
    %c0_96 = arith.constant 0 : index
    %95 = vector.load %arg3[%c2_93, %c1_94, %c0_95, %c0_96] : memref<3x3x16x32xf32, #tpu.memory_space<vmem>>, vector<1x1x16x32xf32>
    %96 = vector.shape_cast %95 : vector<1x1x16x32xf32> to vector<16x32xf32>
    %cst_97 = arith.constant dense<0.000000e+00> : vector<144x32xf32>
    %97 = tpu.matmul %94, %96, %cst_97 {dimension_numbers = #tpu.dot_dimension_numbers<[1], [0], [0], [1], [0, 0, 1, 1], [], []>} : vector<144x16xf32>, vector<16x32xf32>, vector<144x32xf32> -> vector<144x32xf32>
    %98 = arith.addf %93, %97 : vector<144x32xf32>
    %c0_98 = arith.constant 0 : index
    %c0_99 = arith.constant 0 : index
    %99 = vector.load %arg8[%c0_98, %c0_99] : memref<144x32xf32, #tpu.memory_space<vmem>>, vector<144x32xf32>
    tpu.vector_store %arg8[%c0_98, %c0_99], %98 {strides = array<i32>} : memref<144x32xf32, #tpu.memory_space<vmem>>, vector<144x32xf32>,
    %c0_100 = arith.constant 0 : index
    %c0_101 = arith.constant 0 : index
    %100 = vector.load %arg8[%c0_100, %c0_101] : memref<144x32xf32, #tpu.memory_space<vmem>>, vector<144x32xf32>
    %c38 = arith.constant 38 : index
    %c0_102 = arith.constant 0 : index
    %101 = vector.load %arg7[%c38, %c0_102] : memref<188x16xf32, #tpu.memory_space<vmem>>, vector<144x16xf32>
    %c2_103 = arith.constant 2 : index
    %c2_104 = arith.constant 2 : index
    %c0_105 = arith.constant 0 : index
    %c0_106 = arith.constant 0 : index
    %102 = vector.load %arg3[%c2_103, %c2_104, %c0_105, %c0_106] : memref<3x3x16x32xf32, #tpu.memory_space<vmem>>, vector<1x1x16x32xf32>
    %103 = vector.shape_cast %102 : vector<1x1x16x32xf32> to vector<16x32xf32>
    %cst_107 = arith.constant dense<0.000000e+00> : vector<144x32xf32>
    %104 = tpu.matmul %101, %103, %cst_107 {dimension_numbers = #tpu.dot_dimension_numbers<[1], [0], [0], [1], [0, 0, 1, 1], [], []>} : vector<144x16xf32>, vector<16x32xf32>, vector<144x32xf32> -> vector<144x32xf32>
    %105 = arith.addf %100, %104 : vector<144x32xf32>
    %c0_108 = arith.constant 0 : index
    %c0_109 = arith.constant 0 : index
    %106 = vector.load %arg8[%c0_108, %c0_109] : memref<144x32xf32, #tpu.memory_space<vmem>>, vector<144x32xf32>
    tpu.vector_store %arg8[%c0_108, %c0_109], %105 {strides = array<i32>} : memref<144x32xf32, #tpu.memory_space<vmem>>, vector<144x32xf32>,
    %c0_110 = arith.constant 0 : index
    %c0_111 = arith.constant 0 : index
    %107 = vector.load %arg4[%c0_110, %c0_111] : memref<1x32xf32, #tpu.memory_space<vmem>>, vector<1x32xf32>
    %108 = vector.shape_cast %107 : vector<1x32xf32> to vector<32xf32>
    %cst_112 = arith.constant 0.000000e+00 : f32
    %109 = vector.broadcast %cst_112 : f32 to vector<1x32xf32>
    %cst_113 = arith.constant 0.000000e+00 : f32
    %110 = vector.broadcast %cst_113 : f32 to vector<1x32xf32>
    %c0_114 = arith.constant 0 : index
    %c0_115 = arith.constant 0 : index
    %111 = vector.load %arg8[%c0_114, %c0_115] : memref<144x32xf32, #tpu.memory_space<vmem>>, vector<16x32xf32>
    %112 = vector.shape_cast %108 : vector<32xf32> to vector<1x32xf32>
    %113 = vector.broadcast %112 : vector<1x32xf32> to vector<16x32xf32>
    %114 = arith.addf %111, %113 : vector<16x32xf32>
    %c0_116 = arith.constant 0 : index
    %c0_117 = arith.constant 0 : index
    %c0_118 = arith.constant 0 : index
    %c0_119 = arith.constant 0 : index
    %115 = vector.load %arg5[%c0_116, %c0_117, %c0_118, %c0_119] : memref<1x8x16x32xf32, #tpu.memory_space<vmem>>, vector<1x1x16x32xf32>
    %116 = vector.shape_cast %115 : vector<1x1x16x32xf32> to vector<16x32xf32>
    %117 = vector.shape_cast %114 : vector<16x32xf32> to vector<1x1x16x32xf32>
    tpu.vector_store %arg5[%c0_116, %c0_117, %c0_118, %c0_119], %117 {strides = array<i32>} : memref<1x8x16x32xf32, #tpu.memory_space<vmem>>, vector<1x1x16x32xf32>,
    %cst_120 = arith.constant dense<0.000000e+00> : vector<32xf32>
    %118 = vector.multi_reduction <add>, %114, %cst_120 [0] : vector<16x32xf32> to vector<32xf32>
    %119 = vector.shape_cast %118 : vector<32xf32> to vector<1x32xf32>
    %120 = arith.addf %109, %119 : vector<1x32xf32>
    %121 = arith.mulf %114, %114 : vector<16x32xf32>
    %cst_121 = arith.constant dense<0.000000e+00> : vector<32xf32>
    %122 = vector.multi_reduction <add>, %121, %cst_121 [0] : vector<16x32xf32> to vector<32xf32>
    %123 = vector.shape_cast %122 : vector<32xf32> to vector<1x32xf32>
    %124 = arith.addf %110, %123 : vector<1x32xf32>
    %c18_122 = arith.constant 18 : index
    %c0_123 = arith.constant 0 : index
    %125 = vector.load %arg8[%c18_122, %c0_123] : memref<144x32xf32, #tpu.memory_space<vmem>>, vector<16x32xf32>
    %126 = vector.shape_cast %108 : vector<32xf32> to vector<1x32xf32>
    %127 = vector.broadcast %126 : vector<1x32xf32> to vector<16x32xf32>
    %128 = arith.addf %125, %127 : vector<16x32xf32>
    %c0_124 = arith.constant 0 : index
    %c1_125 = arith.constant 1 : index
    %c0_126 = arith.constant 0 : index
    %c0_127 = arith.constant 0 : index
    %129 = vector.load %arg5[%c0_124, %c1_125, %c0_126, %c0_127] : memref<1x8x16x32xf32, #tpu.memory_space<vmem>>, vector<1x1x16x32xf32>
    %130 = vector.shape_cast %129 : vector<1x1x16x32xf32> to vector<16x32xf32>
    %131 = vector.shape_cast %128 : vector<16x32xf32> to vector<1x1x16x32xf32>
    tpu.vector_store %arg5[%c0_124, %c1_125, %c0_126, %c0_127], %131 {strides = array<i32>} : memref<1x8x16x32xf32, #tpu.memory_space<vmem>>, vector<1x1x16x32xf32>,
    %cst_128 = arith.constant dense<0.000000e+00> : vector<32xf32>
    %132 = vector.multi_reduction <add>, %128, %cst_128 [0] : vector<16x32xf32> to vector<32xf32>
    %133 = vector.shape_cast %132 : vector<32xf32> to vector<1x32xf32>
    %134 = arith.addf %120, %133 : vector<1x32xf32>
    %135 = arith.mulf %128, %128 : vector<16x32xf32>
    %cst_129 = arith.constant dense<0.000000e+00> : vector<32xf32>
    %136 = vector.multi_reduction <add>, %135, %cst_129 [0] : vector<16x32xf32> to vector<32xf32>
    %137 = vector.shape_cast %136 : vector<32xf32> to vector<1x32xf32>
    %138 = arith.addf %124, %137 : vector<1x32xf32>
    %c36_130 = arith.constant 36 : index
    %c0_131 = arith.constant 0 : index
    %139 = vector.load %arg8[%c36_130, %c0_131] : memref<144x32xf32, #tpu.memory_space<vmem>>, vector<16x32xf32>
    %140 = vector.shape_cast %108 : vector<32xf32> to vector<1x32xf32>
    %141 = vector.broadcast %140 : vector<1x32xf32> to vector<16x32xf32>
    %142 = arith.addf %139, %141 : vector<16x32xf32>
    %c0_132 = arith.constant 0 : index
    %c2_133 = arith.constant 2 : index
    %c0_134 = arith.constant 0 : index
    %c0_135 = arith.constant 0 : index
    %143 = vector.load %arg5[%c0_132, %c2_133, %c0_134, %c0_135] : memref<1x8x16x32xf32, #tpu.memory_space<vmem>>, vector<1x1x16x32xf32>
    %144 = vector.shape_cast %143 : vector<1x1x16x32xf32> to vector<16x32xf32>
    %145 = vector.shape_cast %142 : vector<16x32xf32> to vector<1x1x16x32xf32>
    tpu.vector_store %arg5[%c0_132, %c2_133, %c0_134, %c0_135], %145 {strides = array<i32>} : memref<1x8x16x32xf32, #tpu.memory_space<vmem>>, vector<1x1x16x32xf32>,
    %cst_136 = arith.constant dense<0.000000e+00> : vector<32xf32>
    %146 = vector.multi_reduction <add>, %142, %cst_136 [0] : vector<16x32xf32> to vector<32xf32>
    %147 = vector.shape_cast %146 : vector<32xf32> to vector<1x32xf32>
    %148 = arith.addf %134, %147 : vector<1x32xf32>
    %149 = arith.mulf %142, %142 : vector<16x32xf32>
    %cst_137 = arith.constant dense<0.000000e+00> : vector<32xf32>
    %150 = vector.multi_reduction <add>, %149, %cst_137 [0] : vector<16x32xf32> to vector<32xf32>
    %151 = vector.shape_cast %150 : vector<32xf32> to vector<1x32xf32>
    %152 = arith.addf %138, %151 : vector<1x32xf32>
    %c54 = arith.constant 54 : index
    %c0_138 = arith.constant 0 : index
    %153 = vector.load %arg8[%c54, %c0_138] : memref<144x32xf32, #tpu.memory_space<vmem>>, vector<16x32xf32>
    %154 = vector.shape_cast %108 : vector<32xf32> to vector<1x32xf32>
    %155 = vector.broadcast %154 : vector<1x32xf32> to vector<16x32xf32>
    %156 = arith.addf %153, %155 : vector<16x32xf32>
    %c0_139 = arith.constant 0 : index
    %c3 = arith.constant 3 : index
    %c0_140 = arith.constant 0 : index
    %c0_141 = arith.constant 0 : index
    %157 = vector.load %arg5[%c0_139, %c3, %c0_140, %c0_141] : memref<1x8x16x32xf32, #tpu.memory_space<vmem>>, vector<1x1x16x32xf32>
    %158 = vector.shape_cast %157 : vector<1x1x16x32xf32> to vector<16x32xf32>
    %159 = vector.shape_cast %156 : vector<16x32xf32> to vector<1x1x16x32xf32>
    tpu.vector_store %arg5[%c0_139, %c3, %c0_140, %c0_141], %159 {strides = array<i32>} : memref<1x8x16x32xf32, #tpu.memory_space<vmem>>, vector<1x1x16x32xf32>,
    %cst_142 = arith.constant dense<0.000000e+00> : vector<32xf32>
    %160 = vector.multi_reduction <add>, %156, %cst_142 [0] : vector<16x32xf32> to vector<32xf32>
    %161 = vector.shape_cast %160 : vector<32xf32> to vector<1x32xf32>
    %162 = arith.addf %148, %161 : vector<1x32xf32>
    %163 = arith.mulf %156, %156 : vector<16x32xf32>
    %cst_143 = arith.constant dense<0.000000e+00> : vector<32xf32>
    %164 = vector.multi_reduction <add>, %163, %cst_143 [0] : vector<16x32xf32> to vector<32xf32>
    %165 = vector.shape_cast %164 : vector<32xf32> to vector<1x32xf32>
    %166 = arith.addf %152, %165 : vector<1x32xf32>
    %c72 = arith.constant 72 : index
    %c0_144 = arith.constant 0 : index
    %167 = vector.load %arg8[%c72, %c0_144] : memref<144x32xf32, #tpu.memory_space<vmem>>, vector<16x32xf32>
    %168 = vector.shape_cast %108 : vector<32xf32> to vector<1x32xf32>
    %169 = vector.broadcast %168 : vector<1x32xf32> to vector<16x32xf32>
    %170 = arith.addf %167, %169 : vector<16x32xf32>
    %c0_145 = arith.constant 0 : index
    %c4 = arith.constant 4 : index
    %c0_146 = arith.constant 0 : index
    %c0_147 = arith.constant 0 : index
    %171 = vector.load %arg5[%c0_145, %c4, %c0_146, %c0_147] : memref<1x8x16x32xf32, #tpu.memory_space<vmem>>, vector<1x1x16x32xf32>
    %172 = vector.shape_cast %171 : vector<1x1x16x32xf32> to vector<16x32xf32>
    %173 = vector.shape_cast %170 : vector<16x32xf32> to vector<1x1x16x32xf32>
    tpu.vector_store %arg5[%c0_145, %c4, %c0_146, %c0_147], %173 {strides = array<i32>} : memref<1x8x16x32xf32, #tpu.memory_space<vmem>>, vector<1x1x16x32xf32>,
    %cst_148 = arith.constant dense<0.000000e+00> : vector<32xf32>
    %174 = vector.multi_reduction <add>, %170, %cst_148 [0] : vector<16x32xf32> to vector<32xf32>
    %175 = vector.shape_cast %174 : vector<32xf32> to vector<1x32xf32>
    %176 = arith.addf %162, %175 : vector<1x32xf32>
    %177 = arith.mulf %170, %170 : vector<16x32xf32>
    %cst_149 = arith.constant dense<0.000000e+00> : vector<32xf32>
    %178 = vector.multi_reduction <add>, %177, %cst_149 [0] : vector<16x32xf32> to vector<32xf32>
    %179 = vector.shape_cast %178 : vector<32xf32> to vector<1x32xf32>
    %180 = arith.addf %166, %179 : vector<1x32xf32>
    %c90 = arith.constant 90 : index
    %c0_150 = arith.constant 0 : index
    %181 = vector.load %arg8[%c90, %c0_150] : memref<144x32xf32, #tpu.memory_space<vmem>>, vector<16x32xf32>
    %182 = vector.shape_cast %108 : vector<32xf32> to vector<1x32xf32>
    %183 = vector.broadcast %182 : vector<1x32xf32> to vector<16x32xf32>
    %184 = arith.addf %181, %183 : vector<16x32xf32>
    %c0_151 = arith.constant 0 : index
    %c5 = arith.constant 5 : index
    %c0_152 = arith.constant 0 : index
    %c0_153 = arith.constant 0 : index
    %185 = vector.load %arg5[%c0_151, %c5, %c0_152, %c0_153] : memref<1x8x16x32xf32, #tpu.memory_space<vmem>>, vector<1x1x16x32xf32>
    %186 = vector.shape_cast %185 : vector<1x1x16x32xf32> to vector<16x32xf32>
    %187 = vector.shape_cast %184 : vector<16x32xf32> to vector<1x1x16x32xf32>
    tpu.vector_store %arg5[%c0_151, %c5, %c0_152, %c0_153], %187 {strides = array<i32>} : memref<1x8x16x32xf32, #tpu.memory_space<vmem>>, vector<1x1x16x32xf32>,
    %cst_154 = arith.constant dense<0.000000e+00> : vector<32xf32>
    %188 = vector.multi_reduction <add>, %184, %cst_154 [0] : vector<16x32xf32> to vector<32xf32>
    %189 = vector.shape_cast %188 : vector<32xf32> to vector<1x32xf32>
    %190 = arith.addf %176, %189 : vector<1x32xf32>
    %191 = arith.mulf %184, %184 : vector<16x32xf32>
    %cst_155 = arith.constant dense<0.000000e+00> : vector<32xf32>
    %192 = vector.multi_reduction <add>, %191, %cst_155 [0] : vector<16x32xf32> to vector<32xf32>
    %193 = vector.shape_cast %192 : vector<32xf32> to vector<1x32xf32>
    %194 = arith.addf %180, %193 : vector<1x32xf32>
    %c108 = arith.constant 108 : index
    %c0_156 = arith.constant 0 : index
    %195 = vector.load %arg8[%c108, %c0_156] : memref<144x32xf32, #tpu.memory_space<vmem>>, vector<16x32xf32>
    %196 = vector.shape_cast %108 : vector<32xf32> to vector<1x32xf32>
    %197 = vector.broadcast %196 : vector<1x32xf32> to vector<16x32xf32>
    %198 = arith.addf %195, %197 : vector<16x32xf32>
    %c0_157 = arith.constant 0 : index
    %c6 = arith.constant 6 : index
    %c0_158 = arith.constant 0 : index
    %c0_159 = arith.constant 0 : index
    %199 = vector.load %arg5[%c0_157, %c6, %c0_158, %c0_159] : memref<1x8x16x32xf32, #tpu.memory_space<vmem>>, vector<1x1x16x32xf32>
    %200 = vector.shape_cast %199 : vector<1x1x16x32xf32> to vector<16x32xf32>
    %201 = vector.shape_cast %198 : vector<16x32xf32> to vector<1x1x16x32xf32>
    tpu.vector_store %arg5[%c0_157, %c6, %c0_158, %c0_159], %201 {strides = array<i32>} : memref<1x8x16x32xf32, #tpu.memory_space<vmem>>, vector<1x1x16x32xf32>,
    %cst_160 = arith.constant dense<0.000000e+00> : vector<32xf32>
    %202 = vector.multi_reduction <add>, %198, %cst_160 [0] : vector<16x32xf32> to vector<32xf32>
    %203 = vector.shape_cast %202 : vector<32xf32> to vector<1x32xf32>
    %204 = arith.addf %190, %203 : vector<1x32xf32>
    %205 = arith.mulf %198, %198 : vector<16x32xf32>
    %cst_161 = arith.constant dense<0.000000e+00> : vector<32xf32>
    %206 = vector.multi_reduction <add>, %205, %cst_161 [0] : vector<16x32xf32> to vector<32xf32>
    %207 = vector.shape_cast %206 : vector<32xf32> to vector<1x32xf32>
    %208 = arith.addf %194, %207 : vector<1x32xf32>
    %c126 = arith.constant 126 : index
    %c0_162 = arith.constant 0 : index
    %209 = vector.load %arg8[%c126, %c0_162] : memref<144x32xf32, #tpu.memory_space<vmem>>, vector<16x32xf32>
    %210 = vector.shape_cast %108 : vector<32xf32> to vector<1x32xf32>
    %211 = vector.broadcast %210 : vector<1x32xf32> to vector<16x32xf32>
    %212 = arith.addf %209, %211 : vector<16x32xf32>
    %c0_163 = arith.constant 0 : index
    %c7 = arith.constant 7 : index
    %c0_164 = arith.constant 0 : index
    %c0_165 = arith.constant 0 : index
    %213 = vector.load %arg5[%c0_163, %c7, %c0_164, %c0_165] : memref<1x8x16x32xf32, #tpu.memory_space<vmem>>, vector<1x1x16x32xf32>
    %214 = vector.shape_cast %213 : vector<1x1x16x32xf32> to vector<16x32xf32>
    %215 = vector.shape_cast %212 : vector<16x32xf32> to vector<1x1x16x32xf32>
    tpu.vector_store %arg5[%c0_163, %c7, %c0_164, %c0_165], %215 {strides = array<i32>} : memref<1x8x16x32xf32, #tpu.memory_space<vmem>>, vector<1x1x16x32xf32>,
    %cst_166 = arith.constant dense<0.000000e+00> : vector<32xf32>
    %216 = vector.multi_reduction <add>, %212, %cst_166 [0] : vector<16x32xf32> to vector<32xf32>
    %217 = vector.shape_cast %216 : vector<32xf32> to vector<1x32xf32>
    %218 = arith.addf %204, %217 : vector<1x32xf32>
    %219 = arith.mulf %212, %212 : vector<16x32xf32>
    %cst_167 = arith.constant dense<0.000000e+00> : vector<32xf32>
    %220 = vector.multi_reduction <add>, %219, %cst_167 [0] : vector<16x32xf32> to vector<32xf32>
    %221 = vector.shape_cast %220 : vector<32xf32> to vector<1x32xf32>
    %222 = arith.addf %208, %221 : vector<1x32xf32>
    %c0_168 = arith.constant 0 : index
    %c0_169 = arith.constant 0 : index
    %c0_170 = arith.constant 0 : index
    %c0_171 = arith.constant 0 : index
    %223 = vector.load %arg6[%c0_168, %c0_169, %c0_170, %c0_171] : memref<1x1x2x32xf32, #tpu.memory_space<vmem>>, vector<1x1x1x32xf32>
    %224 = vector.shape_cast %223 : vector<1x1x1x32xf32> to vector<1x32xf32>
    %225 = vector.shape_cast %218 : vector<1x32xf32> to vector<1x1x1x32xf32>
    tpu.vector_store %arg6[%c0_168, %c0_169, %c0_170, %c0_171], %225 {strides = array<i32>} : memref<1x1x2x32xf32, #tpu.memory_space<vmem>>, vector<1x1x1x32xf32>,
    %c0_172 = arith.constant 0 : index
    %c0_173 = arith.constant 0 : index
    %c1_174 = arith.constant 1 : index
    %c0_175 = arith.constant 0 : index
    %226 = vector.load %arg6[%c0_172, %c0_173, %c1_174, %c0_175] : memref<1x1x2x32xf32, #tpu.memory_space<vmem>>, vector<1x1x1x32xf32>
    %227 = vector.shape_cast %226 : vector<1x1x1x32xf32> to vector<1x32xf32>
    %228 = vector.shape_cast %222 : vector<1x32xf32> to vector<1x1x1x32xf32>
    tpu.vector_store %arg6[%c0_172, %c0_173, %c1_174, %c0_175], %228 {strides = array<i32>} : memref<1x1x2x32xf32, #tpu.memory_space<vmem>>, vector<1x1x1x32xf32>,
    return
  }
  func.func @transform_0(%arg0: i32, %arg1: i32) -> (i32, i32, i32, i32) {
    %c0_i32 = arith.constant 0 : i32
    %c0_i32_0 = arith.constant 0 : i32
    %c0_i32_1 = arith.constant 0 : i32
    %c0_i32_2 = arith.constant 0 : i32
    return %arg0, %c0_i32, %c0_i32_0, %c0_i32_1 : i32, i32, i32, i32
  }
  func.func @transform_1(%arg0: i32, %arg1: i32) -> (i32, i32, i32, i32) {
    %c0_i32 = arith.constant 0 : i32
    %c0_i32_0 = arith.constant 0 : i32
    %c0_i32_1 = arith.constant 0 : i32
    %c0_i32_2 = arith.constant 0 : i32
    %c0_i32_3 = arith.constant 0 : i32
    return %c0_i32, %c0_i32_0, %c0_i32_1, %c0_i32_2 : i32, i32, i32, i32
  }
  func.func @transform_2(%arg0: i32, %arg1: i32) -> (i32, i32) {
    %c0_i32 = arith.constant 0 : i32
    %c0_i32_0 = arith.constant 0 : i32
    %c0_i32_1 = arith.constant 0 : i32
    return %c0_i32, %c0_i32_0 : i32, i32
  }
  func.func @transform_3(%arg0: i32, %arg1: i32) -> (i32, i32, i32, i32) {
    %c0_i32 = arith.constant 0 : i32
    %c0_i32_0 = arith.constant 0 : i32
    %c0_i32_1 = arith.constant 0 : i32
    return %arg0, %arg1, %c0_i32, %c0_i32_0 : i32, i32, i32, i32
  }
  func.func @transform_4(%arg0: i32, %arg1: i32) -> (i32, i32, i32, i32) {
    %c0_i32 = arith.constant 0 : i32
    %c0_i32_0 = arith.constant 0 : i32
    %c0_i32_1 = arith.constant 0 : i32
    return %arg0, %arg1, %c0_i32, %c0_i32_0 : i32, i32, i32, i32
  }
}

</mosaic_0001>

<bundles_post_ra>
// kernel: up_conv_forward.3
= control target key start
LH: loop header
LB: loop body
LE: loop exit
PB: predicated region body
PF: predicated region fallthrough
CT: control target
= control target key end

     0   :  { %8 = vsyncpa [#allocation3], 0  ;;  %s856_s0 = inlined_call_operand.vmem [shape: f32[2,16,16,32], index: 0, kind: input, shape index: {}]   ;;  %s857_s1 = inlined_call_operand.vmem [shape: f32[1,32], index: 1, kind: input, shape index: {}]   ;;  %s858_s2 = inlined_call_operand.vmem [shape: f32[1,32], index: 2, kind: input, shape index: {}]   ;;  %s859_s3 = inlined_call_operand.hbm [shape: f32[2,16,16,32], index: 3, kind: output, shape index: {}]  }
   0x1   :  { %10 = vsyncpa [#allocation3 + $0x1], 0  ;;  %s612_s12 = smov 0   ;;  %s614_s13 = smov 0  }
   0x2   :  { %s616_s14 = smov 0   ;;  %s618_s15 = smov 0  }
   0x3   :  { %s620_s16 = smov 0   ;;  %s622_s17 = smov 0  }
   0x4   :  { %s624_s18 = smov 0   ;;  %s626_s19 = smov 0  }
   0x5 LB: > { %s400_s20 = sadd.s32 4294967295, %s587_s19   ;;  %s401_s21 = sadd.s32 4294967294, %s587_s19   ;;  %s587_s19 = sphi %s626_s19, %s16_s19   ;;  %s583_s18 = sphi %s624_s18, %s868_s18   ;;  %s579_s17 = sphi %s622_s17, %s867_s17   ;;  %s575_s16 = sphi %s620_s16, %s866_s16   ;;  %s571_s15 = sphi %s618_s15, %s865_s15   ;;  %s567_s14 = sphi %s616_s14, %s864_s14   ;;  %s563_s13 = sphi %s614_s13, %s863_s13   ;;  %s559_s12 = sphi %s612_s12, %s862_s12  }
   0x6   : > { %s25_s22 = sadd.s32 1, %s579_s17  ;;  %s28_s23 = sadd.s32 1, %s583_s18 }
   0x7   : > { %p26_p0 = scmp.ge.s32.totalorder %s25_s22, 2  ;;  %p117_p1 = scmp.ne.s32.totalorder %s567_s14, %s563_s13 }
   0x8   : > { %p118_p2 = scmp.eq.s32.totalorder %s400_s20, 3  ;;  %p123_p5 = scmp.ne.s32.totalorder %s563_s13, %s559_s12 }
   0x9   : > { %s870_s22 = smov (%p26_p0, %s25_s22), 0  ;;  %s872_s23 = smov (!%p26_p0, %s28_s23), %s583_s18 }
   0xa   : > { %s103_s24 = ssub.s32 %s579_s17, %s870_s22  ;;  %p663_p3 = por %p118_p2, %p117_p1 }
   0xb   : > { %p30_p4 = scmp.ge.s32.totalorder %s872_s23, 2  ;;  %p124_p6 = scmp.eq.s32.totalorder %s401_s21, 3 }
   0xc   : > { %p404_p7 = scmp.ge.s32.totalorder %s587_s19, 1  ;;  %p162_p9 = scmp.lt.s32.totalorder %s587_s19, 5 }
   0xd   : > { %s874_s23 = smov (%p30_p4, %s872_s23), 0  ;;  %p672_p8 = por %p124_p6, %p123_p5 }
   0xe   : > { %s102_s27 = ssub.s32 %s583_s18, %s874_s23  ;;  %s107_s28 = sadd.s32 1, %s567_s14 }
   0xf   : > { %s104_s29 = sor.u32 %s103_s24, %s102_s27  ;;  %p163_p10 = pnand %p404_p7, %p162_p9 }
  0x10   : > { %p105_p11 = scmp.eq.s32.totalorder %s104_s29, 0  ;;  %s406_s4 = sshll.u32 (!%p163_p10), %s571_s15, 3  ;;  %v690_v0 = vld [vmem:[%s857_s1] ss:$0 sm:$0xff] (!%p163_p10)  ;;  %vm281_vm0 = vcmask (!%p163_p10), 261120  }
  0x11   : > { %166 = sbr.rel (%p163_p10) target bundleno = 62 (0x3e), region = 32  ;;  %p192_p12 = scmp.lt.s32.totalorder (!%p163_p10), %s575_s16, 1  ;;  %v700_v1 = vld [vmem:[%s858_s2] ss:$0 sm:$0xff] (!%p163_p10) }
  0x12   : > { %s681_s30 = scalar_select %p105_p11, %s567_s14, %s107_s28  }
  0x13   : > { %p194_p13 = scmp.lt.s32.totalorder (!%p163_p10), %s406_s4, 15  ;;  %s188_s8 = sand.u32 (!%p163_p10), 1, %s563_s13  }
  0x14   : > { %s804_s21 = scalar_lea.sflag (!%p163_p10), [#allocation3], %s188_s8 }
  0x18   : > { %s193_s5 = scalar_select %p192_p12, %s575_s16, 1 }
  0x19   : > { %s876_s4 = smov (!%p194_p13, %s406_s4), 15 }
  0x1a   : > { %s408_s6 = sshll.u32 %s193_s5, 5  ;;  %s407_s7 = sshll.u32 %s876_s4, 1 }
  0x1b   : > { %s198_s9 = sadd.s32 %s408_s6, %s407_s7  ;;  %s704_s4 = sshll.u32 %s188_s8, 7 }
  0x1c   : > { %s409_s10 = sshll.u32 %s198_s9, 3  ;;  %s419_s5 = sshll.u32 %s571_s15, 4 }
  0x1d   : > { %s695_s27 = scalar_lea.vmem %s856_s0, %s409_s10  ;;  %s415_s6 = sshll.u32 %s575_s16, 5 }
  0x1e   : > { %v203_v2 = vld [vmem:[%s695_s27] sm:$0xff]  ;;  %v204_v3 = vld [vmem:[%s695_s27 + $0x8] sm:$0xff]  ;;  %v205_v4 = vld [vmem:[%s695_s27 + $0x10] sm:$0xff]  ;;  %s740_s7 = scalar_lea.vmem [#allocation2], %s704_s4  ;;  %s752_s15 = sadd.s32 %s419_s5, %s415_s6 }
  0x1f   : > { %v226_v5 = vmul.f32 %v690_v0, %v203_v2  ;;  %v227_v6 = vmul.f32 %v690_v0, %v204_v3  ;;  %v228_v7 = vmul.f32 %v690_v0, %v205_v4  ;;  %v206_v8 = vld [vmem:[%s695_s27 + $0x18] sm:$0xff]  ;;  %v207_v9 = vld [vmem:[%s695_s27 + $0x20] sm:$0xff]  ;;  %v208_v10 = vld [vmem:[%s695_s27 + $0x28] sm:$0xff]  ;;  %s416_s16 = sshll.u32 %s752_s15, 7  ;;  %s315_s9 = sshll.u32 %s740_s7, 4  ;;  %s790_s9 = int_to_ptr.vmem [resolvable:$true] %s315_s9 }
  0x20   : > { %v229_v11 = vmul.f32 %v690_v0, %v206_v8  ;;  %v230_v12 = vmul.f32 %v690_v0, %v207_v9  ;;  %v231_v13 = vmul.f32 %v690_v0, %v208_v10  ;;  %v209_v14 = vld [vmem:[%s695_s27 + $0x30] sm:$0xff]  ;;  %v210_v15 = vld [vmem:[%s695_s27 + $0x38] sm:$0xff]  ;;  %v211_v24 = vld [vmem:[%s695_s27 + $0x40] sm:$0xff]  ;;  %s788_s20 = scalar_lea.hbm %s859_s3, %s416_s16  ;;  %s493_s24 = scalar_lea.vmem %s790_s9, 2048 }
  0x21   : > { %v249_v16 = vadd.f32 %v700_v1, %v226_v5  ;;  %v250_v17 = vadd.f32 %v700_v1, %v227_v6  ;;  %v251_v18 = vadd.f32 %v700_v1, %v228_v7  ;;  %v232_v19 = vmul.f32 %v690_v0, %v209_v14  ;;  %v212_v25 = vld [vmem:[%s695_s27 + $0x48] sm:$0xff]  ;;  %v213_v26 = vld [vmem:[%s695_s27 + $0x50] sm:$0xff]  ;;  %v214_v31 = vld [vmem:[%s695_s27 + $0x58] sm:$0xff]  ;;  %p494_p0 = scmp.ne.s32.totalorder %s790_s9, %s493_s24 }
  0x22   : > { %v252_v20 = vadd.f32 %v700_v1, %v229_v11  ;;  %v253_v21 = vadd.f32 %v700_v1, %v230_v12  ;;  %v254_v22 = vadd.f32 %v700_v1, %v231_v13  ;;  %v233_v23 = vmul.f32 %v690_v0, %v210_v15  ;;  %v215_v32 = vld [vmem:[%s695_s27 + $0x60] sm:$0xff]  ;;  %v216_v33 = vld [vmem:[%s695_s27 + $0x68] sm:$0xff]  ;;  %v217_v38 = vld [vmem:[%s695_s27 + $0x70] sm:$0xff] }
  0x23   : > { %v265_v27 = vmax.f32 %v249_v16, 0.0  ;;  %v266_v28 = vmax.f32 %v250_v17, 0.0  ;;  %v267_v29 = vmax.f32 %v251_v18, 0.0  ;;  %v255_v30 = vadd.f32 %v700_v1, %v232_v19  ;;  %v218_v43 = vld [vmem:[%s695_s27 + $0x78] sm:$0xff]  ;;  %p495_p1 = pnand %p494_p0, %p663_p3  ;;  %s589_s27 = smov [#allocation2]  }
  0x24   : > { %v268_v34 = vmax.f32 %v252_v20, 0.0  ;;  %v269_v35 = vmax.f32 %v253_v21, 0.0  ;;  %v270_v36 = vmax.f32 %v254_v22, 0.0  ;;  %v256_v37 = vadd.f32 %v700_v1, %v233_v23  ;;  %s497_s28 = sshll.u32 %s589_s27, 4  ;;  %s498_s28 = int_to_ptr.vmem [resolvable:$false] %s497_s28 }
  0x25   : > { %282 = vst.msk [vmem:[%s740_s7] sm:$0xff] %vm281_vm0, %v265_v27  ;;  %283 = vst.msk [vmem:[%s740_s7 + $0x8] sm:$0xff] %vm281_vm0, %v266_v28  ;;  %v271_v39 = vmax.f32 %v255_v30, 0.0  ;;  %v234_v40 = vmul.f32 %v690_v0, %v211_v24  ;;  %v235_v41 = vmul.f32 %v690_v0, %v212_v25  ;;  %v236_v42 = vmul.f32 %v690_v0, %v213_v26  ;;  %p496_p2 = pneg %p495_p1  ;;  %s499_s29 = scalar_lea.vmem %s498_s28, 4096 }
  0x26   : > { %284 = vst.msk [vmem:[%s740_s7 + $0x10] sm:$0xff] %vm281_vm0, %v267_v29  ;;  %285 = vst.msk [vmem:[%s740_s7 + $0x18] sm:$0xff] %vm281_vm0, %v268_v34  ;;  %v272_v44 = vmax.f32 %v256_v37, 0.0  ;;  %v237_v45 = vmul.f32 %v690_v0, %v214_v31  ;;  %v238_v46 = vmul.f32 %v690_v0, %v215_v32  ;;  %v239_v47 = vmul.f32 %v690_v0, %v216_v33  ;;  %p500_p4 = scmp.lt.s32.totalorder %s790_s9, %s498_s28  ;;  %p501_p5 = scmp.lt.s32.totalorder %s499_s29, %s493_s24 }
  0x27   : > { %286 = vst.msk [vmem:[%s740_s7 + $0x20] sm:$0xff] %vm281_vm0, %v269_v35  ;;  %287 = vst.msk [vmem:[%s740_s7 + $0x28] sm:$0xff] %vm281_vm0, %v270_v36  ;;  %v257_v48 = vadd.f32 %v700_v1, %v234_v40  ;;  %v258_v49 = vadd.f32 %v700_v1, %v235_v41  ;;  %v259_v50 = vadd.f32 %v700_v1, %v236_v42 }
  0x28   : > { %288 = vst.msk [vmem:[%s740_s7 + $0x30] sm:$0xff] %vm281_vm0, %v271_v39  ;;  %v240_v51 = vmul.f32 %v690_v0, %v217_v38  ;;  %289 = vst.msk [vmem:[%s740_s7 + $0x38] sm:$0xff] %vm281_vm0, %v272_v44  ;;  %v260_v52 = vadd.f32 %v700_v1, %v237_v45  ;;  %v261_v53 = vadd.f32 %v700_v1, %v238_v46  ;;  %p502_p6 = por %p501_p5, %p500_p4 }
  0x29   : > { %v262_v54 = vadd.f32 %v700_v1, %v239_v47  ;;  %v241_v55 = vmul.f32 %v690_v0, %v218_v43  ;;  %v273_v56 = vmax.f32 %v257_v48, 0.0  ;;  %v274_v57 = vmax.f32 %v258_v49, 0.0 }
  0x2a   : > { %v275_v58 = vmax.f32 %v259_v50, 0.0  ;;  %v263_v59 = vadd.f32 %v700_v1, %v240_v51  ;;  %v276_v60 = vmax.f32 %v260_v52, 0.0  ;;  %v277_v61 = vmax.f32 %v261_v53, 0.0  ;;  %p503_p7 = pnand %p502_p6, %p496_p2 }
  0x2b   : > { %v278_v62 = vmax.f32 %v262_v54, 0.0  ;;  %v264_v63 = vadd.f32 %v700_v1, %v241_v55  ;;  %290 = vst.msk [vmem:[%s740_s7 + $0x40] sm:$0xff] %vm281_vm0, %v273_v56  ;;  %291 = vst.msk [vmem:[%s740_s7 + $0x48] sm:$0xff] %vm281_vm0, %v274_v57 }
  0x2c   : > { %292 = vst.msk [vmem:[%s740_s7 + $0x50] sm:$0xff] %vm281_vm0, %v275_v58  ;;  %v279_v0 = vmax.f32 %v263_v59, 0.0  ;;  %293 = vst.msk [vmem:[%s740_s7 + $0x58] sm:$0xff] %vm281_vm0, %v276_v60 }
  0x2d   : > { %294 = vst.msk [vmem:[%s740_s7 + $0x60] sm:$0xff] %vm281_vm0, %v277_v61  ;;  %295 = vst.msk [vmem:[%s740_s7 + $0x68] sm:$0xff] %vm281_vm0, %v278_v62  ;;  %v280_v1 = vmax.f32 %v264_v63, 0.0 }
  0x2e   : > { %296 = vst.msk [vmem:[%s740_s7 + $0x70] sm:$0xff] %vm281_vm0, %v279_v0 }
  0x2f   : > { %297 = vst.msk [vmem:[%s740_s7 + $0x78] sm:$0xff] %vm281_vm0, %v280_v1 }
  0x30   : > { %506 = shalt.err (!%p503_p7)
}
  0x31   : > { %s507_s8 = scalar_lea.hbm %s788_s20, 2048  ;;  %s511_s6 = scalar_lea.hbm %s859_s3, 8192 }
  0x32   : > { %p508_p9 = scmp.ne.s32.totalorder %s788_s20, %s507_s8  ;;  %p512_p12 = scmp.lt.u32.totalorder %s788_s20, %s859_s3 }
  0x33   : > { %p513_p13 = scmp.lt.u32.totalorder %s511_s6, %s507_s8  ;;  %p515_p1 = scmp.lt.u32.totalorder %s507_s8, %s788_s20 }
  0x34   : > { %p509_p10 = pnand %p508_p9, %p663_p3 }
  0x35   : > { %p514_p0 = por %p513_p13, %p512_p12 }
  0x36   : > { %p510_p11 = pneg %p509_p10 }
  0x37   : > { %p516_p2 = por %p515_p1, %p514_p0 }
  0x39   : > { %p517_p4 = pnand %p516_p2, %p510_p11 }
  0x3b   : > { %520 = shalt.err (!%p517_p4)
}
  0x3c   : > { %s590_s16 = smov 128   ;;  %s591_s10 = smov 8  }
  0x3d   : > { %420 = dma.vmem_to_hbm [thread:$0]  (%p663_p3), %s790_s9, 2048, %s788_s20, %s804_s21, %s590_s16, %s590_s16, %s591_s10  }
  0x3e PF: > { %p426_p5 = scmp.ge.s32.totalorder %s587_s19, 2  ;;  %s330_s11 = sand.u32 1, %s559_s12  }
  0x3f   : > { %s331_s24 = scalar_lea.sflag [#allocation3], %s330_s11 }
  0x40   : > { %p423_p6 = pnand %p426_p5, %p672_p8 }
  0x42   : > { %554 = dma.done.wait (!%p423_p6), %s331_s24, 2048  }
  0x43   : > { %556 = vsyncadd (!%p423_p6), %s331_s24, 4294965248  ;;  %s16_s19 = sadd.s32 1, %s587_s19   ;;  %s862_s12 = smov %s563_s13 }
  0x44   : > { %p13_p7 = scmp.ge.s32.totalorder %s16_s19, 6   ;;  %s863_s13 = smov %s567_s14 }
  0x45   : > { %s864_s14 = smov %s681_s30  ;;  %s865_s15 = smov %s579_s17 }
  0x46   : > { %s866_s16 = smov %s583_s18  ;;  %s867_s17 = smov %s870_s22 }
  0x47   : > { %s868_s18 = smov %s874_s23  ;;  %15 = sbr.rel (!%p13_p7) target bundleno = 5 (0x5), region = 67 }
  0x4e   :  { %336 = vsyncpa [#allocation3], 1 }
  0x4f   :  { %338 = vsyncpa [#allocation3 + $0x1], 1 }

// kernel: up_conv_forward.2
= control target key start
LH: loop header
LB: loop body
LE: loop exit
PB: predicated region body
PF: predicated region fallthrough
CT: control target
= control target key end

     0   :  { %10 = vsyncpa [#allocation5], 0  ;;  %s5947_s0 = inlined_call_operand.hbm [shape: f32[2,8,8,16], index: 0, kind: input, shape index: {}]   ;;  %s5948_s1 = inlined_call_operand.hbm [shape: f32[3,3,16,32], index: 1, kind: input, shape index: {}]   ;;  %s5949_s2 = inlined_call_operand.vmem [shape: f32[1,32], index: 2, kind: input, shape index: {}]   ;;  %s5950_s3 = inlined_call_operand.vmem [shape: f32[2,16,16,32], index: 3, kind: output, shape index: {0}]   ;;  %s5951_s4 = inlined_call_operand.vmem [shape: f32[2,2,2,32], index: 4, kind: output, shape index: {1}]  }
   0x1   :  { %12 = vsyncpa [#allocation5 + $0x1], 0 }
   0x2   :  { %13 = vsyncpa [#allocation7], 0  ;;  %s4991_s15 = smov 0   ;;  %s4993_s16 = smov 0  }
   0x3   :  { %s4995_s17 = smov 0   ;;  %s4997_s18 = smov 0  }
   0x4   :  { %s4999_s19 = smov 0   ;;  %s5001_s20 = smov 0  }
   0x5   :  { %s5003_s21 = smov 0   ;;  %s5005_s22 = smov 0  }
   0x6 LB: > { %s4037_s23 = sadd.s32 4294967295, %s4957_s22   ;;  %p51_p0 = scmp.ne.s32.totalorder %s4933_s16, %s4929_s15  ;;  %s4957_s22 = sphi %s5005_s22, %s19_s22   ;;  %s4953_s21 = sphi %s5003_s21, %s5973_s21   ;;  %s4949_s20 = sphi %s5001_s20, %s5972_s20   ;;  %s4945_s19 = sphi %s4999_s19, %s5971_s19   ;;  %s4941_s18 = sphi %s4997_s18, %s5970_s18   ;;  %s4937_s17 = sphi %s4995_s17, %s5969_s17   ;;  %s4933_s16 = sphi %s4993_s16, %s5968_s16   ;;  %s4929_s15 = sphi %s4991_s15, %s5967_s15  }
   0x7   : > { %p5031_p1 = scmp.eq.s32.totalorder %s4037_s23, 0  ;;  %p4039_p2 = scmp.ge.s32.totalorder %s4957_s22, 1 }
   0x8   : > { %p160_p3 = scmp.lt.s32.totalorder %s4957_s22, 5  ;;  %s4959_s27 = smov [#allocation6]  }
   0x9   : > { %s5957_s24 = scalar_select %p5031_p1, 1, 0 }
   0xa   : > { %p5039_p4 = por %p5031_p1, %p51_p0  ;;  %p5043_p5 = pnand %p4039_p2, %p160_p3 }
   0xb   : > { %s172_s28 = sshll.u32 %s4959_s27, 4  ;;  %s4829_s6 = scalar_lea.hbm %s5948_s1, 2304  ;;  %s173_s28 = int_to_ptr.vmem [resolvable:$true] %s172_s28 }
   0xc   : > { %s5958_s25 = scalar_select %p5039_p4, 1, 0 }
   0xd   : > { %s5959_s26 = scalar_select %p5043_p5, 1, 0 }
   0xe   : > { %p4748_p6 = pneg %p5043_p5  ;;  %p4830_p8 = scmp.ne.s32.totalorder %s5948_s1, %s4829_s6 }
   0xf   : > { %p4836_p12 = scmp.lt.u32.totalorder %s4829_s6, %s5948_s1 }
  0x10   : > { %p5051_p7 = pnand %p4748_p6, %p5031_p1 }
  0x12   : > { %p4831_p9 = pneg %p5051_p7 }
  0x14   : > { %p4832_p10 = pnand %p4831_p9, %p4830_p8 }
  0x16   : > { %p4833_p11 = pneg %p4832_p10 }
  0x18   : > { %p4838_p13 = pnand %p4836_p12, %p4833_p11 }
  0x1a   : > { %4841 = shalt.err (!%p4838_p13)
}
  0x1b   : > { %s4842_s11 = scalar_lea.vmem %s173_s28, 2304  ;;  %p4850_p6 = scmp.lt.s32.totalorder %s173_s28, %s173_s28 }
  0x1c   : > { %p4843_p0 = scmp.ne.s32.totalorder %s173_s28, %s4842_s11  ;;  %p4851_p1 = scmp.lt.s32.totalorder %s4842_s11, %s4842_s11 }
  0x1e   : > { %p4845_p2 = pnand %p4843_p0, %p4831_p9  ;;  %p4852_p4 = por %p4851_p1, %p4850_p6 }
  0x20   : > { %p4846_p3 = pneg %p4845_p2 }
  0x22   : > { %p4853_p5 = pnand %p4852_p4, %p4846_p3 }
  0x24   : > { %4856 = shalt.err (!%p4853_p5)
}
  0x25   : > { %s5956_s12 = smov 128   ;;  %s4961_s13 = smov 8  }
  0x26   : > { %4751 = dma.hbm_to_vmem [thread:$0]  (!%p5051_p7), %s5948_s1, 2304, %s173_s28, [#allocation7], %s5956_s12, %s5956_s12, %s4961_s13  }
  0x27   : > { %s28_s23 = sadd.s32 1, %s4949_s20  ;;  %s31_s27 = sadd.s32 1, %s4953_s21 }
  0x28   : > { %p29_p1 = scmp.ge.s32.totalorder %s28_s23, 2  ;;  %s38_s30 = sadd.s32 1, %s4937_s17 }
  0x29   : > { %p45_p4 = scmp.ne.s32.totalorder %s4937_s17, %s4933_s16  ;;  %p46_p5 = scmp.eq.s32.totalorder %s4957_s22, 0 }
  0x2a   : > { %s5975_s23 = smov (%p29_p1, %s28_s23), 0  ;;  %s5977_s27 = smov (!%p29_p1, %s31_s27), %s4953_s21 }
  0x2b   : > { %p4757_p8 = scmp.lt.s32.totalorder %s4957_s22, 4  ;;  %p33_p9 = scmp.ge.s32.totalorder %s5977_s27, 2 }
  0x2c   : > { %s189_s29 = sand.u32 1, %s4937_s17   ;;  %p47_p10 = por %p46_p5, %p45_p4 }
  0x2d   : > { %s5979_s27 = smov (%p33_p9, %s5977_s27), 0  ;;  %s4042_s5 = sshll.u32 %s189_s29, 6 }
  0x2e   : > { %s4242_s28 = sshll.u32 %s4953_s21, 10  ;;  %s35_s6 = ssub.s32 %s4953_s21, %s5979_s27 }
  0x2f   : > { %p36_p7 = scmp.eq.s32.totalorder %s35_s6, 0  ;;  %s5093_s9 = scalar_lea.hbm %s5947_s0, %s4242_s28 }
  0x30   : > { %s193_s10 = scalar_lea.vmem [#allocation4], %s4042_s5  ;;  %p5095_p11 = pnand %p4757_p8, %p47_p10 }
  0x31   : > { %s200_s11 = sshll.u32 %s193_s10, 4  ;;  %s5104_s6 = scalar_lea.sflag [#allocation5], %s189_s29  ;;  %s5102_s11 = int_to_ptr.vmem [resolvable:$true] %s200_s11 }
  0x32   : > { %s5100_s15 = scalar_select %p36_p7, %s4937_s17, %s38_s30  }
  0x33   : > { %s4857_s28 = scalar_lea.hbm %s5093_s9, 1024  ;;  %p4859_p13 = pneg %p5095_p11 }
  0x34   : > { %p4858_p12 = scmp.ne.s32.totalorder %s5093_s9, %s4857_s28  ;;  %s4862_s8 = scalar_lea.hbm %s5947_s0, 2048 }
  0x35   : > { %p4863_p3 = scmp.lt.u32.totalorder %s5093_s9, %s5947_s0  ;;  %p4864_p6 = scmp.lt.u32.totalorder %s4862_s8, %s4857_s28 }
  0x36   : > { %p4860_p0 = pnand %p4859_p13, %p4858_p12  ;;  %p4866_p4 = scmp.lt.u32.totalorder %s4857_s28, %s5093_s9 }
  0x37   : > { %p4865_p1 = por %p4864_p6, %p4863_p3 }
  0x38   : > { %p4861_p2 = pneg %p4860_p0 }
  0x39   : > { %p4867_p5 = por %p4866_p4, %p4865_p1 }
  0x3b   : > { %p4868_p8 = pnand %p4867_p5, %p4861_p2 }
  0x3d   : > { %4871 = shalt.err (!%p4868_p8)
}
  0x3e   : > { %s4872_s30 = scalar_lea.vmem %s5102_s11, 1024  ;;  %s4962_s29 = smov [#allocation4]  }
  0x3f   : > { %p4873_p9 = scmp.ne.s32.totalorder %s5102_s11, %s4872_s30  ;;  %s4877_s5 = sshll.u32 %s4962_s29, 4  ;;  %s4878_s5 = int_to_ptr.vmem [resolvable:$false] %s4877_s5 }
  0x40   : > { %s4879_s12 = scalar_lea.vmem %s4878_s5, 2048  ;;  %p4880_p12 = scmp.lt.s32.totalorder %s5102_s11, %s4878_s5 }
  0x41   : > { %p4875_p10 = pnand %p4873_p9, %p4859_p13  ;;  %p4881_p0 = scmp.lt.s32.totalorder %s4879_s12, %s4872_s30 }
  0x43   : > { %p4876_p7 = pneg %p4875_p10  ;;  %p4882_p3 = por %p4881_p0, %p4880_p12 }
  0x45   : > { %p4883_p6 = pnand %p4882_p3, %p4876_p7 }
  0x47   : > { %4886 = shalt.err (!%p4883_p6)
}
  0x48   : > { %s5962_s28 = smov 128   ;;  %p5963_p13 = scmp.ne.s32.totalorder %s5959_s26, 0 }
  0x49   : > { %4755 = dma.hbm_to_vmem [thread:$0]  (!%p5095_p11), %s5093_s9, 1024, %s5102_s11, %s5104_s6, %s5962_s28, %s5962_s28, %s4961_s13  }
  0x4a   : > { %212 = sbr.rel (%p5963_p13) target bundleno = 592 (0x250), region = 32  ;;  %s214_s7 = sand.u32 (!%p5963_p13), 1, %s4933_s16  }
  0x4b   : > { %s5138_s8 = sshll.u32 (!%p5963_p13), %s214_s7, 6  ;;  %s215_s10 = scalar_lea.sflag (!%p5963_p13), [#allocation5], %s214_s7 }
  0x4c   : > { %s218_s30 = scalar_lea.vmem (!%p5963_p13), [#allocation4], %s5138_s8  ;;  %p5964_p2 = scmp.ne.s32.totalorder (!%p5963_p13), %s5958_s25, 0 }
  0x51   : > { %4920 = dma.done.wait (%p5964_p2), %s215_s10, 1024  }
  0x52   : > { %4922 = vsyncadd (%p5964_p2), %s215_s10, 4294966272  ;;  %p5965_p1 = scmp.ne.s32.totalorder %s5957_s24, 0 }
  0x54   : > { %4924 = dma.done.wait (%p5965_p1), [#allocation7], 2304  }
  0x55   : > { %4926 = vsyncadd (%p5965_p1), [#allocation7], 4294964992  ;;  %vm279_vm0 = vcmask 130048   ;;  %s4054_s26 = sshll.u32 %s4941_s18, 2  ;;  %s4048_s13 = sshll.u32 %s4941_s18, 3  ;;  %v320_v0 = vlaneseq  ;;  %v4963_v1 = vmov 0.0  }
  0x56   : > { %282 = vst.msk [vmem:[#allocation2 + $0x10] sm:$0xff] %vm279_vm0, %v4963_v1  ;;  %280 = vst.msk [vmem:[#allocation2] sm:$0xff] %vm279_vm0, %v4963_v1  ;;  %p261_p11 = scmp.lt.s32.totalorder %s4945_s19, 1  ;;  %p263_p4 = scmp.lt.s32.totalorder %s4048_s13, 15  ;;  %v4964_v2 = vmov 1966171168  }
  0x57   : > { %281 = vst.msk [vmem:[#allocation2 + $0x8] sm:$0xff] %vm279_vm0, %v4963_v1  ;;  %283 = vst.msk [vmem:[#allocation2 + $0x18] sm:$0xff] %vm279_vm0, %v4963_v1  ;;  %s4243_s24 = sshll.u32 %s4941_s18, 5  ;;  %v318_v3 = vunpack.c.l.s4 %v4964_v2  ;;  %v321_v4 = vshrl.u32 %v320_v0, 7  ;;  %v4965_v5 = vmov 1983009808  }
  0x58   : > { %284 = vst.msk [vmem:[#allocation2 + $0x20] sm:$0xff] %vm279_vm0, %v4963_v1  ;;  %285 = vst.msk [vmem:[#allocation2 + $0x28] sm:$0xff] %vm279_vm0, %v4963_v1  ;;  %s5981_s19 = smov (!%p261_p11, %s4945_s19), 1  ;;  %v643_v6 = vunpack.c.l.s4 %v4965_v5  ;;  %s5983_s13 = smov (!%p263_p4, %s4048_s13), 15 }
  0x59   : > { %286 = vst.msk [vmem:[#allocation2 + $0x30] sm:$0xff] %vm279_vm0, %v4963_v1  ;;  %287 = vst.msk [vmem:[#allocation2 + $0x38] sm:$0xff] %vm279_vm0, %v4963_v1  ;;  %v319_v7 = vunpack.c.0.s8 %v318_v3  ;;  %s4050_s25 = sshll.u32 %s5981_s19, 5  ;;  %p273_p5 = scmp.lt.s32.totalorder %s4941_s18, 1  ;;  %v5215_v11 = vsub.s32 0, %v321_v4 }
  0x5a   : > { %288 = vst.msk [vmem:[#allocation2 + $0x40] sm:$0xff] %vm279_vm0, %v4963_v1  ;;  %289 = vst.msk [vmem:[#allocation2 + $0x48] sm:$0xff] %vm279_vm0, %v4963_v1  ;;  %v644_v8 = vunpack.c.0.s8 %v643_v6  ;;  %s4049_s9 = sshll.u32 %s5983_s13, 1  ;;  %s5210_s11 = scalar_lea.vmem %s218_s30, %s4243_s24 [#allocation4] }
  0x5b   : > { %290 = vst.msk [vmem:[#allocation2 + $0x50] sm:$0xff] %vm279_vm0, %v4963_v1  ;;  %291 = vst.msk [vmem:[#allocation2 + $0x58] sm:$0xff] %vm279_vm0, %v4963_v1  ;;  %v5212_v9 = vsub.s32 %v319_v7, %v321_v4  ;;  %s267_s14 = sadd.s32 %s4050_s25, %s4049_s9  ;;  %v308_v10 = vld [vmem:[%s5210_s11] sm:$0xff]  ;;  %v309_v13 = vld [vmem:[%s5210_s11 + $0x8] sm:$0xff]  ;;  %s4052_s28 = sshll.u32 %s5981_s19, 1 }
  0x5c   : > { %292 = vst.msk [vmem:[#allocation2 + $0x60] sm:$0xff] %vm279_vm0, %v4963_v1  ;;  %293 = vst.msk [vmem:[#allocation2 + $0x68] sm:$0xff] %vm279_vm0, %v4963_v1  ;;  %v5217_v12 = vsub.s32 %v644_v8, %v321_v4  ;;  %v5221_v14 = vld [vmem:[%s5210_s11 + $0x10] sm:$0xff]  ;;  %s4051_s6 = sshll.u32 %s267_s14, 3  ;;  %v316_v16 = vcombine.high %v308_v10, %v308_v10  ;;  %v365_v18 = vcombine.high %v309_v13, %v309_v13  ;;  %v5226_v19 = vld [vmem:[%s5210_s11 + $0x18] sm:$0xff]  ;;  %p4056_p8 = scmp.le.s32.totalorder %s4941_s18, 0 }
  0x5d   : > { %294 = vst.msk [vmem:[#allocation2 + $0x70] sm:$0xff] %vm279_vm0, %v4963_v1  ;;  %295 = vst.msk [vmem:[#allocation2 + $0x78] sm:$0xff] %vm279_vm0, %v4963_v1  ;;  %v323_v15 = vrot.slane %v308_v10, %v5212_v9  ;;  %v372_v17 = vrot.slane %v309_v13, %v5212_v9  ;;  %s5231_s12 = scalar_lea.vmem %s5950_s3, %s4051_s6  ;;  %v421_v20 = vrot.slane %v5221_v14, %v5212_v9  ;;  %s4057_s9 = sadd.s32 (!%p4056_p8), 4294967295, %s4054_s26 }
  0x5e   : > { %296 = vst.msk [vmem:[#allocation2 + $0x80] sm:$0xff] %vm279_vm0, %v4963_v1  ;;  %297 = vst.msk [vmem:[#allocation2 + $0x88] sm:$0xff] %vm279_vm0, %v4963_v1  ;;  %v414_v21 = vcombine.high %v5221_v14, %v5221_v14  ;;  %v5240_v22 = vrot.slane %v5226_v19, %v5212_v9  ;;  %v463_v23 = vcombine.high %v5226_v19, %v5226_v19  ;;  %s274_s7 = scalar_select %p273_p5, %s4941_s18, 1 }
  0x5f   : > { %298 = vst.msk [vmem:[#allocation2 + $0x90] sm:$0xff] %vm279_vm0, %v4963_v1  ;;  %299 = vst.msk [vmem:[#allocation2 + $0x98] sm:$0xff] %vm279_vm0, %v4963_v1  ;;  %v331_v24 = vcombine.high %v323_v15, %v323_v15  ;;  %v339_v25 = vrot.slane %v323_v15, %v5212_v9  ;;  %v330_v26 = vrot.slane %v316_v16, %v5212_v9  ;;  %s4058_s14 = sshll.u32 (!%p4056_p8), %s4057_s9, 3 }
  0x60   : > { %300 = vst.msk [vmem:[#allocation2 + $0xa0] sm:$0xff] %vm279_vm0, %v4963_v1  ;;  %301 = vst.msk [vmem:[#allocation2 + $0xa8] sm:$0xff] %vm279_vm0, %v4963_v1  ;;  %v380_v27 = vcombine.high %v372_v17, %v372_v17  ;;  %v388_v28 = vrot.slane %v372_v17, %v5212_v9  ;;  %v379_v29 = vrot.slane %v365_v18, %v5212_v9  ;;  %s276_s19 = sadd.s32 %s4052_s28, %s274_s7  ;;  %s806_s6 = scalar_lea.vmem (!%p4056_p8), %s218_s30, %s4058_s14 [#allocation4] }
  0x61   : > { %302 = vst.msk [vmem:[#allocation2 + $0xb0] sm:$0xff] %vm279_vm0, %v4963_v1  ;;  %v429_v30 = vcombine.high %v421_v20, %v421_v20  ;;  %v5252_v31 = vrot.slane %v421_v20, %v5212_v9  ;;  %v353_v32 = vrot.slane %v331_v24, %v5212_v9  ;;  %v361_v33 = vcombine.high %v339_v25, %v339_v25  ;;  %s4053_s10 = sshll.u32 %s276_s19, 1 }
  0x62   : > { %v515_v34 = vrot.slane %v339_v25, %v5215_v11  ;;  %v332_v35 = vcombine.high %v330_v26, %v330_v26  ;;  %v346_v36 = vrot.slane %v330_v26, %v5212_v9  ;;  %v402_v37 = vrot.slane %v380_v27, %v5212_v9  ;;  %s5262_s25 = scalar_lea.vmem %s5951_s4, %s4053_s10 }
  0x63   : > { %v410_v38 = vcombine.high %v388_v28, %v388_v28  ;;  %v547_v39 = vrot.slane %v388_v28, %v5215_v11  ;;  %v363_v40 = vcombine.high %v353_v32, %v353_v32  ;;  %v519_v41 = vrot.slane %v353_v32, %v5215_v11 }
  0x64   : > { %v523_v42 = vrot.slane %v361_v33, %v5215_v11  ;;  %v360_v43 = vrot.slane %v332_v35, %v5212_v9  ;;  %v362_v44 = vcombine.high %v346_v36, %v346_v36  ;;  %v531_v45 = vrot.slane %v346_v36, %v5215_v11 }
  0x65   : > { %v412_v46 = vcombine.high %v402_v37, %v402_v37  ;;  %v551_v47 = vrot.slane %v402_v37, %v5215_v11  ;;  %v527_v48 = vrot.slane %v363_v40, %v5215_v11  ;;  %v640_v49 = vcombine.low %v515_v34, %v519_v41 }
  0x66   : > { %v364_v50 = vcombine.high %v360_v43, %v360_v43  ;;  %v535_v51 = vrot.slane %v360_v43, %v5215_v11  ;;  %v539_v52 = vrot.slane %v362_v44, %v5215_v11  ;;  %v555_v53 = vrot.slane %v410_v38, %v5215_v11 }
  0x67   : > { %v559_v54 = vrot.slane %v412_v46, %v5215_v11  ;;  %v680_v55 = vcombine.low %v547_v39, %v551_v47  ;;  %v641_v56 = vcombine.low %v523_v42, %v527_v48  ;;  %v648_v57 = vrot.slane %v640_v49, %v5217_v12 }
  0x68   : > { %v543_v58 = vrot.slane %v364_v50, %v5215_v11  ;;  %v657_v59 = vcombine.low %v531_v45, %v535_v51  ;;  %v381_v62 = vcombine.high %v379_v29, %v379_v29  ;;  %v395_v63 = vrot.slane %v379_v29, %v5212_v9 }
  0x69   : > { %v681_v60 = vcombine.low %v555_v53, %v559_v54  ;;  %v688_v61 = vrot.slane %v680_v55, %v5217_v12  ;;  %v655_v0 = vrot.slane %v641_v56, %v5217_v12  ;;  %v451_v4 = vrot.slane %v429_v30, %v5212_v9 }
  0x6a   : > { %v658_v2 = vcombine.low %v539_v52, %v543_v58  ;;  %v665_v3 = vrot.slane %v657_v59, %v5217_v12  ;;  %v409_v6 = vrot.slane %v381_v62, %v5212_v9  ;;  %v411_v7 = vcombine.high %v395_v63, %v395_v63 }
  0x6b   : > { %v695_v5 = vrot.slane %v681_v60, %v5217_v12  ;;  %v563_v8 = vrot.slane %v395_v63, %v5215_v11  ;;  %v656_v10 = vcombine.low %v648_v57, %v655_v0  ;;  %v459_v15 = vcombine.high %v5252_v31, %v5252_v31 }
  0x6c   : > { %v672_v13 = vrot.slane %v658_v2, %v5217_v12  ;;  %v461_v16 = vcombine.high %v451_v4, %v451_v4  ;;  %v413_v18 = vcombine.high %v409_v6, %v409_v6  ;;  %v567_v20 = vrot.slane %v409_v6, %v5215_v11 }
  0x6d   : > { %v696_v17 = vcombine.low %v688_v61, %v695_v5  ;;  %v571_v24 = vrot.slane %v411_v7, %v5215_v11  ;;  %676 = vst.msk [vmem:[#allocation2 + $0x13] sm:$0xff] %vm279_vm0, %v656_v10  ;;  %678 = vst.msk [vmem:[#allocation2 + $0x25] sm:$0xff] %vm279_vm0, %v656_v10  ;;  %v579_v26 = vrot.slane %v5252_v31, %v5215_v11 }
  0x6e   : > { %v673_v25 = vcombine.low %v665_v3, %v672_v13  ;;  %v583_v27 = vrot.slane %v451_v4, %v5215_v11  ;;  %v587_v28 = vrot.slane %v459_v15, %v5215_v11  ;;  %v575_v29 = vrot.slane %v413_v18, %v5215_v11 }
  0x6f   : > { %716 = vst.msk [vmem:[#allocation2 + $0x37] sm:$0xff] %vm279_vm0, %v696_v17  ;;  %718 = vst.msk [vmem:[#allocation2 + $0x49] sm:$0xff] %vm279_vm0, %v696_v17  ;;  %v697_v30 = vcombine.low %v563_v8, %v567_v20  ;;  %v591_v32 = vrot.slane %v461_v16, %v5215_v11  ;;  %v428_v33 = vrot.slane %v414_v21, %v5212_v9 }
  0x70   : > { %677 = vst.msk [vmem:[#allocation2 + $0x1b] sm:$0xff] %vm279_vm0, %v673_v25  ;;  %679 = vst.msk [vmem:[#allocation2 + $0x2d] sm:$0xff] %vm279_vm0, %v673_v25  ;;  %v720_v31 = vcombine.low %v579_v26, %v583_v27  ;;  %v478_v34 = vcombine.high %v5240_v22, %v5240_v22  ;;  %v486_v35 = vrot.slane %v5240_v22, %v5212_v9  ;;  %v807_v25 = vld [vmem:[%s806_s6] sm:$0xff] (!%p4056_p8) }
  0x71   : > { %v477_v36 = vrot.slane %v463_v23, %v5212_v9  ;;  %v698_v37 = vcombine.low %v571_v24, %v575_v29  ;;  %v705_v14 = vrot.slane %v697_v30, %v5217_v12  ;;  %v721_v21 = vcombine.low %v587_v28, %v591_v32 }
  0x72   : > { %v430_v38 = vcombine.high %v428_v33, %v428_v33  ;;  %v728_v39 = vrot.slane %v720_v31, %v5217_v12  ;;  %v444_v40 = vrot.slane %v428_v33, %v5212_v9  ;;  %v500_v41 = vrot.slane %v478_v34, %v5212_v9 }
  0x73   : > { %v508_v42 = vcombine.high %v486_v35, %v486_v35  ;;  %v712_v43 = vrot.slane %v698_v37, %v5217_v12  ;;  %v735_v22 = vrot.slane %v721_v21, %v5217_v12  ;;  %v611_v19 = vrot.slane %v486_v35, %v5215_v11 }
  0x74   : > { %v458_v44 = vrot.slane %v430_v38, %v5212_v9  ;;  %v460_v23 = vcombine.high %v444_v40, %v444_v40  ;;  %v595_v45 = vrot.slane %v444_v40, %v5215_v11  ;;  %v510_v46 = vcombine.high %v500_v41, %v500_v41 }
  0x75   : > { %v615_v47 = vrot.slane %v500_v41, %v5215_v11  ;;  %v713_v48 = vcombine.low %v705_v14, %v712_v43  ;;  %v736_v49 = vcombine.low %v728_v39, %v735_v22  ;;  %v619_v53 = vrot.slane %v508_v42, %v5215_v11 }
  0x76   : > { %v462_v50 = vcombine.high %v458_v44, %v458_v44  ;;  %v599_v51 = vrot.slane %v458_v44, %v5215_v11  ;;  %v603_v52 = vrot.slane %v460_v23, %v5215_v11  ;;  %v623_v54 = vrot.slane %v510_v46, %v5215_v11 }
  0x77   : > { %v760_v55 = vcombine.low %v611_v19, %v615_v47  ;;  %717 = vst.msk [vmem:[#allocation2 + $0x3f] sm:$0xff] %vm279_vm0, %v713_v48  ;;  %719 = vst.msk [vmem:[#allocation2 + $0x51] sm:$0xff] %vm279_vm0, %v713_v48  ;;  %v479_v58 = vcombine.high %v477_v36, %v477_v36  ;;  %v493_v59 = vrot.slane %v477_v36, %v5212_v9 }
  0x78   : > { %756 = vst.msk [vmem:[#allocation2 + $0x5b] sm:$0xff] %vm279_vm0, %v736_v49  ;;  %758 = vst.msk [vmem:[#allocation2 + $0x6d] sm:$0xff] %vm279_vm0, %v736_v49  ;;  %v607_v56 = vrot.slane %v462_v50, %v5215_v11  ;;  %v737_v57 = vcombine.low %v595_v45, %v599_v51  ;;  %v761_v60 = vcombine.low %v619_v53, %v623_v54 }
  0x79   : > { %v768_v61 = vrot.slane %v760_v55, %v5217_v12  ;;  %v507_v0 = vrot.slane %v479_v58, %v5212_v9  ;;  %v509_v2 = vcombine.high %v493_v59, %v493_v59  ;;  %v627_v4 = vrot.slane %v493_v59, %v5215_v11 }
  0x7a   : > { %v738_v62 = vcombine.low %v603_v52, %v607_v56  ;;  %v745_v63 = vrot.slane %v737_v57, %v5217_v12  ;;  %v775_v3 = vrot.slane %v761_v60, %v5217_v12  ;;  %v816_v26 = vrot.slane (!%p4056_p8), %v807_v25, %v5212_v9 }
  0x7b   : > { %v511_v6 = vcombine.high %v507_v0, %v507_v0  ;;  %v631_v7 = vrot.slane %v507_v0, %v5215_v11  ;;  %v635_v8 = vrot.slane %v509_v2, %v5215_v11  ;;  %v809_v27 = vcombine.high (!%p4056_p8), %v807_v25, %v807_v25 }
  0x7c   : > { %v752_v5 = vrot.slane %v738_v62, %v5217_v12  ;;  %v776_v10 = vcombine.low %v768_v61, %v775_v3  ;;  %v824_v28 = vcombine.high (!%p4056_p8), %v816_v26, %v816_v26  ;;  %v832_v29 = vrot.slane (!%p4056_p8), %v816_v26, %v5212_v9 }
  0x7d   : > { %v639_v15 = vrot.slane %v511_v6, %v5215_v11  ;;  %v777_v16 = vcombine.low %v627_v4, %v631_v7  ;;  %v823_v30 = vrot.slane (!%p4056_p8), %v809_v27, %v5212_v9 }
  0x7e   : > { %v753_v13 = vcombine.low %v745_v63, %v752_v5  ;;  %796 = vst.msk [vmem:[#allocation2 + $0x7f] sm:$0xff] %vm279_vm0, %v776_v10  ;;  %798 = vst.msk [vmem:[#allocation2 + $0x91] sm:$0xff] %vm279_vm0, %v776_v10  ;;  %v846_v32 = vrot.slane (!%p4056_p8), %v824_v28, %v5212_v9  ;;  %v854_v33 = vcombine.high (!%p4056_p8), %v832_v29, %v832_v29 }
  0x7f   : > { %v778_v17 = vcombine.low %v635_v8, %v639_v15  ;;  %v785_v18 = vrot.slane %v777_v16, %v5217_v12  ;;  %803 = sbr.rel (%p4056_p8) target bundleno = 142 (0x8e), region = 44  ;;  %v861_v31 = vrot.slane (!%p4056_p8), %v832_v29, %v5215_v11  ;;  %v825_v34 = vcombine.high (!%p4056_p8), %v823_v30, %v823_v30 }
  0x80   : > { %757 = vst.msk [vmem:[#allocation2 + $0x63] sm:$0xff] %vm279_vm0, %v753_v13  ;;  %759 = vst.msk [vmem:[#allocation2 + $0x75] sm:$0xff] %vm279_vm0, %v753_v13  ;;  %v839_v35 = vrot.slane (!%p4056_p8), %v823_v30, %v5212_v9  ;;  %v856_v36 = vcombine.high (!%p4056_p8), %v846_v32, %v846_v32  ;;  %v865_v37 = vrot.slane (!%p4056_p8), %v846_v32, %v5215_v11 }
  0x81   : > { %v792_v20 = vrot.slane %v778_v17, %v5217_v12  ;;  %v869_v14 = vrot.slane (!%p4056_p8), %v854_v33, %v5215_v11  ;;  %v853_v21 = vrot.slane (!%p4056_p8), %v825_v34, %v5212_v9 }
  0x82   : > { %v855_v38 = vcombine.high (!%p4056_p8), %v839_v35, %v839_v35  ;;  %v877_v39 = vrot.slane (!%p4056_p8), %v839_v35, %v5215_v11  ;;  %v873_v40 = vrot.slane (!%p4056_p8), %v856_v36, %v5215_v11  ;;  %v890_v41 = vcombine.low (!%p4056_p8), %v861_v31, %v865_v37 }
  0x83   : > { %v793_v24 = vcombine.low %v785_v18, %v792_v20  ;;  %v857_v42 = vcombine.high (!%p4056_p8), %v853_v21, %v853_v21  ;;  %v881_v43 = vrot.slane (!%p4056_p8), %v853_v21, %v5215_v11 }
  0x84   : > { %v885_v22 = vrot.slane (!%p4056_p8), %v855_v38, %v5215_v11  ;;  %v891_v44 = vcombine.low (!%p4056_p8), %v869_v14, %v873_v40  ;;  %v898_v19 = vrot.slane (!%p4056_p8), %v890_v41, %v5217_v12 }
  0x85   : > { %797 = vst.msk [vmem:[#allocation2 + $0x87] sm:$0xff] %vm279_vm0, %v793_v24  ;;  %799 = vst.msk [vmem:[#allocation2 + $0x99] sm:$0xff] %vm279_vm0, %v793_v24  ;;  %v889_v23 = vrot.slane (!%p4056_p8), %v857_v42, %v5215_v11  ;;  %v907_v45 = vcombine.low (!%p4056_p8), %v877_v39, %v881_v43 }
  0x86   : > { %v905_v46 = vrot.slane %v891_v44, %v5217_v12 }
  0x87   : > { %v908_v47 = vcombine.low %v885_v22, %v889_v23  ;;  %v915_v48 = vrot.slane %v907_v45, %v5217_v12 }
  0x88   : > { %v906_v49 = vcombine.low %v898_v19, %v905_v46 }
  0x89   : > { %v922_v50 = vrot.slane %v908_v47, %v5217_v12 }
  0x8a   : > { %926 = vst.msk [vmem:[#allocation2 + $0x1] sm:$0xff] %vm279_vm0, %v906_v49 }
  0x8b   : > { %v923_v51 = vcombine.low %v915_v48, %v922_v50 }
  0x8d   : > { %927 = vst.msk [vmem:[#allocation2 + $0x9] sm:$0xff] %vm279_vm0, %v923_v51 }
  0x8e PF: > { %p4059_p9 = scmp.ge.s32.totalorder %s4941_s18, 1 }
  0x8f   : > { %v4062_v52 = vld [vmem:[%s5210_s11 + $0x20] sm:$0xff] (!%p4059_p9) }
  0x90   : > { %931 = sbr.rel (%p4059_p9) target bundleno = 163 (0xa3), region = 48  ;;  %v944_v53 = vrot.slane (!%p4059_p9), %v4062_v52, %v5212_v9  ;;  %v937_v54 = vcombine.high (!%p4059_p9), %v4062_v52, %v4062_v52 }
  0x92   : > { %v952_v55 = vcombine.high (!%p4059_p9), %v944_v53, %v944_v53  ;;  %v960_v56 = vrot.slane (!%p4059_p9), %v944_v53, %v5212_v9  ;;  %v951_v57 = vrot.slane (!%p4059_p9), %v937_v54, %v5212_v9 }
  0x94   : > { %v974_v58 = vrot.slane (!%p4059_p9), %v952_v55, %v5212_v9  ;;  %v982_v59 = vcombine.high (!%p4059_p9), %v960_v56, %v960_v56  ;;  %v989_v60 = vrot.slane (!%p4059_p9), %v960_v56, %v5215_v11  ;;  %v953_v61 = vcombine.high (!%p4059_p9), %v951_v57, %v951_v57 }
  0x95   : > { %v967_v62 = vrot.slane (!%p4059_p9), %v951_v57, %v5212_v9 }
  0x96   : > { %v984_v63 = vcombine.high (!%p4059_p9), %v974_v58, %v974_v58  ;;  %v993_v0 = vrot.slane (!%p4059_p9), %v974_v58, %v5215_v11  ;;  %v997_v2 = vrot.slane (!%p4059_p9), %v982_v59, %v5215_v11  ;;  %v981_v3 = vrot.slane (!%p4059_p9), %v953_v61, %v5212_v9 }
  0x97   : > { %v983_v4 = vcombine.high %v967_v62, %v967_v62  ;;  %v1005_v5 = vrot.slane %v967_v62, %v5215_v11 }
  0x98   : > { %v1001_v6 = vrot.slane %v984_v63, %v5215_v11  ;;  %v1018_v7 = vcombine.low %v989_v60, %v993_v0  ;;  %v985_v8 = vcombine.high %v981_v3, %v981_v3  ;;  %v1009_v10 = vrot.slane %v981_v3, %v5215_v11 }
  0x99   : > { %v1013_v13 = vrot.slane %v983_v4, %v5215_v11 }
  0x9a   : > { %v1019_v15 = vcombine.low %v997_v2, %v1001_v6  ;;  %v1026_v16 = vrot.slane %v1018_v7, %v5217_v12  ;;  %v1017_v17 = vrot.slane %v985_v8, %v5215_v11  ;;  %v1035_v18 = vcombine.low %v1005_v5, %v1009_v10 }
  0x9c   : > { %v1033_v20 = vrot.slane %v1019_v15, %v5217_v12  ;;  %v1036_v9 = vcombine.low %v1013_v13, %v1017_v17  ;;  %v1043_v24 = vrot.slane %v1035_v18, %v5217_v12 }
  0x9e   : > { %v1034_v25 = vcombine.low %v1026_v16, %v1033_v20  ;;  %v1050_v26 = vrot.slane %v1036_v9, %v5217_v12 }
  0xa0   : > { %1054 = vst.msk [vmem:[#allocation2 + $0xa3] sm:$0xff] %vm279_vm0, %v1034_v25  ;;  %v1051_v27 = vcombine.low %v1043_v24, %v1050_v26 }
  0xa2   : > { %1055 = vst.msk [vmem:[#allocation2 + $0xab] sm:$0xff] %vm279_vm0, %v1051_v27 }
  0xa3 PF: > { %v1111_v28 = vld [vmem:[#allocation6] sm:$0xff]  ;;  %v1112_v29 = vld [vmem:[#allocation6 + $0x8] sm:$0xff]  ;;  %v1395_v11 = vld [vmem:[#allocation6 + $0x10] sm:$0xff]  ;;  %vm1056_vm1 = vcmask 261120   ;;  %vm3868_vm2 = vcmask 253952  }
  0xa4   : > { %v1103_v30 = vld [vmem:[#allocation2 + $0x50] sm:$0xff]  ;;  %v4704_v32 = vpack.c.bf16 %v1112_v29, %v1111_v28  ;;  %v1396_v33 = vld [vmem:[#allocation6 + $0x18] sm:$0xff]  ;;  %v1093_v34 = vld [vmem:[#allocation2] sm:$0xff]  ;;  %1068 = vst.msk [vmem:[#allocation3 + $0x58] sm:$0xff] %vm1056_vm1, %v4963_v1 }
  0xa5   : > { %4444 = vmatprep.mubr.msk.f32.mxu1 %vm279_vm0, %v1103_v30  ;;  %v4708_v31 = vpack.c.bf16 %v1396_v33, %v1395_v11  ;;  %v1679_v35 = vld [vmem:[#allocation6 + $0x20] sm:$0xff]  ;;  %v1680_v12 = vld [vmem:[#allocation6 + $0x28] sm:$0xff]  ;;  %v1094_v37 = vld [vmem:[#allocation2 + $0x8] sm:$0xff]  ;;  %4429 = vmatprep.mubr.msk.f32.mxu0 %vm279_vm0, %v1093_v34  ;;  %1057 = vst.msk [vmem:[#allocation3] sm:$0xff] %vm1056_vm1, %v4963_v1 }
  0xa6   : > { %4740 = vmatprep.subr.bf16.mxu1 %v4704_v32  ;;  %4705 = vmatprep.subr.bf16.mxu0 %v4704_v32  ;;  %v1104_v36 = vld [vmem:[#allocation2 + $0x58] sm:$0xff]  ;;  %v4712_v14 = vpack.c.bf16 %v1680_v12, %v1679_v35  ;;  %v1105_v21 = vld [vmem:[#allocation2 + $0x60] sm:$0xff]  ;;  %v1095_v38 = vld [vmem:[#allocation2 + $0x10] sm:$0xff]  ;;  %1058 = vst.msk [vmem:[#allocation3 + $0x8] sm:$0xff] %vm1056_vm1, %v4963_v1 }
  0xa7   : > { %4741 = vmatpush3.bf16.msra.mxu1 %v4704_v32  ;;  %4707 = vmatpush3.bf16.msra.mxu0 %v4704_v32  ;;  %v1963_v39 = vld [vmem:[#allocation6 + $0x30] sm:$0xff]  ;;  %v1964_v40 = vld [vmem:[#allocation6 + $0x38] sm:$0xff]  ;;  %v1096_v42 = vld [vmem:[#allocation2 + $0x18] sm:$0xff]  ;;  %1059 = vst.msk [vmem:[#allocation3 + $0x10] sm:$0xff] %vm1056_vm1, %v4963_v1 }
  0xa8   : > { %4709 = vmatprep.subr.bf16.mxu1 %v4708_v31  ;;  %4713 = vmatprep.subr.bf16.mxu0 %v4712_v14  ;;  %v1106_v41 = vld [vmem:[#allocation2 + $0x68] sm:$0xff]  ;;  %v4716_v43 = vpack.c.bf16 %v1964_v40, %v1963_v39  ;;  %v1107_v22 = vld [vmem:[#allocation2 + $0x70] sm:$0xff]  ;;  %v1097_v44 = vld [vmem:[#allocation2 + $0x20] sm:$0xff]  ;;  %1060 = vst.msk [vmem:[#allocation3 + $0x18] sm:$0xff] %vm1056_vm1, %v4963_v1 }
  0xa9   : > { %v2247_v19 = vld [vmem:[#allocation6 + $0x40] sm:$0xff]  ;;  %v2248_v23 = vld [vmem:[#allocation6 + $0x48] sm:$0xff]  ;;  %v1098_v46 = vld [vmem:[#allocation2 + $0x28] sm:$0xff]  ;;  %1061 = vst.msk [vmem:[#allocation3 + $0x20] sm:$0xff] %vm1056_vm1, %v4963_v1 }
  0xaa   : > { %4445 = vmatmul.mubr.msk.f32.vlgmr.msra.gmra.mrb[0].mxu1 %vm279_vm0, %v1104_v36  ;;  %4430 = vmatmul.mubr.msk.f32.vlgmr.msra.gmra.mrb[0].mxu0 %vm279_vm0, %v1094_v37  ;;  %v1108_v45 = vld [vmem:[#allocation2 + $0x78] sm:$0xff]  ;;  %v4720_v47 = vpack.c.bf16 %v2248_v23, %v2247_v19  ;;  %v1109_v48 = vld [vmem:[#allocation2 + $0x80] sm:$0xff]  ;;  %v1099_v49 = vld [vmem:[#allocation2 + $0x30] sm:$0xff]  ;;  %1062 = vst.msk [vmem:[#allocation3 + $0x28] sm:$0xff] %vm1056_vm1, %v4963_v1 }
  0xab   : > { %4711 = vmatpush3.bf16.msra.mxu1 %v4708_v31  ;;  %4447 = vmatprep.mubr.msk.f32.mxu1 %vm279_vm0, %v1105_v21  ;;  %v1110_v50 = vld [vmem:[#allocation2 + $0x88] sm:$0xff]  ;;  %v1100_v51 = vld [vmem:[#allocation2 + $0x38] sm:$0xff]  ;;  %v1101_v53 = vld [vmem:[#allocation2 + $0x40] sm:$0xff]  ;;  %1063 = vst.msk [vmem:[#allocation3 + $0x30] sm:$0xff] %vm1056_vm1, %v4963_v1 }
  0xac   : > { %4715 = vmatpush3.bf16.msra.mxu0 %v4712_v14  ;;  %4432 = vmatprep.mubr.msk.f32.mxu0 %vm279_vm0, %v1095_v38  ;;  %v1376_v52 = vld [vmem:[#allocation2 + $0x1] sm:$0xff]  ;;  %v1377_v54 = vld [vmem:[#allocation2 + $0x9] sm:$0xff]  ;;  %v1378_v58 = vld [vmem:[#allocation2 + $0x11] sm:$0xff]  ;;  %1064 = vst.msk [vmem:[#allocation3 + $0x38] sm:$0xff] %vm1056_vm1, %v4963_v1 }
  0xad   : > { %4717 = vmatprep.subr.bf16.mxu1 %v4716_v43  ;;  %4721 = vmatprep.subr.bf16.mxu0 %v4720_v47  ;;  %v1102_v55 = vld [vmem:[#allocation2 + $0x48] sm:$0xff]  ;;  %v2531_v56 = vld [vmem:[#allocation6 + $0x50] sm:$0xff]  ;;  %v2815_v61 = vld [vmem:[#allocation6 + $0x60] sm:$0xff]  ;;  %1065 = vst.msk [vmem:[#allocation3 + $0x40] sm:$0xff] %vm1056_vm1, %v4963_v1 }
  0xae   : > { %4448 = vmatmul.mubr.msk.f32.gmra.mrb[2].mxu1 %vm279_vm0, %v1106_v41  ;;  %4433 = vmatmul.mubr.msk.f32.gmra.mrb[2].mxu0 %vm279_vm0, %v1096_v42  ;;  %v2532_v57 = vld [vmem:[#allocation6 + $0x58] sm:$0xff]  ;;  %v2816_v62 = vld [vmem:[#allocation6 + $0x68] sm:$0xff]  ;;  %1066 = vst.msk [vmem:[#allocation3 + $0x48] sm:$0xff] %vm1056_vm1, %v4963_v1  ;;  %1067 = vst.msk [vmem:[#allocation3 + $0x50] sm:$0xff] %vm1056_vm1, %v4963_v1 }
  0xaf   : > { %4450 = vmatprep.mubr.msk.f32.mxu1 %vm279_vm0, %v1107_v22  ;;  %4435 = vmatprep.mubr.msk.f32.mxu0 %vm279_vm0, %v1097_v44  ;;  %v5415_v59 = vpack.c.bf16 %v2532_v57, %v2531_v56  ;;  %v1660_v60 = vld [vmem:[#allocation2 + $0x2] sm:$0xff]  ;;  %v1379_v63 = vld [vmem:[#allocation2 + $0x19] sm:$0xff]  ;;  %v1661_v0 = vld [vmem:[#allocation2 + $0xa] sm:$0xff]  ;;  %v5422_v3 = vpack.c.bf16 %v2816_v62, %v2815_v61  ;;  %1069 = vst.msk [vmem:[#allocation3 + $0x60] sm:$0xff] %vm1056_vm1, %v4963_v1 }
  0xb0   : > { %v1380_v2 = vld [vmem:[#allocation2 + $0x21] sm:$0xff]  ;;  %v5424_v4 = vld [vmem:[#allocation2 + $0x12] sm:$0xff]  ;;  %v1381_v5 = vld [vmem:[#allocation2 + $0x29] sm:$0xff]  ;;  %1070 = vst.msk [vmem:[#allocation3 + $0x68] sm:$0xff] %vm1056_vm1, %v4963_v1 }
  0xb1   : > { %v5429_v6 = vld [vmem:[#allocation2 + $0x1a] sm:$0xff]  ;;  %v1382_v7 = vld [vmem:[#allocation2 + $0x31] sm:$0xff]  ;;  %v5433_v8 = vld [vmem:[#allocation2 + $0x22] sm:$0xff]  ;;  %1071 = vst.msk [vmem:[#allocation3 + $0x70] sm:$0xff] %vm1056_vm1, %v4963_v1 }
  0xb2   : > { %4451 = vmatmul.mubr.msk.f32.gmra.mrb[4].mxu1 %vm279_vm0, %v1108_v45  ;;  %4436 = vmatmul.mubr.msk.f32.gmra.mrb[4].mxu0 %vm279_vm0, %v1098_v46  ;;  %v1383_v10 = vld [vmem:[#allocation2 + $0x39] sm:$0xff]  ;;  %v5442_v13 = vld [vmem:[#allocation2 + $0x2a] sm:$0xff]  ;;  %v1384_v15 = vld [vmem:[#allocation2 + $0x41] sm:$0xff]  ;;  %1072 = vst.msk [vmem:[#allocation3 + $0x78] sm:$0xff] %vm1056_vm1, %v4963_v1 }
  0xb3   : > { %4453 = vmatprep.mubr.msk.f32.mxu1 %vm279_vm0, %v1109_v48  ;;  %4438 = vmatprep.mubr.msk.f32.mxu0 %vm279_vm0, %v1099_v49  ;;  %v5444_v16 = vld [vmem:[#allocation2 + $0x32] sm:$0xff]  ;;  %v1385_v17 = vld [vmem:[#allocation2 + $0x49] sm:$0xff]  ;;  %v5452_v18 = vld [vmem:[#allocation2 + $0x3a] sm:$0xff]  ;;  %1073 = vst.msk [vmem:[#allocation3 + $0x80] sm:$0xff] %vm1056_vm1, %v4963_v1 }
  0xb4   : > { %v1386_v20 = vld [vmem:[#allocation2 + $0x51] sm:$0xff]  ;;  %v5454_v9 = vld [vmem:[#allocation2 + $0x42] sm:$0xff]  ;;  %v1387_v24 = vld [vmem:[#allocation2 + $0x59] sm:$0xff]  ;;  %1074 = vst.msk [vmem:[#allocation3 + $0x88] sm:$0xff] %vm1056_vm1, %v4963_v1 }
  0xb5   : > { %v5462_v25 = vld [vmem:[#allocation2 + $0x4a] sm:$0xff]  ;;  %v1388_v26 = vld [vmem:[#allocation2 + $0x61] sm:$0xff]  ;;  %v1670_v27 = vld [vmem:[#allocation2 + $0x52] sm:$0xff] }
  0xb6   : > { %4454 = vmatmul.mubr.msk.f32.gmra.mrb[6].mxu1 %vm279_vm0, %v1110_v50  ;;  %4439 = vmatmul.mubr.msk.f32.gmra.mrb[6].mxu0 %vm279_vm0, %v1100_v51  ;;  %v1389_v28 = vld [vmem:[#allocation2 + $0x69] sm:$0xff]  ;;  %v1671_v29 = vld [vmem:[#allocation2 + $0x5a] sm:$0xff]  ;;  %v1390_v30 = vld [vmem:[#allocation2 + $0x71] sm:$0xff] }
  0xb7   : > { %4460 = vmatprep.mubr.msk.f32.mxu1 %vm279_vm0, %v1376_v52  ;;  %4441 = vmatprep.mubr.msk.f32.mxu0 %vm279_vm0, %v1101_v53  ;;  %v1672_v32 = vld [vmem:[#allocation2 + $0x62] sm:$0xff]  ;;  %v1391_v1 = vld [vmem:[#allocation2 + $0x79] sm:$0xff]  ;;  %v1673_v11 = vld [vmem:[#allocation2 + $0x6a] sm:$0xff] }
  0xb8   : > { %v1392_v33 = vld [vmem:[#allocation2 + $0x81] sm:$0xff]  ;;  %v1674_v31 = vld [vmem:[#allocation2 + $0x72] sm:$0xff]  ;;  %v1393_v34 = vld [vmem:[#allocation2 + $0x89] sm:$0xff] }
  0xb9   : > { %v1675_v35 = vld [vmem:[#allocation2 + $0x7a] sm:$0xff]  ;;  %v1676_v12 = vld [vmem:[#allocation2 + $0x82] sm:$0xff]  ;;  %v1677_v14 = vld [vmem:[#allocation2 + $0x8a] sm:$0xff] }
  0xba   : > { %4461 = vmatmul.mubr.msk.f32.vlgmr.msra.gmra.mrb[8].mxu1 %vm279_vm0, %v1377_v54  ;;  %4442 = vmatmul.mubr.msk.f32.gmra.mrb[8].mxu0 %vm279_vm0, %v1102_v55  ;;  %v3099_v36 = vld [vmem:[#allocation6 + $0x70] sm:$0xff]  ;;  %v3100_v37 = vld [vmem:[#allocation6 + $0x78] sm:$0xff]  ;;  %v2228_v38 = vld [vmem:[#allocation2 + $0x13] sm:$0xff] }
  0xbb   : > { %4719 = vmatpush3.bf16.msra.mxu1 %v4716_v43  ;;  %4463 = vmatprep.mubr.msk.f32.mxu1 %vm279_vm0, %v1378_v58  ;;  %v5518_v21 = vpack.c.bf16 %v3100_v37, %v3099_v36  ;;  %v3383_v39 = vld [vmem:[#allocation6 + $0x80] sm:$0xff]  ;;  %v3384_v40 = vld [vmem:[#allocation6 + $0x88] sm:$0xff]  ;;  %v2230_v43 = vld [vmem:[#allocation2 + $0x23] sm:$0xff] }
  0xbc   : > { %4491 = vmatprep.mubr.msk.f32.mxu0 %vm279_vm0, %v1660_v60  ;;  %4725 = vmatprep.subr.bf16.mxu1 %v5415_v59  ;;  %v2229_v41 = vld [vmem:[#allocation2 + $0x1b] sm:$0xff]  ;;  %v5528_v42 = vpack.c.bf16 %v3384_v40, %v3383_v39  ;;  %v2231_v22 = vld [vmem:[#allocation2 + $0x2b] sm:$0xff]  ;;  %v2232_v44 = vld [vmem:[#allocation2 + $0x33] sm:$0xff] }
  0xbd   : > { %v2233_v19 = vld [vmem:[#allocation2 + $0x3b] sm:$0xff]  ;;  %v2234_v23 = vld [vmem:[#allocation2 + $0x43] sm:$0xff]  ;;  %v2235_v45 = vld [vmem:[#allocation2 + $0x4b] sm:$0xff] }
  0xbe   : > { %4464 = vmatmul.mubr.msk.f32.gmra.mrb[10].mxu1 %vm279_vm0, %v1379_v63  ;;  %4492 = vmatmul.mubr.msk.f32.vlgmr.msra.gmra.mrb[10].mxu0 %vm279_vm0, %v1661_v0  ;;  %v2236_v46 = vld [vmem:[#allocation2 + $0x53] sm:$0xff]  ;;  %v2238_v48 = vld [vmem:[#allocation2 + $0x63] sm:$0xff]  ;;  %v2239_v49 = vld [vmem:[#allocation2 + $0x6b] sm:$0xff] }
  0xbf   : > { %4466 = vmatprep.mubr.msk.f32.mxu1 %vm279_vm0, %v1380_v2  ;;  %4723 = vmatpush3.bf16.msra.mxu0 %v4720_v47  ;;  %v2237_v47 = vld [vmem:[#allocation2 + $0x5b] sm:$0xff]  ;;  %v2240_v50 = vld [vmem:[#allocation2 + $0x73] sm:$0xff]  ;;  %v2242_v53 = vld [vmem:[#allocation2 + $0x83] sm:$0xff] }
  0xc0   : > { %4494 = vmatprep.mubr.msk.f32.mxu0 %vm279_vm0, %v5424_v4  ;;  %4729 = vmatprep.subr.bf16.mxu0 %v5422_v3  ;;  %v2241_v51 = vld [vmem:[#allocation2 + $0x7b] sm:$0xff]  ;;  %v1960_v52 = vld [vmem:[#allocation2 + $0x92] sm:$0xff]  ;;  %v2514_v60 = vld [vmem:[#allocation2 + $0x24] sm:$0xff] }
  0xc1   : > { %v1961_v54 = vld [vmem:[#allocation2 + $0x9a] sm:$0xff]  ;;  %v2243_v55 = vld [vmem:[#allocation2 + $0x8b] sm:$0xff] }
  0xc2   : > { %4467 = vmatmul.mubr.msk.f32.gmra.mrb[12].mxu1 %vm279_vm0, %v1381_v5  ;;  %4495 = vmatmul.mubr.msk.f32.gmra.mrb[12].mxu0 %vm279_vm0, %v5429_v6  ;;  %v2512_v56 = vld [vmem:[#allocation2 + $0x14] sm:$0xff]  ;;  %v2513_v58 = vld [vmem:[#allocation2 + $0x1c] sm:$0xff]  ;;  %v2515_v61 = vld [vmem:[#allocation2 + $0x2c] sm:$0xff] }
  0xc3   : > { %4469 = vmatprep.mubr.msk.f32.mxu1 %vm279_vm0, %v1382_v7  ;;  %4497 = vmatprep.mubr.msk.f32.mxu0 %vm279_vm0, %v5433_v8  ;;  %v2244_v57 = vld [vmem:[#allocation2 + $0x93] sm:$0xff]  ;;  %v2517_v63 = vld [vmem:[#allocation2 + $0x3c] sm:$0xff]  ;;  %v2518_v0 = vld [vmem:[#allocation2 + $0x44] sm:$0xff] }
  0xc4   : > { %v2516_v62 = vld [vmem:[#allocation2 + $0x34] sm:$0xff]  ;;  %v2519_v2 = vld [vmem:[#allocation2 + $0x4c] sm:$0xff]  ;;  %v2522_v5 = vld [vmem:[#allocation2 + $0x64] sm:$0xff] }
  0xc5   : > { %v2524_v7 = vld [vmem:[#allocation2 + $0x74] sm:$0xff]  ;;  %v3371_v36 = vld [vmem:[#allocation2 + $0x5e] sm:$0xff] }
  0xc6   : > { %4470 = vmatmul.mubr.msk.f32.gmra.mrb[14].mxu1 %vm279_vm0, %v1383_v10  ;;  %4498 = vmatmul.mubr.msk.f32.gmra.mrb[14].mxu0 %vm279_vm0, %v5442_v13  ;;  %v2526_v10 = vld [vmem:[#allocation2 + $0x84] sm:$0xff]  ;;  %v3090_v37 = vld [vmem:[#allocation2 + $0x75] sm:$0xff] }
  0xc7   : > { %4472 = vmatprep.mubr.msk.f32.mxu1 %vm279_vm0, %v1384_v15  ;;  %4500 = vmatprep.mubr.msk.f32.mxu0 %vm279_vm0, %v5444_v16  ;;  %v2528_v15 = vld [vmem:[#allocation2 + $0x94] sm:$0xff]  ;;  %v3092_v39 = vld [vmem:[#allocation2 + $0x85] sm:$0xff] }
  0xc8   : > { %v3374_v40 = vld [vmem:[#allocation2 + $0x76] sm:$0xff] }
  0xca   : > { %4473 = vmatmul.mubr.msk.f32.gmra.mrb[16].mxu1 %vm279_vm0, %v1385_v17  ;;  %4501 = vmatmul.mubr.msk.f32.gmra.mrb[16].mxu0 %vm279_vm0, %v5452_v18  ;;  %v3080_v17 = vld [vmem:[#allocation2 + $0x25] sm:$0xff] }
  0xcb   : > { %4475 = vmatprep.mubr.msk.f32.mxu1 %vm279_vm0, %v1386_v20  ;;  %4503 = vmatprep.mubr.msk.f32.mxu0 %vm279_vm0, %v5454_v9  ;;  %v3081_v20 = vld [vmem:[#allocation2 + $0x2d] sm:$0xff] }
  0xce   : > { %4476 = vmatmul.mubr.msk.f32.gmra.mrb[18].mxu1 %vm279_vm0, %v1387_v24  ;;  %4504 = vmatmul.mubr.msk.f32.gmra.mrb[18].mxu0 %vm279_vm0, %v5462_v25  ;;  %v3082_v24 = vld [vmem:[#allocation2 + $0x35] sm:$0xff] }
  0xcf   : > { %4478 = vmatprep.mubr.msk.f32.mxu1 %vm279_vm0, %v1388_v26  ;;  %4506 = vmatprep.mubr.msk.f32.mxu0 %vm279_vm0, %v1670_v27  ;;  %v3083_v26 = vld [vmem:[#allocation2 + $0x3d] sm:$0xff] }
  0xd2   : > { %4479 = vmatmul.mubr.msk.f32.gmra.mrb[20].mxu1 %vm279_vm0, %v1389_v28  ;;  %4507 = vmatmul.mubr.msk.f32.gmra.mrb[20].mxu0 %vm279_vm0, %v1671_v29  ;;  %v3084_v28 = vld [vmem:[#allocation2 + $0x45] sm:$0xff] }
  0xd3   : > { %4481 = vmatprep.mubr.msk.f32.mxu1 %vm279_vm0, %v1390_v30  ;;  %4509 = vmatprep.mubr.msk.f32.mxu0 %vm279_vm0, %v1672_v32  ;;  %v3085_v30 = vld [vmem:[#allocation2 + $0x4d] sm:$0xff] }
  0xd6   : > { %4482 = vmatmul.mubr.msk.f32.gmra.mrb[22].mxu1 %vm279_vm0, %v1391_v1  ;;  %4510 = vmatmul.mubr.msk.f32.gmra.mrb[22].mxu0 %vm279_vm0, %v1673_v11  ;;  %v3086_v1 = vld [vmem:[#allocation2 + $0x55] sm:$0xff] }
  0xd7   : > { %4484 = vmatprep.mubr.msk.f32.mxu1 %vm279_vm0, %v1392_v33  ;;  %4512 = vmatprep.mubr.msk.f32.mxu0 %vm279_vm0, %v1674_v31  ;;  %v3087_v33 = vld [vmem:[#allocation2 + $0x5d] sm:$0xff] }
  0xda   : > { %4485 = vmatmul.mubr.msk.f32.gmra.mrb[24].mxu1 %vm279_vm0, %v1393_v34  ;;  %4513 = vmatmul.mubr.msk.f32.gmra.mrb[24].mxu0 %vm279_vm0, %v1675_v35  ;;  %v3088_v34 = vld [vmem:[#allocation2 + $0x65] sm:$0xff] }
  0xdb   : > { %4522 = vmatprep.mubr.msk.f32.mxu1 %vm279_vm0, %v5424_v4  ;;  %4515 = vmatprep.mubr.msk.f32.mxu0 %vm279_vm0, %v1676_v12  ;;  %v2521_v4 = vld [vmem:[#allocation2 + $0x5c] sm:$0xff] }
  0xde   : > { %4523 = vmatmul.mubr.msk.f32.vlgmr.msra.gmra.mrb[26].mxu1 %vm279_vm0, %v5429_v6  ;;  %4516 = vmatmul.mubr.msk.f32.gmra.mrb[26].mxu0 %vm279_vm0, %v1677_v14  ;;  %v2523_v6 = vld [vmem:[#allocation2 + $0x6c] sm:$0xff] }
  0xdf   : > { %4727 = vmatpush3.bf16.msra.mxu1 %v5415_v59  ;;  %4525 = vmatprep.mubr.msk.f32.mxu1 %vm279_vm0, %v5433_v8  ;;  %v2245_v59 = vld [vmem:[#allocation2 + $0x9b] sm:$0xff] }
  0xe0   : > { %4553 = vmatprep.mubr.msk.f32.mxu0 %vm279_vm0, %v2228_v38  ;;  %4733 = vmatprep.subr.bf16.mxu1 %v5518_v21  ;;  %v2525_v8 = vld [vmem:[#allocation2 + $0x7c] sm:$0xff]  ;;  %v3373_v38 = vld [vmem:[#allocation2 + $0x6e] sm:$0xff] }
  0xe2   : > { %4526 = vmatmul.mubr.msk.f32.gmra.mrb[28].mxu1 %vm279_vm0, %v5442_v13  ;;  %4554 = vmatmul.mubr.msk.f32.vlgmr.msra.gmra.mrb[28].mxu0 %vm279_vm0, %v2229_v41  ;;  %v2527_v13 = vld [vmem:[#allocation2 + $0x8c] sm:$0xff] }
  0xe3   : > { %4528 = vmatprep.mubr.msk.f32.mxu1 %vm279_vm0, %v5444_v16  ;;  %4731 = vmatpush3.bf16.msra.mxu0 %v5422_v3  ;;  %v2520_v3 = vld [vmem:[#allocation2 + $0x54] sm:$0xff]  ;;  %v2529_v16 = vld [vmem:[#allocation2 + $0x9c] sm:$0xff] }
  0xe4   : > { %4556 = vmatprep.mubr.msk.f32.mxu0 %vm279_vm0, %v2230_v43  ;;  %4737 = vmatprep.subr.bf16.mxu0 %v5528_v42  ;;  %v3093_v41 = vld [vmem:[#allocation2 + $0x8d] sm:$0xff]  ;;  %v3094_v43 = vld [vmem:[#allocation2 + $0x95] sm:$0xff] }
  0xe6   : > { %4529 = vmatmul.mubr.msk.f32.gmra.mrb[30].mxu1 %vm279_vm0, %v5452_v18  ;;  %4557 = vmatmul.mubr.msk.f32.gmra.mrb[30].mxu0 %vm279_vm0, %v2231_v22  ;;  %v2812_v18 = vld [vmem:[#allocation2 + $0xa4] sm:$0xff] }
  0xe7   : > { %4531 = vmatprep.mubr.msk.f32.mxu1 %vm279_vm0, %v5454_v9  ;;  %4559 = vmatprep.mubr.msk.f32.mxu0 %vm279_vm0, %v2232_v44  ;;  %v2813_v9 = vld [vmem:[#allocation2 + $0xac] sm:$0xff]  ;;  %v3095_v44 = vld [vmem:[#allocation2 + $0x9d] sm:$0xff] }
  0xe8   : > { %v3376_v22 = vld [vmem:[#allocation2 + $0x86] sm:$0xff] }
  0xea   : > { %4532 = vmatmul.mubr.msk.f32.gmra.mrb[32].mxu1 %vm279_vm0, %v5462_v25  ;;  %4560 = vmatmul.mubr.msk.f32.gmra.mrb[32].mxu0 %vm279_vm0, %v2233_v19  ;;  %v3364_v25 = vld [vmem:[#allocation2 + $0x26] sm:$0xff]  ;;  %v3377_v19 = vld [vmem:[#allocation2 + $0x8e] sm:$0xff] }
  0xeb   : > { %4534 = vmatprep.mubr.msk.f32.mxu1 %vm279_vm0, %v1670_v27  ;;  %4562 = vmatprep.mubr.msk.f32.mxu0 %vm279_vm0, %v2234_v23  ;;  %v3365_v27 = vld [vmem:[#allocation2 + $0x2e] sm:$0xff]  ;;  %v3096_v23 = vld [vmem:[#allocation2 + $0xa5] sm:$0xff] }
  0xee   : > { %4535 = vmatmul.mubr.msk.f32.gmra.mrb[34].mxu1 %vm279_vm0, %v1671_v29  ;;  %4563 = vmatmul.mubr.msk.f32.gmra.mrb[34].mxu0 %vm279_vm0, %v2235_v45  ;;  %v3366_v29 = vld [vmem:[#allocation2 + $0x36] sm:$0xff] }
  0xef   : > { %4537 = vmatprep.mubr.msk.f32.mxu1 %vm279_vm0, %v1672_v32  ;;  %4565 = vmatprep.mubr.msk.f32.mxu0 %vm279_vm0, %v2236_v46  ;;  %v3367_v32 = vld [vmem:[#allocation2 + $0x3e] sm:$0xff]  ;;  %v3378_v45 = vld [vmem:[#allocation2 + $0x96] sm:$0xff]  ;;  %v3097_v46 = vld [vmem:[#allocation2 + $0xad] sm:$0xff] }
  0xf2   : > { %4538 = vmatmul.mubr.msk.f32.gmra.mrb[36].mxu1 %vm279_vm0, %v1673_v11  ;;  %4566 = vmatmul.mubr.msk.f32.gmra.mrb[36].mxu0 %vm279_vm0, %v2237_v47  ;;  %v3368_v11 = vld [vmem:[#allocation2 + $0x46] sm:$0xff]  ;;  %v3379_v47 = vld [vmem:[#allocation2 + $0x9e] sm:$0xff] }
  0xf3   : > { %4540 = vmatprep.mubr.msk.f32.mxu1 %vm279_vm0, %v1674_v31  ;;  %4568 = vmatprep.mubr.msk.f32.mxu0 %vm279_vm0, %v2238_v48  ;;  %v3369_v31 = vld [vmem:[#allocation2 + $0x4e] sm:$0xff]  ;;  %v3380_v48 = vld [vmem:[#allocation2 + $0xa6] sm:$0xff] }
  0xf6   : > { %4541 = vmatmul.mubr.msk.f32.gmra.mrb[38].mxu1 %vm279_vm0, %v1675_v35  ;;  %4569 = vmatmul.mubr.msk.f32.gmra.mrb[38].mxu0 %vm279_vm0, %v2239_v49  ;;  %v3370_v35 = vld [vmem:[#allocation2 + $0x56] sm:$0xff]  ;;  %v3381_v49 = vld [vmem:[#allocation2 + $0xae] sm:$0xff] }
  0xf7   : > { %4543 = vmatprep.mubr.msk.f32.mxu1 %vm279_vm0, %v1676_v12  ;;  %4571 = vmatprep.mubr.msk.f32.mxu0 %vm279_vm0, %v2240_v50  ;;  %v3089_v12 = vld [vmem:[#allocation2 + $0x6d] sm:$0xff]  ;;  %v1086_v50 = vld [vmem:[#allocation3 + $0x58] sm:$0xff] }
  0xfa   : > { %4544 = vmatmul.mubr.msk.f32.gmra.mrb[40].mxu1 %vm279_vm0, %v1677_v14  ;;  %4572 = vmatmul.mubr.msk.f32.gmra.mrb[40].mxu0 %vm279_vm0, %v2241_v51  ;;  %v3372_v14 = vld [vmem:[#allocation2 + $0x66] sm:$0xff] }
  0xfb   : > { %4546 = vmatprep.mubr.msk.f32.mxu1 %vm279_vm0, %v1960_v52  ;;  %4574 = vmatprep.mubr.msk.f32.mxu0 %vm279_vm0, %v2242_v53  ;;  %v1076_v51 = vld [vmem:[#allocation3 + $0x8] sm:$0xff]  ;;  %v1085_v52 = vld [vmem:[#allocation3 + $0x50] sm:$0xff]  ;;  %v1075_v53 = vld [vmem:[#allocation3] sm:$0xff] }
  0xfe   : > { %4547 = vmatmul.mubr.msk.f32.gmra.mrb[42].mxu1 %vm279_vm0, %v1961_v54  ;;  %4575 = vmatmul.mubr.msk.f32.gmra.mrb[42].mxu0 %vm279_vm0, %v2243_v55 }
  0xff   : > { %4584 = vmatprep.mubr.msk.f32.mxu1 %vm279_vm0, %v2512_v56  ;;  %4577 = vmatprep.mubr.msk.f32.mxu0 %vm279_vm0, %v2244_v57 }
 0x102   : > { %4585 = vmatmul.mubr.msk.f32.vlgmr.msra.gmra.mrb[44].mxu1 %vm279_vm0, %v2513_v58  ;;  %4578 = vmatmul.mubr.msk.f32.gmra.mrb[44].mxu0 %vm279_vm0, %v2245_v59 }
 0x103   : > { %4735 = vmatpush3.bf16.msra.mxu1 %v5518_v21  ;;  %4587 = vmatprep.mubr.msk.f32.mxu1 %vm279_vm0, %v2514_v60  ;;  %v3091_v21 = vld [vmem:[#allocation2 + $0x7d] sm:$0xff] }
 0x104   : > { %4615 = vmatprep.mubr.msk.f32.mxu0 %vm279_vm0, %v2514_v60 }
 0x106   : > { %4588 = vmatmul.mubr.msk.f32.gmra.mrb[46].mxu1 %vm279_vm0, %v2515_v61  ;;  %4616 = vmatmul.mubr.msk.f32.vlgmr.msra.gmra.mrb[46].mxu0 %vm279_vm0, %v2515_v61  ;;  %v1088_v61 = vld [vmem:[#allocation3 + $0x68] sm:$0xff] }
 0x107   : > { %4590 = vmatprep.mubr.msk.f32.mxu1 %vm279_vm0, %v2516_v62  ;;  %4739 = vmatpush3.bf16.msra.mxu0 %v5528_v42  ;;  %v3375_v42 = vld [vmem:[#allocation2 + $0x7e] sm:$0xff] }
 0x108   : > { %4618 = vmatprep.mubr.msk.f32.mxu0 %vm279_vm0, %v2516_v62 }
 0x10a   : > { %4591 = vmatmul.mubr.msk.f32.gmra.mrb[48].mxu1 %vm279_vm0, %v2517_v63  ;;  %4619 = vmatmul.mubr.msk.f32.gmra.mrb[48].mxu0 %vm279_vm0, %v2517_v63  ;;  %v1078_v63 = vld [vmem:[#allocation3 + $0x18] sm:$0xff] }
 0x10b   : > { %4593 = vmatprep.mubr.msk.f32.mxu1 %vm279_vm0, %v2518_v0  ;;  %4621 = vmatprep.mubr.msk.f32.mxu0 %vm279_vm0, %v2518_v0  ;;  %v1087_v0 = vld [vmem:[#allocation3 + $0x60] sm:$0xff] }
 0x10e   : > { %4594 = vmatmul.mubr.msk.f32.gmra.mrb[50].mxu1 %vm279_vm0, %v2519_v2  ;;  %4622 = vmatmul.mubr.msk.f32.gmra.mrb[50].mxu0 %vm279_vm0, %v2519_v2  ;;  %v1077_v2 = vld [vmem:[#allocation3 + $0x10] sm:$0xff] }
 0x10f   : > { %4596 = vmatprep.mubr.msk.f32.mxu1 %vm279_vm0, %v2520_v3  ;;  %4624 = vmatprep.mubr.msk.f32.mxu0 %vm279_vm0, %v2520_v3 }
 0x112   : > { %4597 = vmatmul.mubr.msk.f32.gmra.mrb[52].mxu1 %vm279_vm0, %v2521_v4  ;;  %4625 = vmatmul.mubr.msk.f32.gmra.mrb[52].mxu0 %vm279_vm0, %v2521_v4 }
 0x113   : > { %4599 = vmatprep.mubr.msk.f32.mxu1 %vm279_vm0, %v2522_v5  ;;  %4627 = vmatprep.mubr.msk.f32.mxu0 %vm279_vm0, %v2522_v5 }
 0x116   : > { %4600 = vmatmul.mubr.msk.f32.gmra.mrb[54].mxu1 %vm279_vm0, %v2523_v6  ;;  %4628 = vmatmul.mubr.msk.f32.gmra.mrb[54].mxu0 %vm279_vm0, %v2523_v6 }
 0x117   : > { %4602 = vmatprep.mubr.msk.f32.mxu1 %vm279_vm0, %v2524_v7  ;;  %4630 = vmatprep.mubr.msk.f32.mxu0 %vm279_vm0, %v2524_v7 }
 0x11a   : > { %4603 = vmatmul.mubr.msk.f32.gmra.mrb[56].mxu1 %vm279_vm0, %v2525_v8  ;;  %4631 = vmatmul.mubr.msk.f32.gmra.mrb[56].mxu0 %vm279_vm0, %v2525_v8 }
 0x11b   : > { %4605 = vmatprep.mubr.msk.f32.mxu1 %vm279_vm0, %v2526_v10  ;;  %4633 = vmatprep.mubr.msk.f32.mxu0 %vm279_vm0, %v2526_v10 }
 0x11e   : > { %4606 = vmatmul.mubr.msk.f32.gmra.mrb[58].mxu1 %vm279_vm0, %v2527_v13  ;;  %4634 = vmatmul.mubr.msk.f32.gmra.mrb[58].mxu0 %vm279_vm0, %v2527_v13  ;;  %v1090_v13 = vld [vmem:[#allocation3 + $0x78] sm:$0xff] }
 0x11f   : > { %4608 = vmatprep.mubr.msk.f32.mxu1 %vm279_vm0, %v2528_v15  ;;  %4636 = vmatprep.mubr.msk.f32.mxu0 %vm279_vm0, %v2528_v15 }
 0x122   : > { %4609 = vmatmul.mubr.msk.f32.gmra.mrb[60].mxu1 %vm279_vm0, %v2529_v16  ;;  %4637 = vmatmul.mubr.msk.f32.gmra.mrb[60].mxu0 %vm279_vm0, %v2529_v16  ;;  %v1080_v16 = vld [vmem:[#allocation3 + $0x28] sm:$0xff] }
 0x123   : > { %4646 = vmatprep.mubr.msk.f32.mxu1 %vm279_vm0, %v3080_v17  ;;  %4639 = vmatprep.mubr.msk.f32.mxu0 %vm279_vm0, %v2812_v18  ;;  %v1089_v17 = vld [vmem:[#allocation3 + $0x70] sm:$0xff]  ;;  %v1079_v18 = vld [vmem:[#allocation3 + $0x20] sm:$0xff] }
 0x126   : > { %4647 = vmatmul.mubr.msk.f32.vlgmr.msra.gmra.mrb[62].mxu1 %vm279_vm0, %v3081_v20  ;;  %4640 = vmatmul.mubr.msk.f32.gmra.mrb[62].mxu0 %vm279_vm0, %v2813_v9 }
 0x127   : > { %4649 = vmatprep.mubr.msk.f32.mxu1 %vm279_vm0, %v3082_v24  ;;  %4677 = vmatprep.mubr.msk.f32.mxu0 %vm279_vm0, %v3364_v25 }
 0x12a   : > { %4650 = vmatmul.mubr.msk.f32.gmra.mrb[64].mxu1 %vm279_vm0, %v3083_v26  ;;  %4678 = vmatmul.mubr.msk.f32.vlgmr.msra.gmra.mrb[64].mxu0 %vm279_vm0, %v3365_v27 }
 0x12b   : > { %4652 = vmatprep.mubr.msk.f32.mxu1 %vm279_vm0, %v3084_v28  ;;  %4680 = vmatprep.mubr.msk.f32.mxu0 %vm279_vm0, %v3366_v29  ;;  %v1092_v29 = vld [vmem:[#allocation3 + $0x88] sm:$0xff] }
 0x12e   : > { %4653 = vmatmul.mubr.msk.f32.gmra.mrb[66].mxu1 %vm279_vm0, %v3085_v30  ;;  %4681 = vmatmul.mubr.msk.f32.gmra.mrb[66].mxu0 %vm279_vm0, %v3367_v32  ;;  %v1082_v32 = vld [vmem:[#allocation3 + $0x38] sm:$0xff] }
 0x12f   : > { %4655 = vmatprep.mubr.msk.f32.mxu1 %vm279_vm0, %v3086_v1  ;;  %4683 = vmatprep.mubr.msk.f32.mxu0 %vm279_vm0, %v3368_v11  ;;  %v1091_v1 = vld [vmem:[#allocation3 + $0x80] sm:$0xff]  ;;  %v1081_v11 = vld [vmem:[#allocation3 + $0x30] sm:$0xff] }
 0x132   : > { %4656 = vmatmul.mubr.msk.f32.gmra.mrb[68].mxu1 %vm279_vm0, %v3087_v33  ;;  %4684 = vmatmul.mubr.msk.f32.gmra.mrb[68].mxu0 %vm279_vm0, %v3369_v31 }
 0x133   : > { %4658 = vmatprep.mubr.msk.f32.mxu1 %vm279_vm0, %v3088_v34  ;;  %4686 = vmatprep.mubr.msk.f32.mxu0 %vm279_vm0, %v3370_v35 }
 0x136   : > { %4659 = vmatmul.mubr.msk.f32.gmra.mrb[70].mxu1 %vm279_vm0, %v3089_v12  ;;  %4687 = vmatmul.mubr.msk.f32.gmra.mrb[70].mxu0 %vm279_vm0, %v3371_v36 }
 0x137   : > { %4661 = vmatprep.mubr.msk.f32.mxu1 %vm279_vm0, %v3090_v37  ;;  %4689 = vmatprep.mubr.msk.f32.mxu0 %vm279_vm0, %v3372_v14 }
 0x13a   : > { %4662 = vmatmul.mubr.msk.f32.gmra.mrb[72].mxu1 %vm279_vm0, %v3091_v21  ;;  %4690 = vmatmul.mubr.msk.f32.gmra.mrb[72].mxu0 %vm279_vm0, %v3373_v38  ;;  %v1084_v38 = vld [vmem:[#allocation3 + $0x48] sm:$0xff] }
 0x13b   : > { %4664 = vmatprep.mubr.msk.f32.mxu1 %vm279_vm0, %v3092_v39  ;;  %4692 = vmatprep.mubr.msk.f32.mxu0 %vm279_vm0, %v3374_v40  ;;  %v1083_v40 = vld [vmem:[#allocation3 + $0x40] sm:$0xff] }
 0x13e   : > { %4665 = vmatmul.mubr.msk.f32.gmra.mrb[74].mxu1 %vm279_vm0, %v3093_v41  ;;  %4693 = vmatmul.mubr.msk.f32.gmra.mrb[74].mxu0 %vm279_vm0, %v3375_v42 }
 0x13f   : > { %4667 = vmatprep.mubr.msk.f32.mxu1 %vm279_vm0, %v3094_v43  ;;  %4695 = vmatprep.mubr.msk.f32.mxu0 %vm279_vm0, %v3376_v22 }
 0x142   : > { %4668 = vmatmul.mubr.msk.f32.gmra.mrb[76].mxu1 %vm279_vm0, %v3095_v44  ;;  %4696 = vmatmul.mubr.msk.f32.gmra.mrb[76].mxu0 %vm279_vm0, %v3377_v19 }
 0x143   : > { %4670 = vmatprep.mubr.msk.f32.mxu1 %vm279_vm0, %v3096_v23  ;;  %4698 = vmatprep.mubr.msk.f32.mxu0 %vm279_vm0, %v3378_v45 }
 0x146   : > { %4671 = vmatmul.mubr.msk.f32.gmra.mrb[78].mxu1 %vm279_vm0, %v3097_v46  ;;  %4699 = vmatmul.mubr.msk.f32.gmra.mrb[78].mxu0 %vm279_vm0, %v3379_v47 }
 0x147   : > { %4701 = vmatprep.mubr.msk.f32.mxu0 %vm279_vm0, %v3380_v48 }
 0x14a   : > { %4702 = vmatmul.mubr.msk.f32.gmra.mrb[80].mxu0 %vm279_vm0, %v3381_v49 }
 0x17d   : > { %v4446_v54 = vpop.f32.mrb[0].mxu1  ;;  %v4431_v55 = vpop.f32.mrb[0].mxu0 }
 0x17e   : > { %v1333_v56 = vadd.f32 %v4446_v54, %v1086_v50  ;;  %v1283_v57 = vpop.f32.mrb[1].mxu1  ;;  %v1323_v58 = vadd.f32 %v4431_v55, %v1076_v51  ;;  %v1233_v59 = vpop.f32.mrb[1].mxu0 }
 0x17f   : > { %v1332_v60 = vadd.f32 %v1283_v57, %v1085_v52  ;;  %v1322_v62 = vadd.f32 %v1233_v59, %v1075_v53 }
 0x180   : > { %1351 = vst.msk [vmem:[#allocation3 + $0x58] sm:$0xff] %vm1056_vm1, %v1333_v56  ;;  %1341 = vst.msk [vmem:[#allocation3 + $0x8] sm:$0xff] %vm1056_vm1, %v1323_v58 }
 0x181   : > { %1350 = vst.msk [vmem:[#allocation3 + $0x50] sm:$0xff] %vm1056_vm1, %v1332_v60  ;;  %v4449_v3 = vpop.f32.mrb[2].mxu1  ;;  %1340 = vst.msk [vmem:[#allocation3] sm:$0xff] %vm1056_vm1, %v1322_v62  ;;  %v4434_v4 = vpop.f32.mrb[2].mxu0 }
 0x182   : > { %v1335_v5 = vadd.f32 %v4449_v3, %v1088_v61  ;;  %v1293_v6 = vpop.f32.mrb[3].mxu1  ;;  %v1325_v7 = vadd.f32 %v4434_v4, %v1078_v63  ;;  %v1243_v8 = vpop.f32.mrb[3].mxu0 }
 0x183   : > { %v1334_v10 = vadd.f32 %v1293_v6, %v1087_v0  ;;  %v1324_v15 = vadd.f32 %v1243_v8, %v1077_v2 }
 0x184   : > { %1353 = vst.msk [vmem:[#allocation3 + $0x68] sm:$0xff] %vm1056_vm1, %v1335_v5  ;;  %1343 = vst.msk [vmem:[#allocation3 + $0x18] sm:$0xff] %vm1056_vm1, %v1325_v7 }
 0x185   : > { %1352 = vst.msk [vmem:[#allocation3 + $0x60] sm:$0xff] %vm1056_vm1, %v1334_v10  ;;  %v4452_v20 = vpop.f32.mrb[4].mxu1  ;;  %1342 = vst.msk [vmem:[#allocation3 + $0x10] sm:$0xff] %vm1056_vm1, %v1324_v15  ;;  %v4437_v9 = vpop.f32.mrb[4].mxu0 }
 0x186   : > { %v1337_v24 = vadd.f32 %v4452_v20, %v1090_v13  ;;  %v1303_v25 = vpop.f32.mrb[5].mxu1  ;;  %v1327_v26 = vadd.f32 %v4437_v9, %v1080_v16  ;;  %v1253_v27 = vpop.f32.mrb[5].mxu0 }
 0x187   : > { %v1336_v28 = vadd.f32 %v1303_v25, %v1089_v17  ;;  %v1326_v30 = vadd.f32 %v1253_v27, %v1079_v18  ;;  %v1359_v14 = vld [vmem:[#allocation3 + $0x8] sm:$0xff] }
 0x188   : > { %1355 = vst.msk [vmem:[#allocation3 + $0x78] sm:$0xff] %vm1056_vm1, %v1337_v24  ;;  %1345 = vst.msk [vmem:[#allocation3 + $0x28] sm:$0xff] %vm1056_vm1, %v1327_v26  ;;  %v1358_v39 = vld [vmem:[#allocation3] sm:$0xff] }
 0x189   : > { %1354 = vst.msk [vmem:[#allocation3 + $0x70] sm:$0xff] %vm1056_vm1, %v1336_v28  ;;  %v4455_v33 = vpop.f32.mrb[6].mxu1  ;;  %1344 = vst.msk [vmem:[#allocation3 + $0x20] sm:$0xff] %vm1056_vm1, %v1326_v30  ;;  %v4440_v31 = vpop.f32.mrb[6].mxu0 }
 0x18a   : > { %v1339_v34 = vadd.f32 %v4455_v33, %v1092_v29  ;;  %v1313_v35 = vpop.f32.mrb[7].mxu1  ;;  %v1329_v12 = vadd.f32 %v4440_v31, %v1082_v32  ;;  %v1263_v36 = vpop.f32.mrb[7].mxu0  ;;  %v1369_v33 = vld [vmem:[#allocation3 + $0x58] sm:$0xff] }
 0x18b   : > { %v1338_v37 = vadd.f32 %v1313_v35, %v1091_v1  ;;  %v1328_v21 = vadd.f32 %v1263_v36, %v1081_v11  ;;  %v1361_v45 = vld [vmem:[#allocation3 + $0x18] sm:$0xff] }
 0x18c   : > { %1357 = vst.msk [vmem:[#allocation3 + $0x88] sm:$0xff] %vm1056_vm1, %v1339_v34  ;;  %1347 = vst.msk [vmem:[#allocation3 + $0x38] sm:$0xff] %vm1056_vm1, %v1329_v12  ;;  %v1360_v47 = vld [vmem:[#allocation3 + $0x10] sm:$0xff] }
 0x18d   : > { %1356 = vst.msk [vmem:[#allocation3 + $0x80] sm:$0xff] %vm1056_vm1, %v1338_v37  ;;  %v4462_v41 = vpop.f32.mrb[8].mxu1  ;;  %1346 = vst.msk [vmem:[#allocation3 + $0x30] sm:$0xff] %vm1056_vm1, %v1328_v21  ;;  %v4443_v42 = vpop.f32.mrb[8].mxu0  ;;  %v1368_v12 = vld [vmem:[#allocation3 + $0x50] sm:$0xff] }
 0x18e   : > { %v1607_v43 = vadd.f32 %v4462_v41, %v1359_v14  ;;  %v1517_v22 = vpop.f32.mrb[9].mxu1  ;;  %v1331_v44 = vadd.f32 %v4443_v42, %v1084_v38  ;;  %v1273_v19 = vpop.f32.mrb[9].mxu0  ;;  %v1371_v41 = vld [vmem:[#allocation3 + $0x68] sm:$0xff] }
 0x18f   : > { %v1606_v23 = vadd.f32 %v1517_v22, %v1358_v39  ;;  %v1330_v46 = vadd.f32 %v1273_v19, %v1083_v40  ;;  %v1363_v54 = vld [vmem:[#allocation3 + $0x28] sm:$0xff] }
 0x190   : > { %1625 = vst.msk [vmem:[#allocation3 + $0x8] sm:$0xff] %vm1056_vm1, %v1607_v43  ;;  %1349 = vst.msk [vmem:[#allocation3 + $0x48] sm:$0xff] %vm1056_vm1, %v1331_v44  ;;  %v1362_v55 = vld [vmem:[#allocation3 + $0x20] sm:$0xff] }
 0x191   : > { %1624 = vst.msk [vmem:[#allocation3] sm:$0xff] %vm1056_vm1, %v1606_v23  ;;  %v4465_v48 = vpop.f32.mrb[10].mxu1  ;;  %1348 = vst.msk [vmem:[#allocation3 + $0x40] sm:$0xff] %vm1056_vm1, %v1330_v46  ;;  %v4493_v49 = vpop.f32.mrb[10].mxu0  ;;  %v1370_v44 = vld [vmem:[#allocation3 + $0x60] sm:$0xff] }
 0x192   : > { %v1609_v50 = vadd.f32 %v4465_v48, %v1361_v45  ;;  %v1527_v51 = vpop.f32.mrb[11].mxu1  ;;  %v1801_v52 = vpop.f32.mrb[11].mxu0 }
 0x193   : > { %v1608_v53 = vadd.f32 %v1527_v51, %v1360_v47  ;;  %v1365_v63 = vld [vmem:[#allocation3 + $0x38] sm:$0xff] }
 0x194   : > { %1627 = vst.msk [vmem:[#allocation3 + $0x18] sm:$0xff] %vm1056_vm1, %v1609_v50  ;;  %v1364_v3 = vld [vmem:[#allocation3 + $0x30] sm:$0xff]  ;;  %v1373_v50 = vld [vmem:[#allocation3 + $0x78] sm:$0xff] }
 0x195   : > { %1626 = vst.msk [vmem:[#allocation3 + $0x10] sm:$0xff] %vm1056_vm1, %v1608_v53  ;;  %v4468_v56 = vpop.f32.mrb[12].mxu1  ;;  %v4496_v57 = vpop.f32.mrb[12].mxu0 }
 0x196   : > { %v1611_v58 = vadd.f32 %v4468_v56, %v1363_v54  ;;  %v1537_v59 = vpop.f32.mrb[13].mxu1  ;;  %v1811_v60 = vpop.f32.mrb[13].mxu0  ;;  %v1372_v54 = vld [vmem:[#allocation3 + $0x70] sm:$0xff] }
 0x197   : > { %v1610_v61 = vadd.f32 %v1537_v59, %v1362_v55  ;;  %v1643_v62 = vld [vmem:[#allocation3 + $0x8] sm:$0xff] }
 0x198   : > { %1629 = vst.msk [vmem:[#allocation3 + $0x28] sm:$0xff] %vm1056_vm1, %v1611_v58  ;;  %v1891_v0 = vadd.f32 %v4493_v49, %v1643_v62  ;;  %v1642_v2 = vld [vmem:[#allocation3] sm:$0xff]  ;;  %v1367_v16 = vld [vmem:[#allocation3 + $0x48] sm:$0xff] }
 0x199   : > { %1628 = vst.msk [vmem:[#allocation3 + $0x20] sm:$0xff] %vm1056_vm1, %v1610_v61  ;;  %v1890_v4 = vadd.f32 %v1801_v52, %v1642_v2  ;;  %v4471_v5 = vpop.f32.mrb[14].mxu1  ;;  %v4499_v6 = vpop.f32.mrb[14].mxu0  ;;  %v1366_v20 = vld [vmem:[#allocation3 + $0x40] sm:$0xff]  ;;  %v1375_v62 = vld [vmem:[#allocation3 + $0x88] sm:$0xff] }
 0x19a   : > { %1909 = vst.msk [vmem:[#allocation3 + $0x8] sm:$0xff] %vm1056_vm1, %v1891_v0  ;;  %v1613_v7 = vadd.f32 %v4471_v5, %v1365_v63  ;;  %v1547_v8 = vpop.f32.mrb[15].mxu1  ;;  %v1821_v10 = vpop.f32.mrb[15].mxu0 }
 0x19b   : > { %1908 = vst.msk [vmem:[#allocation3] sm:$0xff] %vm1056_vm1, %v1890_v4  ;;  %v1612_v13 = vadd.f32 %v1547_v8, %v1364_v3  ;;  %v1645_v15 = vld [vmem:[#allocation3 + $0x18] sm:$0xff]  ;;  %v1374_v3 = vld [vmem:[#allocation3 + $0x80] sm:$0xff] }
 0x19c   : > { %1631 = vst.msk [vmem:[#allocation3 + $0x38] sm:$0xff] %vm1056_vm1, %v1613_v7  ;;  %v1893_v17 = vadd.f32 %v4496_v57, %v1645_v15  ;;  %v1644_v18 = vld [vmem:[#allocation3 + $0x10] sm:$0xff] }
 0x19d   : > { %1630 = vst.msk [vmem:[#allocation3 + $0x30] sm:$0xff] %vm1056_vm1, %v1612_v13  ;;  %v1892_v9 = vadd.f32 %v1811_v60, %v1644_v18  ;;  %v4474_v24 = vpop.f32.mrb[16].mxu1  ;;  %v4502_v25 = vpop.f32.mrb[16].mxu0 }
 0x19e   : > { %1911 = vst.msk [vmem:[#allocation3 + $0x18] sm:$0xff] %vm1056_vm1, %v1893_v17  ;;  %v1615_v26 = vadd.f32 %v4474_v24, %v1367_v16  ;;  %v1557_v27 = vpop.f32.mrb[17].mxu1  ;;  %v1831_v28 = vpop.f32.mrb[17].mxu0 }
 0x19f   : > { %1910 = vst.msk [vmem:[#allocation3 + $0x10] sm:$0xff] %vm1056_vm1, %v1892_v9  ;;  %v1614_v29 = vadd.f32 %v1557_v27, %v1366_v20  ;;  %v1647_v30 = vld [vmem:[#allocation3 + $0x28] sm:$0xff] }
 0x1a0   : > { %1633 = vst.msk [vmem:[#allocation3 + $0x48] sm:$0xff] %vm1056_vm1, %v1615_v26  ;;  %v1895_v32 = vadd.f32 %v4499_v6, %v1647_v30  ;;  %v1646_v1 = vld [vmem:[#allocation3 + $0x20] sm:$0xff] }
 0x1a1   : > { %1632 = vst.msk [vmem:[#allocation3 + $0x40] sm:$0xff] %vm1056_vm1, %v1614_v29  ;;  %v1894_v11 = vadd.f32 %v1821_v10, %v1646_v1  ;;  %v4477_v31 = vpop.f32.mrb[18].mxu1  ;;  %v4505_v34 = vpop.f32.mrb[18].mxu0  ;;  %v1927_v15 = vld [vmem:[#allocation3 + $0x8] sm:$0xff] }
 0x1a2   : > { %1913 = vst.msk [vmem:[#allocation3 + $0x28] sm:$0xff] %vm1056_vm1, %v1895_v32  ;;  %v1617_v35 = vadd.f32 %v4477_v31, %v1369_v33  ;;  %v1567_v36 = vpop.f32.mrb[19].mxu1  ;;  %v1841_v37 = vpop.f32.mrb[19].mxu0  ;;  %v1926_v20 = vld [vmem:[#allocation3] sm:$0xff] }
 0x1a3   : > { %1912 = vst.msk [vmem:[#allocation3 + $0x20] sm:$0xff] %vm1056_vm1, %v1894_v11  ;;  %v1616_v14 = vadd.f32 %v1567_v36, %v1368_v12  ;;  %v1649_v21 = vld [vmem:[#allocation3 + $0x38] sm:$0xff] }
 0x1a4   : > { %1635 = vst.msk [vmem:[#allocation3 + $0x58] sm:$0xff] %vm1056_vm1, %v1617_v35  ;;  %v1897_v38 = vadd.f32 %v4502_v25, %v1649_v21  ;;  %v1648_v39 = vld [vmem:[#allocation3 + $0x30] sm:$0xff] }
 0x1a5   : > { %1634 = vst.msk [vmem:[#allocation3 + $0x50] sm:$0xff] %vm1056_vm1, %v1616_v14  ;;  %v1896_v40 = vadd.f32 %v1831_v28, %v1648_v39  ;;  %v4480_v42 = vpop.f32.mrb[20].mxu1  ;;  %v4508_v43 = vpop.f32.mrb[20].mxu0  ;;  %v1929_v30 = vld [vmem:[#allocation3 + $0x18] sm:$0xff] }
 0x1a6   : > { %1915 = vst.msk [vmem:[#allocation3 + $0x38] sm:$0xff] %vm1056_vm1, %v1897_v38  ;;  %v1619_v22 = vadd.f32 %v4480_v42, %v1371_v41  ;;  %v1577_v19 = vpop.f32.mrb[21].mxu1  ;;  %v1851_v23 = vpop.f32.mrb[21].mxu0  ;;  %v1928_v33 = vld [vmem:[#allocation3 + $0x10] sm:$0xff] }
 0x1a7   : > { %1914 = vst.msk [vmem:[#allocation3 + $0x30] sm:$0xff] %vm1056_vm1, %v1896_v40  ;;  %v1618_v45 = vadd.f32 %v1577_v19, %v1370_v44  ;;  %v1651_v46 = vld [vmem:[#allocation3 + $0x48] sm:$0xff] }
 0x1a8   : > { %1637 = vst.msk [vmem:[#allocation3 + $0x68] sm:$0xff] %vm1056_vm1, %v1619_v22  ;;  %v1899_v47 = vadd.f32 %v4505_v34, %v1651_v46  ;;  %v1650_v48 = vld [vmem:[#allocation3 + $0x40] sm:$0xff] }
 0x1a9   : > { %1636 = vst.msk [vmem:[#allocation3 + $0x60] sm:$0xff] %vm1056_vm1, %v1618_v45  ;;  %v1898_v49 = vadd.f32 %v1841_v37, %v1650_v48  ;;  %v4483_v51 = vpop.f32.mrb[22].mxu1  ;;  %v4511_v52 = vpop.f32.mrb[22].mxu0  ;;  %v1931_v21 = vld [vmem:[#allocation3 + $0x28] sm:$0xff] }
 0x1aa   : > { %1917 = vst.msk [vmem:[#allocation3 + $0x48] sm:$0xff] %vm1056_vm1, %v1899_v47  ;;  %v1621_v53 = vadd.f32 %v4483_v51, %v1373_v50  ;;  %v1587_v55 = vpop.f32.mrb[23].mxu1  ;;  %v1861_v56 = vpop.f32.mrb[23].mxu0  ;;  %v1930_v41 = vld [vmem:[#allocation3 + $0x20] sm:$0xff] }
 0x1ab   : > { %1916 = vst.msk [vmem:[#allocation3 + $0x40] sm:$0xff] %vm1056_vm1, %v1898_v49  ;;  %v1620_v57 = vadd.f32 %v1587_v55, %v1372_v54  ;;  %v1653_v58 = vld [vmem:[#allocation3 + $0x58] sm:$0xff] }
 0x1ac   : > { %1639 = vst.msk [vmem:[#allocation3 + $0x78] sm:$0xff] %vm1056_vm1, %v1621_v53  ;;  %v1901_v59 = vadd.f32 %v4508_v43, %v1653_v58  ;;  %v1652_v60 = vld [vmem:[#allocation3 + $0x50] sm:$0xff] }
 0x1ad   : > { %1638 = vst.msk [vmem:[#allocation3 + $0x70] sm:$0xff] %vm1056_vm1, %v1620_v57  ;;  %v1900_v61 = vadd.f32 %v1851_v23, %v1652_v60  ;;  %v4486_v63 = vpop.f32.mrb[24].mxu1  ;;  %v4514_v0 = vpop.f32.mrb[24].mxu0  ;;  %v1933_v46 = vld [vmem:[#allocation3 + $0x38] sm:$0xff] }
 0x1ae   : > { %1919 = vst.msk [vmem:[#allocation3 + $0x58] sm:$0xff] %vm1056_vm1, %v1901_v59  ;;  %v1623_v2 = vadd.f32 %v4486_v63, %v1375_v62  ;;  %v1597_v4 = vpop.f32.mrb[25].mxu1  ;;  %v1871_v5 = vpop.f32.mrb[25].mxu0  ;;  %v1932_v50 = vld [vmem:[#allocation3 + $0x30] sm:$0xff] }
 0x1af   : > { %1918 = vst.msk [vmem:[#allocation3 + $0x50] sm:$0xff] %vm1056_vm1, %v1900_v61  ;;  %v1622_v6 = vadd.f32 %v1597_v4, %v1374_v3  ;;  %v1655_v7 = vld [vmem:[#allocation3 + $0x68] sm:$0xff] }
 0x1b0   : > { %1641 = vst.msk [vmem:[#allocation3 + $0x88] sm:$0xff] %vm1056_vm1, %v1623_v2  ;;  %v1903_v8 = vadd.f32 %v4511_v52, %v1655_v7  ;;  %v1654_v10 = vld [vmem:[#allocation3 + $0x60] sm:$0xff] }
 0x1b1   : > { %1640 = vst.msk [vmem:[#allocation3 + $0x80] sm:$0xff] %vm1056_vm1, %v1622_v6  ;;  %v1902_v13 = vadd.f32 %v1861_v56, %v1654_v10  ;;  %v4524_v16 = vpop.f32.mrb[26].mxu1  ;;  %v4517_v17 = vpop.f32.mrb[26].mxu0  ;;  %v1935_v58 = vld [vmem:[#allocation3 + $0x48] sm:$0xff] }
 0x1b2   : > { %1921 = vst.msk [vmem:[#allocation3 + $0x68] sm:$0xff] %vm1056_vm1, %v1903_v8  ;;  %v2175_v18 = vadd.f32 %v4524_v16, %v1927_v15  ;;  %v2085_v9 = vpop.f32.mrb[27].mxu1  ;;  %v1881_v24 = vpop.f32.mrb[27].mxu0  ;;  %v1934_v62 = vld [vmem:[#allocation3 + $0x40] sm:$0xff] }
 0x1b3   : > { %1920 = vst.msk [vmem:[#allocation3 + $0x60] sm:$0xff] %vm1056_vm1, %v1902_v13  ;;  %v2174_v25 = vadd.f32 %v2085_v9, %v1926_v20  ;;  %v1657_v26 = vld [vmem:[#allocation3 + $0x78] sm:$0xff] }
 0x1b4   : > { %2193 = vst.msk [vmem:[#allocation3 + $0x8] sm:$0xff] %vm1056_vm1, %v2175_v18  ;;  %v1905_v27 = vadd.f32 %v4514_v0, %v1657_v26  ;;  %v1656_v28 = vld [vmem:[#allocation3 + $0x70] sm:$0xff] }
 0x1b5   : > { %2192 = vst.msk [vmem:[#allocation3] sm:$0xff] %vm1056_vm1, %v2174_v25  ;;  %v1904_v29 = vadd.f32 %v1871_v5, %v1656_v28  ;;  %v4527_v32 = vpop.f32.mrb[28].mxu1  ;;  %v4555_v1 = vpop.f32.mrb[28].mxu0  ;;  %v1937_v7 = vld [vmem:[#allocation3 + $0x58] sm:$0xff] }
 0x1b6   : > { %1923 = vst.msk [vmem:[#allocation3 + $0x78] sm:$0xff] %vm1056_vm1, %v1905_v27  ;;  %v2177_v11 = vadd.f32 %v4527_v32, %v1929_v30  ;;  %v2095_v31 = vpop.f32.mrb[29].mxu1  ;;  %v2369_v34 = vpop.f32.mrb[29].mxu0  ;;  %v1936_v15 = vld [vmem:[#allocation3 + $0x50] sm:$0xff] }
 0x1b7   : > { %1922 = vst.msk [vmem:[#allocation3 + $0x70] sm:$0xff] %vm1056_vm1, %v1904_v29  ;;  %v2176_v35 = vadd.f32 %v2095_v31, %v1928_v33  ;;  %v1659_v12 = vld [vmem:[#allocation3 + $0x88] sm:$0xff] }
 0x1b8   : > { %2195 = vst.msk [vmem:[#allocation3 + $0x18] sm:$0xff] %vm1056_vm1, %v2177_v11  ;;  %v1907_v36 = vadd.f32 %v4517_v17, %v1659_v12  ;;  %v1658_v37 = vld [vmem:[#allocation3 + $0x80] sm:$0xff] }
 0x1b9   : > { %2194 = vst.msk [vmem:[#allocation3 + $0x10] sm:$0xff] %vm1056_vm1, %v2176_v35  ;;  %v1906_v14 = vadd.f32 %v1881_v24, %v1658_v37  ;;  %v4530_v38 = vpop.f32.mrb[30].mxu1  ;;  %v4558_v39 = vpop.f32.mrb[30].mxu0  ;;  %v1939_v26 = vld [vmem:[#allocation3 + $0x68] sm:$0xff] }
 0x1ba   : > { %1925 = vst.msk [vmem:[#allocation3 + $0x88] sm:$0xff] %vm1056_vm1, %v1907_v36  ;;  %v2179_v40 = vadd.f32 %v4530_v38, %v1931_v21  ;;  %v2105_v42 = vpop.f32.mrb[31].mxu1  ;;  %v2379_v43 = vpop.f32.mrb[31].mxu0  ;;  %v1938_v30 = vld [vmem:[#allocation3 + $0x60] sm:$0xff] }
 0x1bb   : > { %1924 = vst.msk [vmem:[#allocation3 + $0x80] sm:$0xff] %vm1056_vm1, %v1906_v14  ;;  %v2178_v22 = vadd.f32 %v2105_v42, %v1930_v41  ;;  %v2211_v44 = vld [vmem:[#allocation3 + $0x8] sm:$0xff] }
 0x1bc   : > { %2197 = vst.msk [vmem:[#allocation3 + $0x28] sm:$0xff] %vm1056_vm1, %v2179_v40  ;;  %v2459_v19 = vadd.f32 %v4555_v1, %v2211_v44  ;;  %v2210_v23 = vld [vmem:[#allocation3] sm:$0xff] }
 0x1bd   : > { %2196 = vst.msk [vmem:[#allocation3 + $0x20] sm:$0xff] %vm1056_vm1, %v2178_v22  ;;  %v2458_v45 = vadd.f32 %v2369_v34, %v2210_v23  ;;  %v4533_v47 = vpop.f32.mrb[32].mxu1  ;;  %v4561_v48 = vpop.f32.mrb[32].mxu0  ;;  %v1941_v12 = vld [vmem:[#allocation3 + $0x78] sm:$0xff] }
 0x1be   : > { %2477 = vst.msk [vmem:[#allocation3 + $0x8] sm:$0xff] %vm1056_vm1, %v2459_v19  ;;  %v2181_v49 = vadd.f32 %v4533_v47, %v1933_v46  ;;  %v2115_v51 = vpop.f32.mrb[33].mxu1  ;;  %v2389_v52 = vpop.f32.mrb[33].mxu0  ;;  %v1940_v21 = vld [vmem:[#allocation3 + $0x70] sm:$0xff] }
 0x1bf   : > { %2476 = vst.msk [vmem:[#allocation3] sm:$0xff] %vm1056_vm1, %v2458_v45  ;;  %v2180_v53 = vadd.f32 %v2115_v51, %v1932_v50  ;;  %v2213_v54 = vld [vmem:[#allocation3 + $0x18] sm:$0xff] }
 0x1c0   : > { %2199 = vst.msk [vmem:[#allocation3 + $0x38] sm:$0xff] %vm1056_vm1, %v2181_v49  ;;  %v2461_v55 = vadd.f32 %v4558_v39, %v2213_v54  ;;  %v2212_v56 = vld [vmem:[#allocation3 + $0x10] sm:$0xff] }
 0x1c1   : > { %2198 = vst.msk [vmem:[#allocation3 + $0x30] sm:$0xff] %vm1056_vm1, %v2180_v53  ;;  %v2460_v57 = vadd.f32 %v2379_v43, %v2212_v56  ;;  %v4536_v59 = vpop.f32.mrb[34].mxu1  ;;  %v4564_v60 = vpop.f32.mrb[34].mxu0  ;;  %v1943_v44 = vld [vmem:[#allocation3 + $0x88] sm:$0xff] }
 0x1c2   : > { %2479 = vst.msk [vmem:[#allocation3 + $0x18] sm:$0xff] %vm1056_vm1, %v2461_v55  ;;  %v2183_v61 = vadd.f32 %v4536_v59, %v1935_v58  ;;  %v2125_v63 = vpop.f32.mrb[35].mxu1  ;;  %v2399_v0 = vpop.f32.mrb[35].mxu0  ;;  %v1942_v46 = vld [vmem:[#allocation3 + $0x80] sm:$0xff] }
 0x1c3   : > { %2478 = vst.msk [vmem:[#allocation3 + $0x10] sm:$0xff] %vm1056_vm1, %v2460_v57  ;;  %v2182_v2 = vadd.f32 %v2125_v63, %v1934_v62  ;;  %v2215_v3 = vld [vmem:[#allocation3 + $0x28] sm:$0xff] }
 0x1c4   : > { %2201 = vst.msk [vmem:[#allocation3 + $0x48] sm:$0xff] %vm1056_vm1, %v2183_v61  ;;  %v2463_v4 = vadd.f32 %v4561_v48, %v2215_v3  ;;  %v2214_v5 = vld [vmem:[#allocation3 + $0x20] sm:$0xff] }
 0x1c5   : > { %2200 = vst.msk [vmem:[#allocation3 + $0x40] sm:$0xff] %vm1056_vm1, %v2182_v2  ;;  %v2462_v6 = vadd.f32 %v2389_v52, %v2214_v5  ;;  %v4539_v8 = vpop.f32.mrb[36].mxu1  ;;  %v4567_v10 = vpop.f32.mrb[36].mxu0  ;;  %v2495_v54 = vld [vmem:[#allocation3 + $0x8] sm:$0xff] }
 0x1c6   : > { %2481 = vst.msk [vmem:[#allocation3 + $0x28] sm:$0xff] %vm1056_vm1, %v2463_v4  ;;  %v2185_v13 = vadd.f32 %v4539_v8, %v1937_v7  ;;  %v2135_v16 = vpop.f32.mrb[37].mxu1  ;;  %v2409_v17 = vpop.f32.mrb[37].mxu0  ;;  %v2494_v58 = vld [vmem:[#allocation3] sm:$0xff] }
 0x1c7   : > { %2480 = vst.msk [vmem:[#allocation3 + $0x20] sm:$0xff] %vm1056_vm1, %v2462_v6  ;;  %v2184_v18 = vadd.f32 %v2135_v16, %v1936_v15  ;;  %v2217_v20 = vld [vmem:[#allocation3 + $0x38] sm:$0xff] }
 0x1c8   : > { %2203 = vst.msk [vmem:[#allocation3 + $0x58] sm:$0xff] %vm1056_vm1, %v2185_v13  ;;  %v2465_v9 = vadd.f32 %v4564_v60, %v2217_v20  ;;  %v2216_v24 = vld [vmem:[#allocation3 + $0x30] sm:$0xff] }
 0x1c9   : > { %2202 = vst.msk [vmem:[#allocation3 + $0x50] sm:$0xff] %vm1056_vm1, %v2184_v18  ;;  %v2464_v25 = vadd.f32 %v2399_v0, %v2216_v24  ;;  %v4542_v27 = vpop.f32.mrb[38].mxu1  ;;  %v4570_v28 = vpop.f32.mrb[38].mxu0  ;;  %v2497_v3 = vld [vmem:[#allocation3 + $0x18] sm:$0xff] }
 0x1ca   : > { %2483 = vst.msk [vmem:[#allocation3 + $0x38] sm:$0xff] %vm1056_vm1, %v2465_v9  ;;  %v2187_v29 = vadd.f32 %v4542_v27, %v1939_v26  ;;  %v2145_v32 = vpop.f32.mrb[39].mxu1  ;;  %v2419_v1 = vpop.f32.mrb[39].mxu0  ;;  %v2496_v7 = vld [vmem:[#allocation3 + $0x10] sm:$0xff] }
 0x1cb   : > { %2482 = vst.msk [vmem:[#allocation3 + $0x30] sm:$0xff] %vm1056_vm1, %v2464_v25  ;;  %v2186_v11 = vadd.f32 %v2145_v32, %v1938_v30  ;;  %v2219_v33 = vld [vmem:[#allocation3 + $0x48] sm:$0xff] }
 0x1cc   : > { %2205 = vst.msk [vmem:[#allocation3 + $0x68] sm:$0xff] %vm1056_vm1, %v2187_v29  ;;  %v2467_v31 = vadd.f32 %v4567_v10, %v2219_v33  ;;  %v2218_v34 = vld [vmem:[#allocation3 + $0x40] sm:$0xff] }
 0x1cd   : > { %2204 = vst.msk [vmem:[#allocation3 + $0x60] sm:$0xff] %vm1056_vm1, %v2186_v11  ;;  %v2466_v35 = vadd.f32 %v2409_v17, %v2218_v34  ;;  %v4545_v36 = vpop.f32.mrb[40].mxu1  ;;  %v4573_v37 = vpop.f32.mrb[40].mxu0  ;;  %v2499_v20 = vld [vmem:[#allocation3 + $0x28] sm:$0xff] }
 0x1ce   : > { %2485 = vst.msk [vmem:[#allocation3 + $0x48] sm:$0xff] %vm1056_vm1, %v2467_v31  ;;  %v2189_v14 = vadd.f32 %v4545_v36, %v1941_v12  ;;  %v2155_v38 = vpop.f32.mrb[41].mxu1  ;;  %v2429_v39 = vpop.f32.mrb[41].mxu0  ;;  %v2498_v26 = vld [vmem:[#allocation3 + $0x20] sm:$0xff] }
 0x1cf   : > { %2484 = vst.msk [vmem:[#allocation3 + $0x40] sm:$0xff] %vm1056_vm1, %v2466_v35  ;;  %v2188_v40 = vadd.f32 %v2155_v38, %v1940_v21  ;;  %v2221_v41 = vld [vmem:[#allocation3 + $0x58] sm:$0xff] }
 0x1d0   : > { %2207 = vst.msk [vmem:[#allocation3 + $0x78] sm:$0xff] %vm1056_vm1, %v2189_v14  ;;  %v2469_v42 = vadd.f32 %v4570_v28, %v2221_v41  ;;  %v2220_v43 = vld [vmem:[#allocation3 + $0x50] sm:$0xff] }
 0x1d1   : > { %2206 = vst.msk [vmem:[#allocation3 + $0x70] sm:$0xff] %vm1056_vm1, %v2188_v40  ;;  %v2468_v22 = vadd.f32 %v2419_v1, %v2220_v43  ;;  %v4548_v19 = vpop.f32.mrb[42].mxu1  ;;  %v4576_v23 = vpop.f32.mrb[42].mxu0  ;;  %v2501_v33 = vld [vmem:[#allocation3 + $0x38] sm:$0xff] }
 0x1d2   : > { %2487 = vst.msk [vmem:[#allocation3 + $0x58] sm:$0xff] %vm1056_vm1, %v2469_v42  ;;  %v2191_v45 = vadd.f32 %v4548_v19, %v1943_v44  ;;  %v2165_v47 = vpop.f32.mrb[43].mxu1  ;;  %v2439_v48 = vpop.f32.mrb[43].mxu0  ;;  %v2500_v12 = vld [vmem:[#allocation3 + $0x30] sm:$0xff] }
 0x1d3   : > { %2486 = vst.msk [vmem:[#allocation3 + $0x50] sm:$0xff] %vm1056_vm1, %v2468_v22  ;;  %v2190_v49 = vadd.f32 %v2165_v47, %v1942_v46  ;;  %v2223_v50 = vld [vmem:[#allocation3 + $0x68] sm:$0xff] }
 0x1d4   : > { %2209 = vst.msk [vmem:[#allocation3 + $0x88] sm:$0xff] %vm1056_vm1, %v2191_v45  ;;  %v2471_v51 = vadd.f32 %v4573_v37, %v2223_v50  ;;  %v2222_v52 = vld [vmem:[#allocation3 + $0x60] sm:$0xff] }
 0x1d5   : > { %2208 = vst.msk [vmem:[#allocation3 + $0x80] sm:$0xff] %vm1056_vm1, %v2190_v49  ;;  %v2470_v53 = vadd.f32 %v2429_v39, %v2222_v52  ;;  %v4586_v55 = vpop.f32.mrb[44].mxu1  ;;  %v4579_v56 = vpop.f32.mrb[44].mxu0  ;;  %v2503_v41 = vld [vmem:[#allocation3 + $0x48] sm:$0xff] }
 0x1d6   : > { %2489 = vst.msk [vmem:[#allocation3 + $0x68] sm:$0xff] %vm1056_vm1, %v2471_v51  ;;  %v2743_v57 = vadd.f32 %v4586_v55, %v2495_v54  ;;  %v2653_v59 = vpop.f32.mrb[45].mxu1  ;;  %v2449_v60 = vpop.f32.mrb[45].mxu0  ;;  %v2502_v44 = vld [vmem:[#allocation3 + $0x40] sm:$0xff] }
 0x1d7   : > { %2488 = vst.msk [vmem:[#allocation3 + $0x60] sm:$0xff] %vm1056_vm1, %v2470_v53  ;;  %v2742_v61 = vadd.f32 %v2653_v59, %v2494_v58  ;;  %v2225_v62 = vld [vmem:[#allocation3 + $0x78] sm:$0xff] }
 0x1d8   : > { %2761 = vst.msk [vmem:[#allocation3 + $0x8] sm:$0xff] %vm1056_vm1, %v2743_v57  ;;  %v2473_v63 = vadd.f32 %v4576_v23, %v2225_v62  ;;  %v2224_v0 = vld [vmem:[#allocation3 + $0x70] sm:$0xff] }
 0x1d9   : > { %2760 = vst.msk [vmem:[#allocation3] sm:$0xff] %vm1056_vm1, %v2742_v61  ;;  %v2472_v2 = vadd.f32 %v2439_v48, %v2224_v0  ;;  %v4589_v4 = vpop.f32.mrb[46].mxu1  ;;  %v4617_v5 = vpop.f32.mrb[46].mxu0  ;;  %v2505_v50 = vld [vmem:[#allocation3 + $0x58] sm:$0xff] }
 0x1da   : > { %2491 = vst.msk [vmem:[#allocation3 + $0x78] sm:$0xff] %vm1056_vm1, %v2473_v63  ;;  %v2745_v6 = vadd.f32 %v4589_v4, %v2497_v3  ;;  %v2663_v8 = vpop.f32.mrb[47].mxu1  ;;  %v2937_v10 = vpop.f32.mrb[47].mxu0  ;;  %v2504_v54 = vld [vmem:[#allocation3 + $0x50] sm:$0xff] }
 0x1db   : > { %2490 = vst.msk [vmem:[#allocation3 + $0x70] sm:$0xff] %vm1056_vm1, %v2472_v2  ;;  %v2744_v13 = vadd.f32 %v2663_v8, %v2496_v7  ;;  %v2227_v15 = vld [vmem:[#allocation3 + $0x88] sm:$0xff] }
 0x1dc   : > { %2763 = vst.msk [vmem:[#allocation3 + $0x18] sm:$0xff] %vm1056_vm1, %v2745_v6  ;;  %v2475_v16 = vadd.f32 %v4579_v56, %v2227_v15  ;;  %v2226_v17 = vld [vmem:[#allocation3 + $0x80] sm:$0xff] }
 0x1dd   : > { %2762 = vst.msk [vmem:[#allocation3 + $0x10] sm:$0xff] %vm1056_vm1, %v2744_v13  ;;  %v2474_v18 = vadd.f32 %v2449_v60, %v2226_v17  ;;  %v4592_v9 = vpop.f32.mrb[48].mxu1  ;;  %v4620_v24 = vpop.f32.mrb[48].mxu0  ;;  %v2507_v62 = vld [vmem:[#allocation3 + $0x68] sm:$0xff] }
 0x1de   : > { %2493 = vst.msk [vmem:[#allocation3 + $0x88] sm:$0xff] %vm1056_vm1, %v2475_v16  ;;  %v2747_v25 = vadd.f32 %v4592_v9, %v2499_v20  ;;  %v2673_v27 = vpop.f32.mrb[49].mxu1  ;;  %v2947_v28 = vpop.f32.mrb[49].mxu0  ;;  %v2506_v3 = vld [vmem:[#allocation3 + $0x60] sm:$0xff] }
 0x1df   : > { %2492 = vst.msk [vmem:[#allocation3 + $0x80] sm:$0xff] %vm1056_vm1, %v2474_v18  ;;  %v2746_v29 = vadd.f32 %v2673_v27, %v2498_v26  ;;  %v2779_v30 = vld [vmem:[#allocation3 + $0x8] sm:$0xff] }
 0x1e0   : > { %2765 = vst.msk [vmem:[#allocation3 + $0x28] sm:$0xff] %vm1056_vm1, %v2747_v25  ;;  %v3027_v32 = vadd.f32 %v4617_v5, %v2779_v30  ;;  %v2778_v1 = vld [vmem:[#allocation3] sm:$0xff] }
 0x1e1   : > { %2764 = vst.msk [vmem:[#allocation3 + $0x20] sm:$0xff] %vm1056_vm1, %v2746_v29  ;;  %v3026_v11 = vadd.f32 %v2937_v10, %v2778_v1  ;;  %v4595_v31 = vpop.f32.mrb[50].mxu1  ;;  %v4623_v34 = vpop.f32.mrb[50].mxu0  ;;  %v2509_v15 = vld [vmem:[#allocation3 + $0x78] sm:$0xff] }
 0x1e2   : > { %3045 = vst.msk [vmem:[#allocation3 + $0x8] sm:$0xff] %vm1056_vm1, %v3027_v32  ;;  %v2749_v35 = vadd.f32 %v4595_v31, %v2501_v33  ;;  %v2683_v36 = vpop.f32.mrb[51].mxu1  ;;  %v2957_v37 = vpop.f32.mrb[51].mxu0  ;;  %v2508_v20 = vld [vmem:[#allocation3 + $0x70] sm:$0xff] }
 0x1e3   : > { %3044 = vst.msk [vmem:[#allocation3] sm:$0xff] %vm1056_vm1, %v3026_v11  ;;  %v2748_v14 = vadd.f32 %v2683_v36, %v2500_v12  ;;  %v2781_v21 = vld [vmem:[#allocation3 + $0x18] sm:$0xff] }
 0x1e4   : > { %2767 = vst.msk [vmem:[#allocation3 + $0x38] sm:$0xff] %vm1056_vm1, %v2749_v35  ;;  %v3029_v38 = vadd.f32 %v4620_v24, %v2781_v21  ;;  %v2780_v39 = vld [vmem:[#allocation3 + $0x10] sm:$0xff] }
 0x1e5   : > { %2766 = vst.msk [vmem:[#allocation3 + $0x30] sm:$0xff] %vm1056_vm1, %v2748_v14  ;;  %v3028_v40 = vadd.f32 %v2947_v28, %v2780_v39  ;;  %v4598_v42 = vpop.f32.mrb[52].mxu1  ;;  %v4626_v43 = vpop.f32.mrb[52].mxu0  ;;  %v2511_v30 = vld [vmem:[#allocation3 + $0x88] sm:$0xff] }
 0x1e6   : > { %3047 = vst.msk [vmem:[#allocation3 + $0x18] sm:$0xff] %vm1056_vm1, %v3029_v38  ;;  %v2751_v22 = vadd.f32 %v4598_v42, %v2503_v41  ;;  %v2693_v19 = vpop.f32.mrb[53].mxu1  ;;  %v2967_v23 = vpop.f32.mrb[53].mxu0  ;;  %v2510_v33 = vld [vmem:[#allocation3 + $0x80] sm:$0xff] }
 0x1e7   : > { %3046 = vst.msk [vmem:[#allocation3 + $0x10] sm:$0xff] %vm1056_vm1, %v3028_v40  ;;  %v2750_v45 = vadd.f32 %v2693_v19, %v2502_v44  ;;  %v2783_v46 = vld [vmem:[#allocation3 + $0x28] sm:$0xff] }
 0x1e8   : > { %2769 = vst.msk [vmem:[#allocation3 + $0x48] sm:$0xff] %vm1056_vm1, %v2751_v22  ;;  %v3031_v47 = vadd.f32 %v4623_v34, %v2783_v46  ;;  %v2782_v48 = vld [vmem:[#allocation3 + $0x20] sm:$0xff] }
 0x1e9   : > { %2768 = vst.msk [vmem:[#allocation3 + $0x40] sm:$0xff] %vm1056_vm1, %v2750_v45  ;;  %v3030_v49 = vadd.f32 %v2957_v37, %v2782_v48  ;;  %v4601_v51 = vpop.f32.mrb[54].mxu1  ;;  %v4629_v52 = vpop.f32.mrb[54].mxu0  ;;  %v3063_v21 = vld [vmem:[#allocation3 + $0x8] sm:$0xff] }
 0x1ea   : > { %3049 = vst.msk [vmem:[#allocation3 + $0x28] sm:$0xff] %vm1056_vm1, %v3031_v47  ;;  %v2753_v53 = vadd.f32 %v4601_v51, %v2505_v50  ;;  %v2703_v55 = vpop.f32.mrb[55].mxu1  ;;  %v2977_v56 = vpop.f32.mrb[55].mxu0  ;;  %v3062_v41 = vld [vmem:[#allocation3] sm:$0xff] }
 0x1eb   : > { %3048 = vst.msk [vmem:[#allocation3 + $0x20] sm:$0xff] %vm1056_vm1, %v3030_v49  ;;  %v2752_v57 = vadd.f32 %v2703_v55, %v2504_v54  ;;  %v2785_v58 = vld [vmem:[#allocation3 + $0x38] sm:$0xff] }
 0x1ec   : > { %2771 = vst.msk [vmem:[#allocation3 + $0x58] sm:$0xff] %vm1056_vm1, %v2753_v53  ;;  %v3033_v59 = vadd.f32 %v4626_v43, %v2785_v58  ;;  %v2784_v60 = vld [vmem:[#allocation3 + $0x30] sm:$0xff] }
 0x1ed   : > { %2770 = vst.msk [vmem:[#allocation3 + $0x50] sm:$0xff] %vm1056_vm1, %v2752_v57  ;;  %v3032_v61 = vadd.f32 %v2967_v23, %v2784_v60  ;;  %v4604_v63 = vpop.f32.mrb[56].mxu1  ;;  %v4632_v0 = vpop.f32.mrb[56].mxu0  ;;  %v3065_v46 = vld [vmem:[#allocation3 + $0x18] sm:$0xff] }
 0x1ee   : > { %3051 = vst.msk [vmem:[#allocation3 + $0x38] sm:$0xff] %vm1056_vm1, %v3033_v59  ;;  %v2755_v2 = vadd.f32 %v4604_v63, %v2507_v62  ;;  %v2713_v4 = vpop.f32.mrb[57].mxu1  ;;  %v2987_v5 = vpop.f32.mrb[57].mxu0  ;;  %v3064_v50 = vld [vmem:[#allocation3 + $0x10] sm:$0xff] }
 0x1ef   : > { %3050 = vst.msk [vmem:[#allocation3 + $0x30] sm:$0xff] %vm1056_vm1, %v3032_v61  ;;  %v2754_v6 = vadd.f32 %v2713_v4, %v2506_v3  ;;  %v2787_v7 = vld [vmem:[#allocation3 + $0x48] sm:$0xff] }
 0x1f0   : > { %2773 = vst.msk [vmem:[#allocation3 + $0x68] sm:$0xff] %vm1056_vm1, %v2755_v2  ;;  %v3035_v8 = vadd.f32 %v4629_v52, %v2787_v7  ;;  %v2786_v10 = vld [vmem:[#allocation3 + $0x40] sm:$0xff] }
 0x1f1   : > { %2772 = vst.msk [vmem:[#allocation3 + $0x60] sm:$0xff] %vm1056_vm1, %v2754_v6  ;;  %v3034_v13 = vadd.f32 %v2977_v56, %v2786_v10  ;;  %v4607_v16 = vpop.f32.mrb[58].mxu1  ;;  %v4635_v17 = vpop.f32.mrb[58].mxu0  ;;  %v3067_v58 = vld [vmem:[#allocation3 + $0x28] sm:$0xff] }
 0x1f2   : > { %3053 = vst.msk [vmem:[#allocation3 + $0x48] sm:$0xff] %vm1056_vm1, %v3035_v8  ;;  %v2757_v18 = vadd.f32 %v4607_v16, %v2509_v15  ;;  %v2723_v9 = vpop.f32.mrb[59].mxu1  ;;  %v2997_v24 = vpop.f32.mrb[59].mxu0  ;;  %v3066_v62 = vld [vmem:[#allocation3 + $0x20] sm:$0xff] }
 0x1f3   : > { %3052 = vst.msk [vmem:[#allocation3 + $0x40] sm:$0xff] %vm1056_vm1, %v3034_v13  ;;  %v2756_v25 = vadd.f32 %v2723_v9, %v2508_v20  ;;  %v2789_v26 = vld [vmem:[#allocation3 + $0x58] sm:$0xff] }
 0x1f4   : > { %2775 = vst.msk [vmem:[#allocation3 + $0x78] sm:$0xff] %vm1056_vm1, %v2757_v18  ;;  %v3037_v27 = vadd.f32 %v4632_v0, %v2789_v26  ;;  %v2788_v28 = vld [vmem:[#allocation3 + $0x50] sm:$0xff] }
 0x1f5   : > { %2774 = vst.msk [vmem:[#allocation3 + $0x70] sm:$0xff] %vm1056_vm1, %v2756_v25  ;;  %v3036_v29 = vadd.f32 %v2987_v5, %v2788_v28  ;;  %v4610_v32 = vpop.f32.mrb[60].mxu1  ;;  %v4638_v1 = vpop.f32.mrb[60].mxu0  ;;  %v3069_v7 = vld [vmem:[#allocation3 + $0x38] sm:$0xff] }
 0x1f6   : > { %3055 = vst.msk [vmem:[#allocation3 + $0x58] sm:$0xff] %vm1056_vm1, %v3037_v27  ;;  %v2759_v11 = vadd.f32 %v4610_v32, %v2511_v30  ;;  %v2733_v31 = vpop.f32.mrb[61].mxu1  ;;  %v3007_v34 = vpop.f32.mrb[61].mxu0  ;;  %v3068_v15 = vld [vmem:[#allocation3 + $0x30] sm:$0xff] }
 0x1f7   : > { %3054 = vst.msk [vmem:[#allocation3 + $0x50] sm:$0xff] %vm1056_vm1, %v3036_v29  ;;  %v2758_v35 = vadd.f32 %v2733_v31, %v2510_v33  ;;  %v2791_v12 = vld [vmem:[#allocation3 + $0x68] sm:$0xff] }
 0x1f8   : > { %2777 = vst.msk [vmem:[#allocation3 + $0x88] sm:$0xff] %vm1056_vm1, %v2759_v11  ;;  %v3039_v36 = vadd.f32 %v4635_v17, %v2791_v12  ;;  %v2790_v37 = vld [vmem:[#allocation3 + $0x60] sm:$0xff] }
 0x1f9   : > { %2776 = vst.msk [vmem:[#allocation3 + $0x80] sm:$0xff] %vm1056_vm1, %v2758_v35  ;;  %v3038_v14 = vadd.f32 %v2997_v24, %v2790_v37  ;;  %v4648_v38 = vpop.f32.mrb[62].mxu1  ;;  %v4641_v39 = vpop.f32.mrb[62].mxu0  ;;  %v3071_v26 = vld [vmem:[#allocation3 + $0x48] sm:$0xff]  ;;  %v5783_v11 = vld [vmem:[%s5949_s2] ss:$0 sm:$0xff] }
 0x1fa   : > { %3057 = vst.msk [vmem:[#allocation3 + $0x68] sm:$0xff] %vm1056_vm1, %v3039_v36  ;;  %v3311_v40 = vadd.f32 %v4648_v38, %v3063_v21  ;;  %v3221_v42 = vpop.f32.mrb[63].mxu1  ;;  %v3017_v43 = vpop.f32.mrb[63].mxu0  ;;  %v3070_v30 = vld [vmem:[#allocation3 + $0x40] sm:$0xff] }
 0x1fb   : > { %3056 = vst.msk [vmem:[#allocation3 + $0x60] sm:$0xff] %vm1056_vm1, %v3038_v14  ;;  %v3310_v22 = vadd.f32 %v3221_v42, %v3062_v41  ;;  %v2793_v44 = vld [vmem:[#allocation3 + $0x78] sm:$0xff] }
 0x1fc   : > { %3329 = vst.msk [vmem:[#allocation3 + $0x8] sm:$0xff] %vm1056_vm1, %v3311_v40  ;;  %v3041_v19 = vadd.f32 %v4638_v1, %v2793_v44  ;;  %v2792_v23 = vld [vmem:[#allocation3 + $0x70] sm:$0xff] }
 0x1fd   : > { %3328 = vst.msk [vmem:[#allocation3] sm:$0xff] %vm1056_vm1, %v3310_v22  ;;  %v3040_v45 = vadd.f32 %v3007_v34, %v2792_v23  ;;  %v4651_v47 = vpop.f32.mrb[64].mxu1  ;;  %v4679_v48 = vpop.f32.mrb[64].mxu0  ;;  %v3073_v37 = vld [vmem:[#allocation3 + $0x58] sm:$0xff] }
 0x1fe   : > { %3059 = vst.msk [vmem:[#allocation3 + $0x78] sm:$0xff] %vm1056_vm1, %v3041_v19  ;;  %v3313_v49 = vadd.f32 %v4651_v47, %v3065_v46  ;;  %v3231_v51 = vpop.f32.mrb[65].mxu1  ;;  %v3505_v52 = vpop.f32.mrb[65].mxu0  ;;  %v3072_v41 = vld [vmem:[#allocation3 + $0x50] sm:$0xff] }
 0x1ff   : > { %3058 = vst.msk [vmem:[#allocation3 + $0x70] sm:$0xff] %vm1056_vm1, %v3040_v45  ;;  %v3312_v53 = vadd.f32 %v3231_v51, %v3064_v50  ;;  %v2795_v54 = vld [vmem:[#allocation3 + $0x88] sm:$0xff] }
 0x200   : > { %3331 = vst.msk [vmem:[#allocation3 + $0x18] sm:$0xff] %vm1056_vm1, %v3313_v49  ;;  %v3043_v55 = vadd.f32 %v4641_v39, %v2795_v54  ;;  %v2794_v56 = vld [vmem:[#allocation3 + $0x80] sm:$0xff] }
 0x201   : > { %3330 = vst.msk [vmem:[#allocation3 + $0x10] sm:$0xff] %vm1056_vm1, %v3312_v53  ;;  %v3042_v57 = vadd.f32 %v3017_v43, %v2794_v56  ;;  %v4654_v59 = vpop.f32.mrb[66].mxu1  ;;  %v4682_v60 = vpop.f32.mrb[66].mxu0  ;;  %v3075_v49 = vld [vmem:[#allocation3 + $0x68] sm:$0xff] }
 0x202   : > { %3061 = vst.msk [vmem:[#allocation3 + $0x88] sm:$0xff] %vm1056_vm1, %v3043_v55  ;;  %v3315_v61 = vadd.f32 %v4654_v59, %v3067_v58  ;;  %v3241_v63 = vpop.f32.mrb[67].mxu1  ;;  %v3515_v0 = vpop.f32.mrb[67].mxu0  ;;  %v3074_v56 = vld [vmem:[#allocation3 + $0x60] sm:$0xff] }
 0x203   : > { %3060 = vst.msk [vmem:[#allocation3 + $0x80] sm:$0xff] %vm1056_vm1, %v3042_v57  ;;  %v3314_v2 = vadd.f32 %v3241_v63, %v3066_v62  ;;  %v3347_v3 = vld [vmem:[#allocation3 + $0x8] sm:$0xff] }
 0x204   : > { %3333 = vst.msk [vmem:[#allocation3 + $0x28] sm:$0xff] %vm1056_vm1, %v3315_v61  ;;  %v3595_v4 = vadd.f32 %v4679_v48, %v3347_v3  ;;  %v3346_v5 = vld [vmem:[#allocation3] sm:$0xff] }
 0x205   : > { %3332 = vst.msk [vmem:[#allocation3 + $0x20] sm:$0xff] %vm1056_vm1, %v3314_v2  ;;  %v3594_v6 = vadd.f32 %v3505_v52, %v3346_v5  ;;  %v4657_v8 = vpop.f32.mrb[68].mxu1  ;;  %v4685_v10 = vpop.f32.mrb[68].mxu0  ;;  %v3077_v5 = vld [vmem:[#allocation3 + $0x78] sm:$0xff] }
 0x206   : > { %3613 = vst.msk [vmem:[#allocation3 + $0x8] sm:$0xff] %vm1056_vm1, %v3595_v4  ;;  %v3317_v13 = vadd.f32 %v4657_v8, %v3069_v7  ;;  %v3251_v16 = vpop.f32.mrb[69].mxu1  ;;  %v3525_v17 = vpop.f32.mrb[69].mxu0 }
 0x207   : > { %3612 = vst.msk [vmem:[#allocation3] sm:$0xff] %vm1056_vm1, %v3594_v6  ;;  %v3316_v18 = vadd.f32 %v3251_v16, %v3068_v15  ;;  %v3349_v20 = vld [vmem:[#allocation3 + $0x18] sm:$0xff] }
 0x208   : > { %3335 = vst.msk [vmem:[#allocation3 + $0x38] sm:$0xff] %vm1056_vm1, %v3317_v13  ;;  %v3597_v9 = vadd.f32 %v4682_v60, %v3349_v20  ;;  %v3348_v24 = vld [vmem:[#allocation3 + $0x10] sm:$0xff] }
 0x209   : > { %3334 = vst.msk [vmem:[#allocation3 + $0x30] sm:$0xff] %vm1056_vm1, %v3316_v18  ;;  %v3596_v25 = vadd.f32 %v3515_v0, %v3348_v24  ;;  %v4660_v27 = vpop.f32.mrb[70].mxu1  ;;  %v4688_v28 = vpop.f32.mrb[70].mxu0 }
 0x20a   : > { %3615 = vst.msk [vmem:[#allocation3 + $0x18] sm:$0xff] %vm1056_vm1, %v3597_v9  ;;  %v3319_v29 = vadd.f32 %v4660_v27, %v3071_v26  ;;  %v3261_v32 = vpop.f32.mrb[71].mxu1  ;;  %v3535_v1 = vpop.f32.mrb[71].mxu0 }
 0x20b   : > { %3614 = vst.msk [vmem:[#allocation3 + $0x10] sm:$0xff] %vm1056_vm1, %v3596_v25  ;;  %v3318_v33 = vadd.f32 %v3261_v32, %v3070_v30  ;;  %v3351_v31 = vld [vmem:[#allocation3 + $0x28] sm:$0xff] }
 0x20c   : > { %3337 = vst.msk [vmem:[#allocation3 + $0x48] sm:$0xff] %vm1056_vm1, %v3319_v29  ;;  %v3599_v34 = vadd.f32 %v4685_v10, %v3351_v31  ;;  %v3350_v35 = vld [vmem:[#allocation3 + $0x20] sm:$0xff] }
 0x20d   : > { %v3632_v12 = vld [vmem:[#allocation3 + $0x8] sm:$0xff]  ;;  %3336 = vst.msk [vmem:[#allocation3 + $0x40] sm:$0xff] %vm1056_vm1, %v3318_v33  ;;  %v3598_v36 = vadd.f32 %v3525_v17, %v3350_v35  ;;  %v4663_v14 = vpop.f32.mrb[72].mxu1  ;;  %v4691_v21 = vpop.f32.mrb[72].mxu0  ;;  %v3076_v17 = vld [vmem:[#allocation3 + $0x70] sm:$0xff] }
 0x20e   : > { %v3640_v38 = vadd.f32 %v5783_v11, %v3632_v12  ;;  %v3631_v39 = vld [vmem:[#allocation3] sm:$0xff]  ;;  %3617 = vst.msk [vmem:[#allocation3 + $0x28] sm:$0xff] %vm1056_vm1, %v3599_v34  ;;  %v3321_v40 = vadd.f32 %v4663_v14, %v3073_v37  ;;  %v3271_v42 = vpop.f32.mrb[73].mxu1  ;;  %v3545_v43 = vpop.f32.mrb[73].mxu0 }
 0x20f   : > { %v3639_v22 = vadd.f32 %v5783_v11, %v3631_v39  ;;  %3616 = vst.msk [vmem:[#allocation3 + $0x20] sm:$0xff] %vm1056_vm1, %v3598_v36  ;;  %v3320_v44 = vadd.f32 %v3271_v42, %v3072_v41  ;;  %v3353_v19 = vld [vmem:[#allocation3 + $0x38] sm:$0xff] }
 0x210   : > { %3642 = vst.msk [vmem:[%s5231_s12 + $0x8] sm:$0xff] %vm1056_vm1, %v3640_v38  ;;  %v3654_v23 = vmul.f32 %v3640_v38, %v3640_v38  ;;  %3339 = vst.msk [vmem:[#allocation3 + $0x58] sm:$0xff] %vm1056_vm1, %v3321_v40  ;;  %v3601_v45 = vadd.f32 %v4688_v28, %v3353_v19  ;;  %v3352_v46 = vld [vmem:[#allocation3 + $0x30] sm:$0xff]  ;;  %v3644_v52 = vsel %vm1056_vm1, %v3640_v38, 0.0 }
 0x211   : > { %3641 = vst.msk [vmem:[%s5231_s12] sm:$0xff] %vm1056_vm1, %v3639_v22  ;;  %v3653_v47 = vmul.f32 %v3639_v22, %v3639_v22  ;;  %3338 = vst.msk [vmem:[#allocation3 + $0x50] sm:$0xff] %vm1056_vm1, %v3320_v44  ;;  %v3600_v48 = vadd.f32 %v3535_v1, %v3352_v46  ;;  %v4666_v50 = vpop.f32.mrb[74].mxu1  ;;  %v4694_v51 = vpop.f32.mrb[74].mxu0  ;;  %v3643_v53 = vsel %vm1056_vm1, %v3639_v22, 0.0 }
 0x212   : > { %v3665_v54 = vld [vmem:[#allocation3 + $0x12] sm:$0xff]  ;;  %3619 = vst.msk [vmem:[#allocation3 + $0x38] sm:$0xff] %vm1056_vm1, %v3601_v45  ;;  %v3323_v55 = vadd.f32 %v4666_v50, %v3075_v49  ;;  %v3281_v57 = vpop.f32.mrb[75].mxu1  ;;  %v3555_v58 = vpop.f32.mrb[75].mxu0  ;;  %v3656_v59 = vsel %vm1056_vm1, %v3654_v23, 0.0  ;;  %v3645_v3 = vadd.f32 %v3644_v52, %v3643_v53 }
 0x213   : > { %v3655_v60 = vsel %vm1056_vm1, %v3653_v47, 0.0  ;;  %v3667_v61 = vadd.f32 %v5783_v11, %v3665_v54  ;;  %3618 = vst.msk [vmem:[#allocation3 + $0x30] sm:$0xff] %vm1056_vm1, %v3600_v48  ;;  %v3322_v62 = vadd.f32 %v3281_v57, %v3074_v56  ;;  %v3355_v63 = vld [vmem:[#allocation3 + $0x48] sm:$0xff] }
 0x214   : > { %3341 = vst.msk [vmem:[#allocation3 + $0x68] sm:$0xff] %vm1056_vm1, %v3323_v55  ;;  %v3603_v0 = vadd.f32 %v4691_v21, %v3355_v63  ;;  %v3354_v2 = vld [vmem:[#allocation3 + $0x40] sm:$0xff]  ;;  %v3657_v8 = vadd.f32 %v3656_v59, %v3655_v60  ;;  %v3646_v29 = vrot.slane %v3645_v3, 4 }
 0x215   : > { %4226 = vst.msk [vmem:[%s5231_s12 + $0x10] sm:$0xff] %vm1056_vm1, %v3667_v61  ;;  %3340 = vst.msk [vmem:[#allocation3 + $0x60] sm:$0xff] %vm1056_vm1, %v3322_v62  ;;  %v3602_v4 = vadd.f32 %v3545_v43, %v3354_v2  ;;  %v4669_v6 = vpop.f32.mrb[76].mxu1  ;;  %v5809_v7 = vpop.f32.mrb[76].mxu0  ;;  %v3682_v10 = vmul.f32 %v3667_v61, %v3667_v61  ;;  %v3672_v30 = vsel %vm1056_vm1, %v3667_v61, 0.0  ;;  %v3079_v62 = vld [vmem:[#allocation3 + $0x88] sm:$0xff] }
 0x216   : > { %v3666_v13 = vld [vmem:[#allocation3 + $0x1a] sm:$0xff]  ;;  %v3694_v15 = vld [vmem:[#allocation3 + $0x24] sm:$0xff]  ;;  %3621 = vst.msk [vmem:[#allocation3 + $0x48] sm:$0xff] %vm1056_vm1, %v3603_v0  ;;  %v3325_v16 = vadd.f32 %v4669_v6, %v3077_v5  ;;  %v3291_v18 = vpop.f32.mrb[77].mxu1  ;;  %v5812_v20 = vpop.f32.mrb[77].mxu0  ;;  %v3658_v34 = vrot.slane %v3657_v8, 4  ;;  %v3647_v44 = vadd.f32 %v3646_v29, %v3645_v3 }
 0x217   : > { %v3668_v9 = vadd.f32 %v5783_v11, %v3666_v13  ;;  %v3696_v24 = vadd.f32 %v5783_v11, %v3694_v15  ;;  %3620 = vst.msk [vmem:[#allocation3 + $0x40] sm:$0xff] %vm1056_vm1, %v3602_v4  ;;  %v3324_v25 = vadd.f32 %v3291_v18, %v3076_v17  ;;  %v3357_v26 = vld [vmem:[#allocation3 + $0x58] sm:$0xff]  ;;  %v3684_v35 = vsel %vm1056_vm1, %v3682_v10, 0.0  ;;  %v3078_v18 = vld [vmem:[#allocation3 + $0x80] sm:$0xff] }
 0x218   : > { %3343 = vst.msk [vmem:[#allocation3 + $0x78] sm:$0xff] %vm1056_vm1, %v3325_v16  ;;  %v3605_v27 = vadd.f32 %v4694_v51, %v3357_v26  ;;  %v3356_v28 = vld [vmem:[#allocation3 + $0x50] sm:$0xff]  ;;  %v3659_v47 = vadd.f32 %v3658_v34, %v3657_v8 }
 0x219   : > { %4227 = vst.msk [vmem:[%s5231_s12 + $0x18] sm:$0xff] %vm1056_vm1, %v3668_v9  ;;  %v3673_v32 = vsel %vm1056_vm1, %v3668_v9, 0.0  ;;  %v3683_v1 = vmul.f32 %v3668_v9, %v3668_v9  ;;  %4228 = vst.msk [vmem:[%s5231_s12 + $0x20] sm:$0xff] %vm1056_vm1, %v3696_v24  ;;  %v4672_v33 = vpop.f32.mrb[78].mxu1  ;;  %v5825_v31 = vpop.f32.mrb[78].mxu0  ;;  %v3604_v14 = vadd.f32 %v3555_v58, %v3356_v28  ;;  %v3711_v40 = vmul.f32 %v3696_v24, %v3696_v24 }
 0x21a   : > { %3342 = vst.msk [vmem:[#allocation3 + $0x70] sm:$0xff] %vm1056_vm1, %v3324_v25  ;;  %v3674_v12 = vadd.f32 %v3673_v32, %v3672_v30  ;;  %v3695_v36 = vld [vmem:[#allocation3 + $0x2c] sm:$0xff]  ;;  %v3723_v37 = vld [vmem:[#allocation3 + $0x36] sm:$0xff]  ;;  %3623 = vst.msk [vmem:[#allocation3 + $0x58] sm:$0xff] %vm1056_vm1, %v3605_v27  ;;  %v3301_v21 = vpop.f32.mrb[79].mxu1  ;;  %v5829_v38 = vpop.f32.mrb[79].mxu0  ;;  %v3327_v3 = vadd.f32 %v4672_v33, %v3079_v62 }
 0x21b   : > { %v3685_v39 = vsel %vm1056_vm1, %v3683_v1, 0.0  ;;  %v3697_v41 = vadd.f32 %v5783_v11, %v3695_v36  ;;  %v3725_v42 = vadd.f32 %v5783_v11, %v3723_v37  ;;  %3622 = vst.msk [vmem:[#allocation3 + $0x50] sm:$0xff] %vm1056_vm1, %v3604_v14  ;;  %v3701_v49 = vsel %vm1056_vm1, %v3696_v24, 0.0  ;;  %v3359_v14 = vld [vmem:[#allocation3 + $0x68] sm:$0xff] }
 0x21c   : > { %v3675_v43 = vrot.slane %v3674_v12, 4  ;;  %v3686_v22 = vadd.f32 %v3685_v39, %v3684_v35  ;;  %v3713_v52 = vsel %vm1056_vm1, %v3711_v40, 0.0  ;;  %v3648_v58 = vrot.slane %v3647_v44, 2  ;;  %3345 = vst.msk [vmem:[#allocation3 + $0x88] sm:$0xff] %vm1056_vm1, %v3327_v3 }
 0x21d   : > { %4229 = vst.msk [vmem:[%s5231_s12 + $0x28] sm:$0xff] %vm1056_vm1, %v3697_v41  ;;  %v3702_v19 = vsel %vm1056_vm1, %v3697_v41, 0.0  ;;  %v3712_v23 = vmul.f32 %v3697_v41, %v3697_v41  ;;  %4230 = vst.msk [vmem:[%s5231_s12 + $0x30] sm:$0xff] %vm1056_vm1, %v3725_v42  ;;  %v3752_v45 = vld [vmem:[#allocation3 + $0x48] sm:$0xff]  ;;  %v5840_v46 = vpop.f32.mrb[80].mxu0  ;;  %v3660_v63 = vrot.slane %v3659_v47, 2  ;;  %v3740_v2 = vmul.f32 %v3725_v42, %v3725_v42 }
 0x21e   : > { %v3687_v48 = vrot.slane %v3686_v22, 4  ;;  %v3724_v50 = vld [vmem:[#allocation3 + $0x3e] sm:$0xff]  ;;  %v5843_v51 = vpop.f32.mrb[81].mxu0  ;;  %v3703_v53 = vadd.f32 %v3702_v19, %v3701_v49  ;;  %v3754_v55 = vadd.f32 %v5783_v11, %v3752_v45  ;;  %v3676_v56 = vadd.f32 %v3675_v43, %v3674_v12 }
 0x21f   : > { %v3714_v54 = vsel %vm1056_vm1, %v3712_v23, 0.0  ;;  %v3726_v61 = vadd.f32 %v5783_v11, %v3724_v50  ;;  %v3730_v5 = vsel %vm1056_vm1, %v3725_v42, 0.0  ;;  %v3326_v26 = vadd.f32 %v3301_v21, %v3078_v18  ;;  %v3358_v42 = vld [vmem:[#allocation3 + $0x60] sm:$0xff]  ;;  %v3361_v19 = vld [vmem:[#allocation3 + $0x78] sm:$0xff] }
 0x220   : > { %v3715_v57 = vadd.f32 %v3714_v54, %v3713_v52  ;;  %v3688_v59 = vadd.f32 %v3687_v48, %v3686_v22  ;;  %v3704_v60 = vrot.slane %v3703_v53, 4  ;;  %4232 = vst.msk [vmem:[%s5231_s12 + $0x40] sm:$0xff] %vm1056_vm1, %v3754_v55  ;;  %v3677_v13 = vrot.slane %v3676_v56, 2 }
 0x221   : > { %4231 = vst.msk [vmem:[%s5231_s12 + $0x38] sm:$0xff] %vm1056_vm1, %v3726_v61  ;;  %v3731_v6 = vsel %vm1056_vm1, %v3726_v61, 0.0  ;;  %v3741_v8 = vmul.f32 %v3726_v61, %v3726_v61  ;;  %v3769_v16 = vmul.f32 %v3754_v55, %v3754_v55  ;;  %v3742_v29 = vsel %vm1056_vm1, %v3740_v2, 0.0  ;;  %3344 = vst.msk [vmem:[#allocation3 + $0x80] sm:$0xff] %vm1056_vm1, %v3326_v26  ;;  %v3360_v49 = vld [vmem:[#allocation3 + $0x70] sm:$0xff] }
 0x222   : > { %v3716_v0 = vrot.slane %v3715_v57, 4  ;;  %v3705_v4 = vadd.f32 %v3704_v60, %v3703_v53  ;;  %v3753_v10 = vld [vmem:[#allocation3 + $0x50] sm:$0xff]  ;;  %v3732_v17 = vadd.f32 %v3731_v6, %v3730_v5  ;;  %v3689_v9 = vrot.slane %v3688_v59, 2 }
 0x223   : > { %v3743_v24 = vsel %vm1056_vm1, %v3741_v8, 0.0  ;;  %v3755_v25 = vadd.f32 %v5783_v11, %v3753_v10  ;;  %v3649_v32 = vadd.f32 %v3648_v58, %v3647_v44  ;;  %v3661_v35 = vadd.f32 %v3660_v63, %v3659_v47  ;;  %v3363_v54 = vld [vmem:[#allocation3 + $0x88] sm:$0xff] }
 0x224   : > { %v3717_v15 = vadd.f32 %v3716_v0, %v3715_v57  ;;  %v3706_v27 = vrot.slane %v3705_v4, 2  ;;  %v3733_v30 = vrot.slane %v3732_v17, 4  ;;  %v3744_v1 = vadd.f32 %v3743_v24, %v3742_v29 }
 0x225   : > { %4233 = vst.msk [vmem:[%s5231_s12 + $0x48] sm:$0xff] %vm1056_vm1, %v3755_v25  ;;  %v3760_v33 = vsel %vm1056_vm1, %v3755_v25, 0.0  ;;  %v3770_v34 = vmul.f32 %v3755_v25, %v3755_v25  ;;  %v3678_v12 = vadd.f32 %v3677_v13, %v3676_v56  ;;  %v3759_v36 = vsel %vm1056_vm1, %v3754_v55, 0.0 }
 0x226   : > { %v3718_v28 = vrot.slane %v3717_v15, 2  ;;  %v3734_v37 = vadd.f32 %v3733_v30, %v3732_v17  ;;  %v3690_v21 = vadd.f32 %v3689_v9, %v3688_v59  ;;  %v3771_v39 = vsel %vm1056_vm1, %v3769_v16, 0.0 }
 0x227   : > { %v3761_v40 = vadd.f32 %v3760_v33, %v3759_v36  ;;  %v3772_v41 = vsel %vm1056_vm1, %v3770_v34, 0.0  ;;  %v3707_v43 = vadd.f32 %v3706_v27, %v3705_v4  ;;  %v3745_v45 = vrot.slane %v3744_v1, 4 }
 0x228   : > { %v3719_v22 = vadd.f32 %v3718_v28, %v3717_v15  ;;  %v3773_v44 = vadd.f32 %v3772_v41, %v3771_v39  ;;  %v3735_v23 = vrot.slane %v3734_v37, 2  ;;  %v3607_v47 = vadd.f32 %v5809_v7, %v3359_v14  ;;  %v3362_v62 = vld [vmem:[#allocation3 + $0x80] sm:$0xff] }
 0x229   : > { %v3762_v48 = vrot.slane %v3761_v40, 4  ;;  %v3650_v50 = vrot.slane %v3649_v32, 1  ;;  %v3606_v53 = vadd.f32 %v5812_v20, %v3358_v42  ;;  %v3662_v55 = vrot.slane %v3661_v35, 1 }
 0x22a   : > { %v3774_v52 = vrot.slane %v3773_v44, 4  ;;  %v3679_v56 = vrot.slane %v3678_v12, 1  ;;  %v3691_v57 = vrot.slane %v3690_v21, 1  ;;  %3625 = vst.msk [vmem:[#allocation3 + $0x68] sm:$0xff] %vm1056_vm1, %v3607_v47  ;;  %v3609_v58 = vadd.f32 %v5825_v31, %v3361_v19 }
 0x22b   : > { %v3708_v59 = vrot.slane %v3707_v43, 1  ;;  %v3720_v60 = vrot.slane %v3719_v22, 1  ;;  %v3763_v61 = vadd.f32 %v3762_v48, %v3761_v40  ;;  %3624 = vst.msk [vmem:[#allocation3 + $0x60] sm:$0xff] %vm1056_vm1, %v3606_v53  ;;  %v3608_v7 = vadd.f32 %v5829_v38, %v3360_v49 }
 0x22c   : > { %v3736_v63 = vadd.f32 %v3735_v23, %v3734_v37  ;;  %v3746_v0 = vadd.f32 %v3745_v45, %v3744_v1  ;;  %3627 = vst.msk [vmem:[#allocation3 + $0x78] sm:$0xff] %vm1056_vm1, %v3609_v58  ;;  %v3611_v20 = vadd.f32 %v5840_v46, %v3363_v54  ;;  %v3610_v2 = vadd.f32 %v5843_v51, %v3362_v62 }
 0x22d   : > { %v3775_v3 = vadd.f32 %v3774_v52, %v3773_v44  ;;  %3626 = vst.msk [vmem:[#allocation3 + $0x70] sm:$0xff] %vm1056_vm1, %v3608_v7  ;;  %v3680_v31 = vadd.f32 %v3679_v56, %v3678_v12  ;;  %v3692_v4 = vadd.f32 %v3691_v57, %v3690_v21  ;;  %v3651_v5 = vadd.f32 %v3650_v50, %v3649_v32 }
 0x22e   : > { %3629 = vst.msk [vmem:[#allocation3 + $0x88] sm:$0xff] %vm1056_vm1, %v3611_v20  ;;  %3628 = vst.msk [vmem:[#allocation3 + $0x80] sm:$0xff] %vm1056_vm1, %v3610_v2  ;;  %v3663_v38 = vadd.f32 %v3662_v55, %v3661_v35  ;;  %v3764_v6 = vrot.slane %v3763_v61, 2  ;;  %v3709_v8 = vadd.f32 %v3708_v59, %v3707_v43  ;;  %v3721_v10 = vadd.f32 %v3720_v60, %v3719_v22 }
 0x22f   : > { %v3737_v13 = vrot.slane %v3736_v63, 1  ;;  %v3747_v15 = vrot.slane %v3746_v0, 2  ;;  %v3776_v46 = vrot.slane %v3775_v3, 2  ;;  %v3681_v51 = vadd.f32 %v3680_v31, %v3651_v5 }
 0x230   : > { %v3693_v16 = vadd.f32 %v3692_v4, %v3663_v38  ;;  %v3765_v9 = vadd.f32 %v3764_v6, %v3763_v61 }
 0x231   : > { %v5880_v26 = vadd.f32 %v3709_v8, %v3681_v51  ;;  %v5884_v28 = vadd.f32 %v3737_v13, %v3736_v63  ;;  %v3748_v29 = vadd.f32 %v3747_v15, %v3746_v0  ;;  %v5886_v1 = vadd.f32 %v3776_v46, %v3775_v3 }
 0x232   : > { %v3781_v17 = vld [vmem:[#allocation3 + $0x5a] sm:$0xff]  ;;  %v3782_v18 = vld [vmem:[#allocation3 + $0x62] sm:$0xff]  ;;  %v5882_v27 = vadd.f32 %v3721_v10, %v3693_v16  ;;  %v3766_v40 = vrot.slane %v3765_v9, 1 }
 0x233   : > { %v3783_v24 = vadd.f32 %v5783_v11, %v3781_v17  ;;  %v3784_v25 = vadd.f32 %v5783_v11, %v3782_v18  ;;  %v3749_v7 = vrot.slane %v3748_v29, 1  ;;  %v3778_v4 = vrot.slane %v5886_v1, 1 }
 0x234   : > { %v3810_v30 = vld [vmem:[#allocation3 + $0x6c] sm:$0xff]  ;;  %v3811_v32 = vld [vmem:[#allocation3 + $0x74] sm:$0xff]  ;;  %v3767_v8 = vadd.f32 %v3766_v40, %v3765_v9  ;;  %v3739_v18 = vadd.f32 %v5884_v28, %v5880_v26 }
 0x235   : > { %4234 = vst.msk [vmem:[%s5231_s12 + $0x50] sm:$0xff] %vm1056_vm1, %v3783_v24  ;;  %4235 = vst.msk [vmem:[%s5231_s12 + $0x58] sm:$0xff] %vm1056_vm1, %v3784_v25  ;;  %v3788_v33 = vsel %vm1056_vm1, %v3783_v24, 0.0  ;;  %v3789_v34 = vsel %vm1056_vm1, %v3784_v25, 0.0  ;;  %v3798_v35 = vmul.f32 %v3783_v24, %v3783_v24  ;;  %v3839_v12 = vld [vmem:[#allocation3 + $0x7e] sm:$0xff]  ;;  %v3840_v36 = vld [vmem:[#allocation3 + $0x86] sm:$0xff]  ;;  %v3799_v14 = vmul.f32 %v3784_v25, %v3784_v25 }
 0x236   : > { %v3790_v37 = vadd.f32 %v3789_v34, %v3788_v33  ;;  %v3812_v21 = vadd.f32 %v5783_v11, %v3810_v30  ;;  %v3813_v39 = vadd.f32 %v5783_v11, %v3811_v32  ;;  %v3841_v42 = vadd.f32 %v5783_v11, %v3839_v12 }
 0x237   : > { %v3800_v41 = vsel %vm1056_vm1, %v3798_v35, 0.0  ;;  %v3842_v43 = vadd.f32 %v5783_v11, %v3840_v36  ;;  %v3801_v44 = vsel %vm1056_vm1, %v3799_v14, 0.0  ;;  %v3750_v46 = vadd.f32 %v3749_v7, %v3748_v29 }
 0x238   : > { %v3791_v22 = vrot.slane %v3790_v37, 4  ;;  %4236 = vst.msk [vmem:[%s5231_s12 + $0x60] sm:$0xff] %vm1056_vm1, %v3812_v21  ;;  %4237 = vst.msk [vmem:[%s5231_s12 + $0x68] sm:$0xff] %vm1056_vm1, %v3813_v39  ;;  %v3817_v19 = vsel %vm1056_vm1, %v3812_v21, 0.0  ;;  %v3818_v23 = vsel %vm1056_vm1, %v3813_v39, 0.0  ;;  %v3802_v45 = vadd.f32 %v3801_v44, %v3800_v41 }
 0x239   : > { %v3819_v48 = vadd.f32 %v3818_v23, %v3817_v19  ;;  %v3827_v47 = vmul.f32 %v3812_v21, %v3812_v21  ;;  %v3828_v49 = vmul.f32 %v3813_v39, %v3813_v39  ;;  %4238 = vst.msk [vmem:[%s5231_s12 + $0x70] sm:$0xff] %vm1056_vm1, %v3841_v42  ;;  %4239 = vst.msk [vmem:[%s5231_s12 + $0x78] sm:$0xff] %vm1056_vm1, %v3842_v43  ;;  %v3846_v50 = vsel %vm1056_vm1, %v3841_v42, 0.0 }
 0x23a   : > { %v3792_v11 = vadd.f32 %v3791_v22, %v3790_v37  ;;  %v3847_v52 = vsel %vm1056_vm1, %v3842_v43, 0.0  ;;  %v3856_v53 = vmul.f32 %v3841_v42, %v3841_v42  ;;  %v3803_v54 = vrot.slane %v3802_v45, 4 }
 0x23b   : > { %v3820_v55 = vrot.slane %v3819_v48, 4  ;;  %v3829_v56 = vsel %vm1056_vm1, %v3827_v47, 0.0  ;;  %v3830_v57 = vsel %vm1056_vm1, %v3828_v49, 0.0  ;;  %v3848_v60 = vadd.f32 %v3847_v52, %v3846_v50 }
 0x23c   : > { %v3793_v58 = vrot.slane %v3792_v11, 2  ;;  %v3831_v59 = vadd.f32 %v3830_v57, %v3829_v56  ;;  %v3857_v61 = vmul.f32 %v3842_v43, %v3842_v43  ;;  %v3804_v62 = vadd.f32 %v3803_v54, %v3802_v45 }
 0x23d   : > { %v3821_v63 = vadd.f32 %v3820_v55, %v3819_v48  ;;  %v3858_v0 = vsel %vm1056_vm1, %v3856_v53, 0.0  ;;  %v3849_v3 = vrot.slane %v3848_v60, 4  ;;  %v3779_v32 = vadd.f32 %v3778_v4, %v5886_v1 }
 0x23e   : > { %v3794_v20 = vadd.f32 %v3793_v58, %v3792_v11  ;;  %v3832_v2 = vrot.slane %v3831_v59, 4  ;;  %v3859_v31 = vsel %vm1056_vm1, %v3857_v61, 0.0  ;;  %v3805_v5 = vrot.slane %v3804_v62, 2 }
 0x23f   : > { %v3822_v38 = vrot.slane %v3821_v63, 2  ;;  %v3860_v6 = vadd.f32 %v3859_v31, %v3858_v0  ;;  %v3850_v15 = vadd.f32 %v3849_v3, %v3848_v60  ;;  %v3768_v12 = vadd.f32 %v3767_v8, %v3739_v18 }
 0x240   : > { %v3795_v10 = vrot.slane %v3794_v20, 1  ;;  %v3833_v13 = vadd.f32 %v3832_v2, %v3831_v59  ;;  %v3806_v51 = vadd.f32 %v3805_v5, %v3804_v62  ;;  %v3751_v37 = vadd.f32 %v3750_v46, %v5882_v27 }
 0x241   : > { %v3823_v16 = vadd.f32 %v3822_v38, %v3821_v63  ;;  %v3861_v17 = vrot.slane %v3860_v6, 4  ;;  %v3851_v30 = vrot.slane %v3850_v15, 2 }
 0x242   : > { %v3796_v24 = vadd.f32 %v3795_v10, %v3794_v20  ;;  %v3834_v25 = vrot.slane %v3833_v13, 2  ;;  %v3807_v33 = vrot.slane %v3806_v51, 1  ;;  %v3780_v40 = vadd.f32 %v3779_v32, %v3751_v37 }
 0x243   : > { %v3824_v34 = vrot.slane %v3823_v16, 1  ;;  %v3862_v35 = vadd.f32 %v3861_v17, %v3860_v6  ;;  %v3852_v36 = vadd.f32 %v3851_v30, %v3850_v15 }
 0x244   : > { %v3835_v9 = vadd.f32 %v3834_v25, %v3833_v13  ;;  %v3808_v29 = vadd.f32 %v3807_v33, %v3806_v51  ;;  %v3797_v39 = vadd.f32 %v3796_v24, %v3768_v12 }
 0x245   : > { %v3825_v14 = vadd.f32 %v3824_v34, %v3823_v16  ;;  %v3863_v21 = vrot.slane %v3862_v35, 2  ;;  %v3853_v28 = vrot.slane %v3852_v36, 1 }
 0x246   : > { %v3836_v26 = vrot.slane %v3835_v9, 1  ;;  %v3809_v22 = vadd.f32 %v3808_v29, %v3780_v40 }
 0x247   : > { %v3864_v41 = vadd.f32 %v3863_v21, %v3862_v35  ;;  %v3826_v42 = vadd.f32 %v3825_v14, %v3797_v39  ;;  %v3854_v43 = vadd.f32 %v3853_v28, %v3852_v36 }
 0x248   : > { %v3837_v1 = vadd.f32 %v3836_v26, %v3835_v9 }
 0x249   : > { %v3865_v44 = vrot.slane %v3864_v41, 1  ;;  %v3855_v19 = vadd.f32 %v3854_v43, %v3826_v42 }
 0x24a   : > { %v3838_v23 = vadd.f32 %v3837_v1, %v3809_v22 }
 0x24b   : > { %v3866_v45 = vadd.f32 %v3865_v44, %v3864_v41  ;;  %3869 = vst.msk [vmem:[%s5262_s25] sm:$0x1] %vm3868_vm2, %v3855_v19 }
 0x24d   : > { %v3867_v27 = vadd.f32 %v3866_v45, %v3838_v23 }
 0x24f   : > { %3870 = vst.msk [vmem:[%s5262_s25 + $0x1] sm:$0x1] %vm3868_vm2, %v3867_v27 }
 0x250 PF: > { %s19_s22 = sadd.s32 1, %s4957_s22   ;;  %s5966_s30 = smov %s5100_s15 }
 0x251   : > { %p16_p10 = scmp.ge.s32.totalorder %s19_s22, 6   ;;  %s5967_s15 = smov %s4933_s16 }
 0x252   : > { %s5968_s16 = smov %s4937_s17  ;;  %s5969_s17 = smov %s5966_s30 }
 0x253   : > { %s5970_s18 = smov %s4949_s20  ;;  %s5971_s19 = smov %s4953_s21 }
 0x254   : > { %s5972_s20 = smov %s5975_s23  ;;  %s5973_s21 = smov %s5979_s27 }
 0x255   :  { %18 = sbr.rel (!%p16_p10) target bundleno = 6 (0x6), region = 114 }
 0x25c   :  { %3925 = vsyncpa [#allocation5], 1 }
 0x25d   :  { %3927 = vsyncpa [#allocation5 + $0x1], 1 }
 0x25e   :  { %3928 = vsyncpa [#allocation7], 1 }

</bundles_post_ra>
